<compile_context>
chip_gen: v7x
topology: tpu7x:2x2x1
jax: 0.10.0
libtpu: 0.0.40
codegen_flags: <defaults>
</compile_context>

<pallas_src>
import functools

import jax
import jax.numpy as jnp
import numpy as np
from jax import lax
from jax.experimental import pallas as pl
from jax.experimental.pallas import tpu as pltpu

GN_GROUPS = 32
GN_EPS = 1e-5


# ---------------------------------------------------------------------------
# Generation-aware VMEM sizing.
# ---------------------------------------------------------------------------
def _vmem_phys_bytes():
    """Physical VMEM per TensorCore; conservative 64 MiB unless clearly v5e/v6e."""
    phys = 64 * 1024 * 1024                      # v7x per-core VMEM (safe floor)
    try:
        kind = jax.devices()[0].device_kind.lower()
        if "v5" in kind or "v6" in kind:
            phys = 128 * 1024 * 1024             # v5e / v6e
    except Exception:
        pass
    return phys


def _divisor_tile(n, cap):
    """Largest multiple-of-128 tile <= cap that divides n (falls back to n)."""
    if n <= cap:
        return n
    t = (cap // 128) * 128
    while t >= 128:
        if n % t == 0:
            return t
        t -= 128
    return n


def _attn_fits(tq, tk, c, budget):
    vmem = (2 * tq * c * 2            # q blocks (bf16, double buffered)
            + 2 * 2 * tk * c * 2      # k + v blocks
            + 2 * 2 * c * tq * 4      # x residual + output blocks (f32)
            + tq * c * 4 + 2 * tq * 4 # acc / m / l scratch
            + 3 * tq * tk * 4)        # score + exp temporaries (f32)
    return vmem <= budget and tq * tk * 4 <= 2 * 1024 * 1024


def _attn_tiles(hw, c, batch, budget, q_tile=None, kv_tile=None):
    cands = sorted({t for t in (hw, 4096, 2048, 1024, 512, 256, 128)
                    if t <= hw and hw % t == 0}, reverse=True)
    if q_tile is not None:
        assert hw % q_tile == 0
        t_q = q_tile
    else:
        t_q = next((t for t in cands if t <= 256), cands[-1])
        if batch * (hw // t_q) < 2:              # keep >= 2 parallel iters (v7x 2 TCs)
            smaller = [t for t in cands if t < t_q]
            if smaller:
                t_q = smaller[0]
    if kv_tile is not None:
        assert hw % kv_tile == 0
        t_kv = kv_tile
    else:
        t_kv = next((t for t in cands if _attn_fits(t_q, t, c, budget)), cands[-1])
    return t_q, t_kv


# ---------------------------------------------------------------------------
# Kernel 1: fused GroupNorm stats + affine + fused QKV projection.
# ---------------------------------------------------------------------------
def _gn_qkv_kernel(x_ref, selgc_ref, selcg_ref, gamma_ref, beta_ref,
                   wqkv_ref, bqkv_ref, qkv_ref, scale_sc, shift_sc,
                   *, t_hw, n_hw):
    j = pl.program_id(1)
    c = scale_sc.shape[0]

    @pl.when(j == 0)
    def _():
        # Two-pass GroupNorm statistics over the per-batch resident x block
        # (VMEM-only traffic); group reduce/broadcast via tiny matmuls.
        def _sum_body(i, acc):
            st = pl.multiple_of(i * t_hw, t_hw)
            return acc + jnp.sum(x_ref[0, :, pl.ds(st, t_hw)], axis=1, keepdims=True)

        s_c = lax.fori_loop(0, n_hw, _sum_body,
                            jnp.zeros((c, 1), jnp.float32), unroll=n_hw <= 8)
        mean_g = jnp.dot(selgc_ref[...], s_c, preferred_element_type=jnp.float32)
        mean_c = jnp.dot(selcg_ref[...], mean_g, preferred_element_type=jnp.float32)

        def _var_body(i, acc):
            st = pl.multiple_of(i * t_hw, t_hw)
            d = x_ref[0, :, pl.ds(st, t_hw)] - mean_c
            return acc + jnp.sum(d * d, axis=1, keepdims=True)

        dsq_c = lax.fori_loop(0, n_hw, _var_body,
                              jnp.zeros((c, 1), jnp.float32), unroll=n_hw <= 8)
        var_g = jnp.dot(selgc_ref[...], dsq_c, preferred_element_type=jnp.float32)
        var_c = jnp.dot(selcg_ref[...], var_g, preferred_element_type=jnp.float32)

        inv_c = lax.rsqrt(var_c + GN_EPS)
        sc = gamma_ref[...] * inv_c
        scale_sc[...] = sc
        shift_sc[...] = beta_ref[...] - mean_c * sc

    # GroupNorm affine in native (C, t) layout, single bf16 transpose, one fused
    # (t, C) @ (C, 3C) MXU matmul (C^-0.5 already folded into the q columns).
    st = pl.multiple_of(j * t_hw, t_hw)
    xt = x_ref[0, :, pl.ds(st, t_hw)]                       # (C, t) f32
    h = xt * scale_sc[...] + shift_sc[...]                  # GroupNorm affine
    ht = h.astype(jnp.bfloat16).T                           # (t, C) bf16
    qkv = jnp.dot(ht, wqkv_ref[...],
                  preferred_element_type=jnp.float32) + bqkv_ref[...]
    qkv_ref[0] = qkv.astype(jnp.bfloat16)                   # (t, 3C) token layout


# ---------------------------------------------------------------------------
# Kernel 2a: single-kv-tile attention (plain softmax) + residual.
# ---------------------------------------------------------------------------
def _attn_softmax_kernel(q_ref, k_ref, v_ref, x_ref, o_ref):
    q = q_ref[0]                                            # (tq, C) bf16, pre-scaled
    k = k_ref[0]                                            # (HW, C) bf16
    v = v_ref[0]                                            # (HW, C) bf16
    s = lax.dot_general(q, k, (((1,), (1,)), ((), ())),
                        preferred_element_type=jnp.float32)  # (tq, HW) f32
    m = jnp.max(s, axis=-1, keepdims=True)
    p = jnp.exp(s - m)
    l = jnp.sum(p, axis=-1, keepdims=True)
    out_tok = jnp.dot(p.astype(jnp.bfloat16), v, preferred_element_type=jnp.float32)
    out_tok = out_tok * pl.reciprocal(l, approx=True)        # (tq, C)
    o_ref[0] = (x_ref[0] + out_tok.T).astype(o_ref.dtype)    # (C, tq) NCHW layout


# ---------------------------------------------------------------------------
# Kernel 2b: flash attention (online softmax) + residual.
# ---------------------------------------------------------------------------
def _attn_flash_kernel(q_ref, k_ref, v_ref, x_ref, o_ref, m_sc, l_sc, acc_sc):
    ki = pl.program_id(2)

    @pl.when(ki == 0)
    def _():
        m_sc[...] = jnp.full_like(m_sc, -jnp.inf)
        l_sc[...] = jnp.zeros_like(l_sc)
        acc_sc[...] = jnp.zeros_like(acc_sc)

    q = q_ref[0]                                             # (tq, C) bf16
    k = k_ref[0]                                             # (tk, C) bf16
    v = v_ref[0]                                             # (tk, C) bf16
    s = lax.dot_general(q, k, (((1,), (1,)), ((), ())),
                        preferred_element_type=jnp.float32)   # (tq, tk) f32

    m_prev = m_sc[...]
    m_new = jnp.maximum(m_prev, jnp.max(s, axis=-1, keepdims=True))
    alpha = jnp.exp(m_prev - m_new)
    p = jnp.exp(s - m_new)
    l_sc[...] = alpha * l_sc[...] + jnp.sum(p, axis=-1, keepdims=True)
    acc_sc[...] = alpha * acc_sc[...] + jnp.dot(
        p.astype(jnp.bfloat16), v, preferred_element_type=jnp.float32)
    m_sc[...] = m_new

    @pl.when(ki == pl.num_programs(2) - 1)
    def _():
        out_tok = acc_sc[...] * pl.reciprocal(l_sc[...], approx=True)
        o_ref[0] = (x_ref[0] + out_tok.T).astype(o_ref.dtype)


# ---------------------------------------------------------------------------
# Wrapper
# ---------------------------------------------------------------------------
def nonlocal_block(x_nchw, params, *, q_tile=None, kv_tile=None):
    """x_nchw: (B, C, H, W) float32.  Returns (B, C, H, W)."""
    b, c, h, w = x_nchw.shape
    hw = h * w
    g = GN_GROUPS
    assert c % g == 0, "GroupNorm(32, C) requires C % 32 == 0"
    # TODO(synk): support C not divisible by 128; the UNet2D NonLocalBlock is
    # only instantiated with C in {256, 512}.
    assert c % 128 == 0, "this kernel assumes C % 128 == 0"
    cpg = c // g

    phys = _vmem_phys_bytes()
    vmem_limit = int(phys * 0.85)          # headroom for compiler-internal scratch
    tile_budget = int(phys * 0.55)         # budget used for tile sizing

    x3 = x_nchw.reshape(b, c, hw)          # free view, native NCHW (B, C, HW)

    # ---- constants --------------------------------------------------------
    qs = float(c) ** -0.5                  # C^-0.5 folded into Wq / bq
    wq_t = params["wq"].reshape(c, c).T * qs
    wk_t = params["wk"].reshape(c, c).T
    wv_t = params["wv"].reshape(c, c).T
    wqkv_t = jnp.concatenate([wq_t, wk_t, wv_t], axis=1).astype(jnp.bfloat16)  # (C,3C)
    bqkv = jnp.concatenate([params["bq"] * qs, params["bk"], params["bv"]]
                           ).reshape(1, 3 * c).astype(jnp.float32)
    gamma = params["gn_gamma"].reshape(c, 1).astype(jnp.float32)
    beta = params["gn_beta"].reshape(c, 1).astype(jnp.float32)
    gid = np.arange(c) // cpg
    sel_gc = jnp.asarray((gid[None, :] == np.arange(g)[:, None]).astype(np.float32)
                         / float(hw * cpg))                                     # (G, C)
    sel_cg = jnp.asarray((gid[:, None] == np.arange(g)[None, :]).astype(np.float32))  # (C, G)
    # params["w_proj"] / params["b_proj"] exist but forward() never applies proj_out.

    # ---- kernel 1: fused GroupNorm stats + affine + QKV projection --------
    const2 = 2 * (c * 3 * c * 2 + 3 * c * 4 + g * c * 4 + c * g * 4 + 2 * c * 4)
    resident2 = 2 * c * hw * 4 + const2 + 2 * c * 4 * 2
    # TODO(synk): add a streamed-stats fallback when the per-batch x block does
    # not fit VMEM (only for very large H*W).
    assert resident2 < tile_budget, "per-batch x block does not fit the VMEM budget"
    cap2 = max(128, (tile_budget - resident2) // (2 * 3 * c * 2))
    t2 = _divisor_tile(hw, min(1024, cap2))
    n2 = hw // t2

    qkv = pl.pallas_call(
        functools.partial(_gn_qkv_kernel, t_hw=t2, n_hw=n2),
        out_shape=jax.ShapeDtypeStruct((b, hw, 3 * c), jnp.bfloat16),
        grid_spec=pltpu.PrefetchScalarGridSpec(
            num_scalar_prefetch=0,
            grid=(b, n2),
            in_specs=[
                pl.BlockSpec((1, c, hw), lambda i, j: (i, 0, 0)),   # x resident / batch
                pl.BlockSpec((g, c), lambda i, j: (0, 0)),          # group-sum matrix
                pl.BlockSpec((c, g), lambda i, j: (0, 0)),          # group-bcast matrix
                pl.BlockSpec((c, 1), lambda i, j: (0, 0)),          # gamma
                pl.BlockSpec((c, 1), lambda i, j: (0, 0)),          # beta
                pl.BlockSpec((c, 3 * c), lambda i, j: (0, 0)),      # Wqkv^T (bf16)
                pl.BlockSpec((1, 3 * c), lambda i, j: (0, 0)),      # bqkv
            ],
            out_specs=pl.BlockSpec((1, t2, 3 * c), lambda i, j: (i, j, 0)),
            scratch_shapes=[pltpu.VMEM((c, 1), jnp.float32),        # GN scale
                            pltpu.VMEM((c, 1), jnp.float32)],       # GN shift
        ),
        compiler_params=pltpu.CompilerParams(
            dimension_semantics=("parallel", "arbitrary"),
            vmem_limit_bytes=vmem_limit),
    )(x3, sel_gc, sel_cg, gamma, beta, wqkv_t, bqkv)

    # ---- kernel 2: attention + residual, output directly in NCHW layout ---
    t_q, t_kv = _attn_tiles(hw, c, b, tile_budget, q_tile=q_tile, kv_tile=kv_tile)
    n_q, n_kv = hw // t_q, hw // t_kv

    if n_kv == 1:
        grid = (b, n_q)
        in_specs = [
            pl.BlockSpec((1, t_q, c), lambda i, qi: (i, qi, 0)),    # q  (channels 0:C)
            pl.BlockSpec((1, t_kv, c), lambda i, qi: (i, 0, 1)),    # k  (channels C:2C)
            pl.BlockSpec((1, t_kv, c), lambda i, qi: (i, 0, 2)),    # v  (channels 2C:3C)
            pl.BlockSpec((1, c, t_q), lambda i, qi: (i, 0, qi)),    # x residual
        ]
        out_spec = pl.BlockSpec((1, c, t_q), lambda i, qi: (i, 0, qi))
        kernel = _attn_softmax_kernel
        scratch = []
        dims = ("parallel", "parallel")
    else:
        grid = (b, n_q, n_kv)
        in_specs = [
            pl.BlockSpec((1, t_q, c), lambda i, qi, ki: (i, qi, 0)),
            pl.BlockSpec((1, t_kv, c), lambda i, qi, ki: (i, ki, 1)),
            pl.BlockSpec((1, t_kv, c), lambda i, qi, ki: (i, ki, 2)),
            pl.BlockSpec((1, c, t_q), lambda i, qi, ki: (i, 0, qi)),
        ]
        out_spec = pl.BlockSpec((1, c, t_q), lambda i, qi, ki: (i, 0, qi))
        kernel = _attn_flash_kernel
        scratch = [pltpu.VMEM((t_q, 1), jnp.float32),               # running max
                   pltpu.VMEM((t_q, 1), jnp.float32),               # running sum
                   pltpu.VMEM((t_q, c), jnp.float32)]               # accumulator
        dims = ("parallel", "parallel", "arbitrary")

    out3 = pl.pallas_call(
        kernel,
        out_shape=jax.ShapeDtypeStruct((b, c, hw), x_nchw.dtype),
        grid_spec=pltpu.PrefetchScalarGridSpec(
            num_scalar_prefetch=0, grid=grid,
            in_specs=in_specs, out_specs=out_spec, scratch_shapes=scratch),
        input_output_aliases={3: 0},          # residual x buffer reused as output
        compiler_params=pltpu.CompilerParams(
            dimension_semantics=dims, vmem_limit_bytes=vmem_limit),
    )(qkv, qkv, qkv, x3)

    return out3.reshape(b, c, h, w)


# ---------------------------------------------------------------------------
# Pure-JAX reference (matches the PyTorch forward exactly, full f32).
# ---------------------------------------------------------------------------
def _reference(x_nchw, params):
    b, c, h, w = x_nchw.shape
    hw = h * w
    cs = c // GN_GROUPS
    xg = x_nchw.reshape(b, GN_GROUPS, cs, h, w)
    mean = xg.mean(axis=(2, 3, 4), keepdims=True)
    var = xg.var(axis=(2, 3, 4), keepdims=True)
    hn = ((xg - mean) / jnp.sqrt(var + GN_EPS)).reshape(b, c, h, w)
    hn = hn * params["gn_gamma"].reshape(1, c, 1, 1) + params["gn_beta"].reshape(1, c, 1, 1)

    def conv1x1(t, wkey, bkey):
        wmat = params[wkey].reshape(c, c)
        return jnp.einsum("oi,bihw->bohw", wmat, t) + params[bkey].reshape(1, c, 1, 1)

    q = conv1x1(hn, "wq", "bq").reshape(b, c, hw).transpose(0, 2, 1)
    k = conv1x1(hn, "wk", "bk").reshape(b, c, hw)
    v = conv1x1(hn, "wv", "bv").reshape(b, c, hw)
    attn = jnp.einsum("bic,bcj->bij", q, k) * (float(c) ** -0.5)
    attn = jax.nn.softmax(attn, axis=2)
    a = jnp.einsum("bcj,bij->bci", v, attn).reshape(b, c, h, w)
    return x_nchw + a


def _init_params(key, channels):
    ks = jax.random.split(key, 10)
    std = 1.0 / np.sqrt(channels)
    return {
        "gn_gamma": jnp.ones((channels,), jnp.float32),
        "gn_beta": jnp.zeros((channels,), jnp.float32),
        "wq": jax.random.normal(ks[0], (channels, channels, 1, 1), jnp.float32) * std,
        "bq": jax.random.normal(ks[1], (channels,), jnp.float32) * 0.1,
        "wk": jax.random.normal(ks[2], (channels, channels, 1, 1), jnp.float32) * std,
        "bk": jax.random.normal(ks[3], (channels,), jnp.float32) * 0.1,
        "wv": jax.random.normal(ks[4], (channels, channels, 1, 1), jnp.float32) * std,
        "bv": jax.random.normal(ks[5], (channels,), jnp.float32) * 0.1,
        # proj_out params exist in __init__ but are unused in forward().
        "w_proj": jax.random.normal(ks[6], (channels, channels, 1, 1), jnp.float32) * std,
        "b_proj": jax.random.normal(ks[7], (channels,), jnp.float32) * 0.1,
    }


if __name__ == "__main__":
    key = jax.random.PRNGKey(0)
    kx, kp = jax.random.split(key)
    # C must be divisible by 32 (GroupNorm(32, C)); C=128 keeps lanes dense.
    B, C, H, W = 2, 128, 16, 16
    x = jax.random.normal(kx, (B, C, H, W), jnp.float32)
    params = _init_params(kp, C)
    ref = jax.block_until_ready(_reference(x, params))

    # Default tiling: single kv tile -> plain-softmax attention path.
    fwd = jax.jit(nonlocal_block)
    out = jax.block_until_ready(fwd(x, params))
    # bf16 MXU operands + approx reciprocal -> compare against f32 ref with a loose tol.
    np.testing.assert_allclose(np.asarray(out), np.asarray(ref), rtol=3e-2, atol=3e-2)

    # Force multiple kv tiles to exercise the flash path (incl. first-kv-tile -inf case).
    fwd_flash = jax.jit(functools.partial(nonlocal_block, q_tile=128, kv_tile=128))
    out2 = jax.block_until_ready(fwd_flash(x, params))
    np.testing.assert_allclose(np.asarray(out2), np.asarray(ref), rtol=3e-2, atol=3e-2)

    print("KERNEL_OK")
</pallas_src>

<mosaic_0001>
module attributes {stable_mosaic.version = 11 : i64} {
  func.func @_attn_softmax_kernel(%arg0: i32, %arg1: i32, %arg2: memref<1x256x128xbf16, #tpu.memory_space<vmem>>, %arg3: memref<1x256x128xbf16, #tpu.memory_space<vmem>>, %arg4: memref<1x256x128xbf16, #tpu.memory_space<vmem>>, %arg5: memref<1x128x256xf32, #tpu.memory_space<vmem>>, %arg6: memref<1x128x256xf32, #tpu.memory_space<vmem>>) attributes {dimension_semantics = [#tpu.dimension_semantics<parallel>, #tpu.dimension_semantics<parallel>], iteration_bounds = array<i64: 2, 1>, scalar_prefetch = 0 : i64, scratch_operands = 0 : i64, tpu.core_type = #tpu.core_type<tc>, window_params = [{transform_indices = @transform_0, window_bounds = array<i64: 1, 256, 128>}, {transform_indices = @transform_1, window_bounds = array<i64: 1, 256, 128>}, {transform_indices = @transform_2, window_bounds = array<i64: 1, 256, 128>}, {transform_indices = @transform_3, window_bounds = array<i64: 1, 128, 256>}, {transform_indices = @transform_4, window_bounds = array<i64: 1, 128, 256>}]} {
    %c0 = arith.constant 0 : index
    %c0_0 = arith.constant 0 : index
    %c0_1 = arith.constant 0 : index
    %0 = vector.load %arg2[%c0, %c0_0, %c0_1] : memref<1x256x128xbf16, #tpu.memory_space<vmem>>, vector<1x256x128xbf16>
    %1 = vector.shape_cast %0 : vector<1x256x128xbf16> to vector<256x128xbf16>
    %c0_2 = arith.constant 0 : index
    %c0_3 = arith.constant 0 : index
    %c0_4 = arith.constant 0 : index
    %2 = vector.load %arg3[%c0_2, %c0_3, %c0_4] : memref<1x256x128xbf16, #tpu.memory_space<vmem>>, vector<1x256x128xbf16>
    %3 = vector.shape_cast %2 : vector<1x256x128xbf16> to vector<256x128xbf16>
    %c0_5 = arith.constant 0 : index
    %c0_6 = arith.constant 0 : index
    %c0_7 = arith.constant 0 : index
    %4 = vector.load %arg4[%c0_5, %c0_6, %c0_7] : memref<1x256x128xbf16, #tpu.memory_space<vmem>>, vector<1x256x128xbf16>
    %5 = vector.shape_cast %4 : vector<1x256x128xbf16> to vector<256x128xbf16>
    %cst = arith.constant dense<0.000000e+00> : vector<256x256xf32>
    %6 = tpu.matmul %1, %3, %cst {dimension_numbers = #tpu.dot_dimension_numbers<[1], [1], [0], [0], [0, 0, 1, 0], [], []>} : vector<256x128xbf16>, vector<256x128xbf16>, vector<256x256xf32> -> vector<256x256xf32>
    %cst_8 = arith.constant dense<0xFF800000> : vector<256xf32>
    %7 = vector.multi_reduction <maximumf>, %6, %cst_8 [1] : vector<256x256xf32> to vector<256xf32>
    %8 = vector.shape_cast %7 : vector<256xf32> to vector<256x1xf32>
    %9 = vector.broadcast %8 : vector<256x1xf32> to vector<256x256xf32>
    %10 = arith.subf %6, %9 : vector<256x256xf32>
    %11 = math.exp %10 : vector<256x256xf32>
    %cst_9 = arith.constant dense<0.000000e+00> : vector<256xf32>
    %12 = vector.multi_reduction <add>, %11, %cst_9 [1] : vector<256x256xf32> to vector<256xf32>
    %13 = vector.shape_cast %12 : vector<256xf32> to vector<256x1xf32>
    %14 = arith.truncf %11 : vector<256x256xf32> to vector<256x256xbf16>
    %cst_10 = arith.constant dense<0.000000e+00> : vector<256x128xf32>
    %15 = tpu.matmul %14, %5, %cst_10 {dimension_numbers = #tpu.dot_dimension_numbers<[1], [0], [0], [1], [0, 0, 1, 1], [], []>} : vector<256x256xbf16>, vector<256x128xbf16>, vector<256x128xf32> -> vector<256x128xf32>
    %16 = tpu.reciprocal %13 {approx = true} : vector<256x1xf32> -> vector<256x1xf32>
    %17 = vector.broadcast %16 : vector<256x1xf32> to vector<256x128xf32>
    %18 = arith.mulf %15, %17 : vector<256x128xf32>
    %c0_11 = arith.constant 0 : index
    %c0_12 = arith.constant 0 : index
    %c0_13 = arith.constant 0 : index
    %19 = vector.load %arg5[%c0_11, %c0_12, %c0_13] : memref<1x128x256xf32, #tpu.memory_space<vmem>>, vector<1x128x256xf32>
    %20 = vector.shape_cast %19 : vector<1x128x256xf32> to vector<128x256xf32>
    %21 = tpu.transpose %18, [1, 0] : vector<256x128xf32> -> vector<128x256xf32>
    %22 = arith.addf %20, %21 : vector<128x256xf32>
    %c0_14 = arith.constant 0 : index
    %c0_15 = arith.constant 0 : index
    %c0_16 = arith.constant 0 : index
    %23 = vector.load %arg6[%c0_14, %c0_15, %c0_16] : memref<1x128x256xf32, #tpu.memory_space<vmem>>, vector<1x128x256xf32>
    %24 = vector.shape_cast %23 : vector<1x128x256xf32> to vector<128x256xf32>
    %25 = vector.shape_cast %22 : vector<128x256xf32> to vector<1x128x256xf32>
    tpu.vector_store %arg6[%c0_14, %c0_15, %c0_16], %25 {strides = array<i32>} : memref<1x128x256xf32, #tpu.memory_space<vmem>>, vector<1x128x256xf32>,
    return
  }
  func.func @transform_0(%arg0: i32, %arg1: i32) -> (i32, i32, i32) {
    %c0_i32 = arith.constant 0 : i32
    %c0_i32_0 = arith.constant 0 : i32
    return %arg0, %arg1, %c0_i32 : i32, i32, i32
  }
  func.func @transform_1(%arg0: i32, %arg1: i32) -> (i32, i32, i32) {
    %c0_i32 = arith.constant 0 : i32
    %c1_i32 = arith.constant 1 : i32
    %c0_i32_0 = arith.constant 0 : i32
    return %arg0, %c0_i32, %c1_i32 : i32, i32, i32
  }
  func.func @transform_2(%arg0: i32, %arg1: i32) -> (i32, i32, i32) {
    %c0_i32 = arith.constant 0 : i32
    %c2_i32 = arith.constant 2 : i32
    %c0_i32_0 = arith.constant 0 : i32
    return %arg0, %c0_i32, %c2_i32 : i32, i32, i32
  }
  func.func @transform_3(%arg0: i32, %arg1: i32) -> (i32, i32, i32) {
    %c0_i32 = arith.constant 0 : i32
    %c0_i32_0 = arith.constant 0 : i32
    return %arg0, %c0_i32, %arg1 : i32, i32, i32
  }
  func.func @transform_4(%arg0: i32, %arg1: i32) -> (i32, i32, i32) {
    %c0_i32 = arith.constant 0 : i32
    %c0_i32_0 = arith.constant 0 : i32
    return %arg0, %c0_i32, %arg1 : i32, i32, i32
  }
}

module attributes {stable_mosaic.version = 11 : i64} {
  func.func @_gn_qkv_kernel(%arg0: i32, %arg1: i32, %arg2: memref<1x128x256xf32, #tpu.memory_space<vmem>>, %arg3: memref<32x128xf32, #tpu.memory_space<vmem>>, %arg4: memref<128x32xf32, #tpu.memory_space<vmem>>, %arg5: memref<128x1xf32, #tpu.memory_space<vmem>>, %arg6: memref<128x1xf32, #tpu.memory_space<vmem>>, %arg7: memref<128x384xbf16, #tpu.memory_space<vmem>>, %arg8: memref<1x384xf32, #tpu.memory_space<vmem>>, %arg9: memref<1x256x384xbf16, #tpu.memory_space<vmem>>, %arg10: memref<128x1xf32, #tpu.memory_space<vmem>>, %arg11: memref<128x1xf32, #tpu.memory_space<vmem>>) attributes {dimension_semantics = [#tpu.dimension_semantics<parallel>, #tpu.dimension_semantics<arbitrary>], iteration_bounds = array<i64: 2, 1>, scalar_prefetch = 0 : i64, scratch_operands = 2 : i64, tpu.core_type = #tpu.core_type<tc>, window_params = [{transform_indices = @transform_0, window_bounds = array<i64: 1, 128, 256>}, {pipeline_mode = #tpu.pipeline_mode<synchronous>, transform_indices = @transform_1, window_bounds = array<i64: 32, 128>}, {pipeline_mode = #tpu.pipeline_mode<synchronous>, transform_indices = @transform_2, window_bounds = array<i64: 128, 32>}, {pipeline_mode = #tpu.pipeline_mode<synchronous>, transform_indices = @transform_3, window_bounds = array<i64: 128, 1>}, {pipeline_mode = #tpu.pipeline_mode<synchronous>, transform_indices = @transform_4, window_bounds = array<i64: 128, 1>}, {pipeline_mode = #tpu.pipeline_mode<synchronous>, transform_indices = @transform_5, window_bounds = array<i64: 128, 384>}, {pipeline_mode = #tpu.pipeline_mode<synchronous>, transform_indices = @transform_6, window_bounds = array<i64: 1, 384>}, {transform_indices = @transform_7, window_bounds = array<i64: 1, 256, 384>}]} {
    %c0_i32 = arith.constant 0 : i32
    %0 = arith.cmpi eq, %arg1, %c0_i32 : i32
    %1 = arith.extui %0 : i1 to i32
    %c0_i32_0 = arith.constant 0 : i32
    %2 = arith.cmpi ne, %1, %c0_i32_0 : i32
    scf.if %2 {
      %cst_13 = arith.constant 0.000000e+00 : f32
      %25 = vector.broadcast %cst_13 : f32 to vector<128x1xf32>
      %c0_i32_14 = arith.constant 0 : i32
      %c256_i32_15 = arith.constant 256 : i32
      %26 = arith.muli %c0_i32_14, %c256_i32_15 : i32
      %27 = tpu.assume_multiple %26, 256 : i32
      %c0_16 = arith.constant 0 : index
      %c0_17 = arith.constant 0 : index
      %28 = arith.index_cast %27 : i32 to index
      %29 = vector.load %arg2[%c0_16, %c0_17, %28] : memref<1x128x256xf32, #tpu.memory_space<vmem>>, vector<1x128x256xf32>
      %30 = vector.shape_cast %29 : vector<1x128x256xf32> to vector<128x256xf32>
      %cst_18 = arith.constant dense<0.000000e+00> : vector<128xf32>
      %31 = vector.multi_reduction <add>, %30, %cst_18 [1] : vector<128x256xf32> to vector<128xf32>
      %32 = vector.shape_cast %31 : vector<128xf32> to vector<128x1xf32>
      %33 = arith.addf %25, %32 : vector<128x1xf32>
      %c1_i32 = arith.constant 1 : i32
      %c0_19 = arith.constant 0 : index
      %c0_20 = arith.constant 0 : index
      %34 = vector.load %arg3[%c0_19, %c0_20] : memref<32x128xf32, #tpu.memory_space<vmem>>, vector<32x128xf32>
      %cst_21 = arith.constant dense<0.000000e+00> : vector<32x1xf32>
      %35 = tpu.matmul %34, %33, %cst_21 {dimension_numbers = #tpu.dot_dimension_numbers<[1], [0], [0], [1], [0, 0, 1, 1], [], []>} : vector<32x128xf32>, vector<128x1xf32>, vector<32x1xf32> -> vector<32x1xf32>
      %c0_22 = arith.constant 0 : index
      %c0_23 = arith.constant 0 : index
      %36 = vector.load %arg4[%c0_22, %c0_23] : memref<128x32xf32, #tpu.memory_space<vmem>>, vector<128x32xf32>
      %cst_24 = arith.constant dense<0.000000e+00> : vector<128x1xf32>
      %37 = tpu.matmul %36, %35, %cst_24 {dimension_numbers = #tpu.dot_dimension_numbers<[1], [0], [0], [1], [0, 0, 1, 1], [], []>} : vector<128x32xf32>, vector<32x1xf32>, vector<128x1xf32> -> vector<128x1xf32>
      %cst_25 = arith.constant 0.000000e+00 : f32
      %38 = vector.broadcast %cst_25 : f32 to vector<128x1xf32>
      %c0_i32_26 = arith.constant 0 : i32
      %c256_i32_27 = arith.constant 256 : i32
      %39 = arith.muli %c0_i32_26, %c256_i32_27 : i32
      %40 = tpu.assume_multiple %39, 256 : i32
      %c0_28 = arith.constant 0 : index
      %c0_29 = arith.constant 0 : index
      %41 = arith.index_cast %40 : i32 to index
      %42 = vector.load %arg2[%c0_28, %c0_29, %41] : memref<1x128x256xf32, #tpu.memory_space<vmem>>, vector<1x128x256xf32>
      %43 = vector.shape_cast %42 : vector<1x128x256xf32> to vector<128x256xf32>
      %44 = vector.broadcast %37 : vector<128x1xf32> to vector<128x256xf32>
      %45 = arith.subf %43, %44 : vector<128x256xf32>
      %46 = arith.mulf %45, %45 : vector<128x256xf32>
      %cst_30 = arith.constant dense<0.000000e+00> : vector<128xf32>
      %47 = vector.multi_reduction <add>, %46, %cst_30 [1] : vector<128x256xf32> to vector<128xf32>
      %48 = vector.shape_cast %47 : vector<128xf32> to vector<128x1xf32>
      %49 = arith.addf %38, %48 : vector<128x1xf32>
      %c1_i32_31 = arith.constant 1 : i32
      %c0_32 = arith.constant 0 : index
      %c0_33 = arith.constant 0 : index
      %50 = vector.load %arg3[%c0_32, %c0_33] : memref<32x128xf32, #tpu.memory_space<vmem>>, vector<32x128xf32>
      %cst_34 = arith.constant dense<0.000000e+00> : vector<32x1xf32>
      %51 = tpu.matmul %50, %49, %cst_34 {dimension_numbers = #tpu.dot_dimension_numbers<[1], [0], [0], [1], [0, 0, 1, 1], [], []>} : vector<32x128xf32>, vector<128x1xf32>, vector<32x1xf32> -> vector<32x1xf32>
      %c0_35 = arith.constant 0 : index
      %c0_36 = arith.constant 0 : index
      %52 = vector.load %arg4[%c0_35, %c0_36] : memref<128x32xf32, #tpu.memory_space<vmem>>, vector<128x32xf32>
      %cst_37 = arith.constant dense<0.000000e+00> : vector<128x1xf32>
      %53 = tpu.matmul %52, %51, %cst_37 {dimension_numbers = #tpu.dot_dimension_numbers<[1], [0], [0], [1], [0, 0, 1, 1], [], []>} : vector<128x32xf32>, vector<32x1xf32>, vector<128x1xf32> -> vector<128x1xf32>
      %cst_38 = arith.constant 9.99999974E-6 : f32
      %54 = vector.broadcast %cst_38 : f32 to vector<128x1xf32>
      %55 = arith.addf %53, %54 : vector<128x1xf32>
      %56 = math.rsqrt %55 : vector<128x1xf32>
      %c0_39 = arith.constant 0 : index
      %c0_40 = arith.constant 0 : index
      %57 = vector.load %arg5[%c0_39, %c0_40] : memref<128x1xf32, #tpu.memory_space<vmem>>, vector<128x1xf32>
      %58 = arith.mulf %57, %56 : vector<128x1xf32>
      %c0_41 = arith.constant 0 : index
      %c0_42 = arith.constant 0 : index
      %59 = vector.load %arg10[%c0_41, %c0_42] : memref<128x1xf32, #tpu.memory_space<vmem>>, vector<128x1xf32>
      tpu.vector_store %arg10[%c0_41, %c0_42], %58 {strides = array<i32>} : memref<128x1xf32, #tpu.memory_space<vmem>>, vector<128x1xf32>,
      %c0_43 = arith.constant 0 : index
      %c0_44 = arith.constant 0 : index
      %60 = vector.load %arg6[%c0_43, %c0_44] : memref<128x1xf32, #tpu.memory_space<vmem>>, vector<128x1xf32>
      %61 = arith.mulf %37, %58 : vector<128x1xf32>
      %62 = arith.subf %60, %61 : vector<128x1xf32>
      %c0_45 = arith.constant 0 : index
      %c0_46 = arith.constant 0 : index
      %63 = vector.load %arg11[%c0_45, %c0_46] : memref<128x1xf32, #tpu.memory_space<vmem>>, vector<128x1xf32>
      tpu.vector_store %arg11[%c0_45, %c0_46], %62 {strides = array<i32>} : memref<128x1xf32, #tpu.memory_space<vmem>>, vector<128x1xf32>,
    } else {
    }
    %c256_i32 = arith.constant 256 : i32
    %3 = arith.muli %arg1, %c256_i32 : i32
    %4 = tpu.assume_multiple %3, 256 : i32
    %c0 = arith.constant 0 : index
    %c0_1 = arith.constant 0 : index
    %5 = arith.index_cast %4 : i32 to index
    %6 = vector.load %arg2[%c0, %c0_1, %5] : memref<1x128x256xf32, #tpu.memory_space<vmem>>, vector<1x128x256xf32>
    %7 = vector.shape_cast %6 : vector<1x128x256xf32> to vector<128x256xf32>
    %c0_2 = arith.constant 0 : index
    %c0_3 = arith.constant 0 : index
    %8 = vector.load %arg10[%c0_2, %c0_3] : memref<128x1xf32, #tpu.memory_space<vmem>>, vector<128x1xf32>
    %9 = vector.broadcast %8 : vector<128x1xf32> to vector<128x256xf32>
    %10 = arith.mulf %7, %9 : vector<128x256xf32>
    %c0_4 = arith.constant 0 : index
    %c0_5 = arith.constant 0 : index
    %11 = vector.load %arg11[%c0_4, %c0_5] : memref<128x1xf32, #tpu.memory_space<vmem>>, vector<128x1xf32>
    %12 = vector.broadcast %11 : vector<128x1xf32> to vector<128x256xf32>
    %13 = arith.addf %10, %12 : vector<128x256xf32>
    %14 = arith.truncf %13 : vector<128x256xf32> to vector<128x256xbf16>
    %15 = tpu.transpose %14, [1, 0] : vector<128x256xbf16> -> vector<256x128xbf16>
    %c0_6 = arith.constant 0 : index
    %c0_7 = arith.constant 0 : index
    %16 = vector.load %arg7[%c0_6, %c0_7] : memref<128x384xbf16, #tpu.memory_space<vmem>>, vector<128x384xbf16>
    %cst = arith.constant dense<0.000000e+00> : vector<256x384xf32>
    %17 = tpu.matmul %15, %16, %cst {dimension_numbers = #tpu.dot_dimension_numbers<[1], [0], [0], [1], [0, 0, 1, 1], [], []>} : vector<256x128xbf16>, vector<128x384xbf16>, vector<256x384xf32> -> vector<256x384xf32>
    %c0_8 = arith.constant 0 : index
    %c0_9 = arith.constant 0 : index
    %18 = vector.load %arg8[%c0_8, %c0_9] : memref<1x384xf32, #tpu.memory_space<vmem>>, vector<1x384xf32>
    %19 = vector.broadcast %18 : vector<1x384xf32> to vector<256x384xf32>
    %20 = arith.addf %17, %19 : vector<256x384xf32>
    %21 = arith.truncf %20 : vector<256x384xf32> to vector<256x384xbf16>
    %c0_10 = arith.constant 0 : index
    %c0_11 = arith.constant 0 : index
    %c0_12 = arith.constant 0 : index
    %22 = vector.load %arg9[%c0_10, %c0_11, %c0_12] : memref<1x256x384xbf16, #tpu.memory_space<vmem>>, vector<1x256x384xbf16>
    %23 = vector.shape_cast %22 : vector<1x256x384xbf16> to vector<256x384xbf16>
    %24 = vector.shape_cast %21 : vector<256x384xbf16> to vector<1x256x384xbf16>
    tpu.vector_store %arg9[%c0_10, %c0_11, %c0_12], %24 {strides = array<i32>} : memref<1x256x384xbf16, #tpu.memory_space<vmem>>, vector<1x256x384xbf16>,
    return
  }
  func.func @transform_0(%arg0: i32, %arg1: i32) -> (i32, i32, i32) {
    %c0_i32 = arith.constant 0 : i32
    %c0_i32_0 = arith.constant 0 : i32
    %c0_i32_1 = arith.constant 0 : i32
    return %arg0, %c0_i32, %c0_i32_0 : i32, i32, i32
  }
  func.func @transform_1(%arg0: i32, %arg1: i32) -> (i32, i32) {
    %c0_i32 = arith.constant 0 : i32
    %c0_i32_0 = arith.constant 0 : i32
    %c0_i32_1 = arith.constant 0 : i32
    return %c0_i32, %c0_i32_0 : i32, i32
  }
  func.func @transform_2(%arg0: i32, %arg1: i32) -> (i32, i32) {
    %c0_i32 = arith.constant 0 : i32
    %c0_i32_0 = arith.constant 0 : i32
    %c0_i32_1 = arith.constant 0 : i32
    return %c0_i32, %c0_i32_0 : i32, i32
  }
  func.func @transform_3(%arg0: i32, %arg1: i32) -> (i32, i32) {
    %c0_i32 = arith.constant 0 : i32
    %c0_i32_0 = arith.constant 0 : i32
    %c0_i32_1 = arith.constant 0 : i32
    return %c0_i32, %c0_i32_0 : i32, i32
  }
  func.func @transform_4(%arg0: i32, %arg1: i32) -> (i32, i32) {
    %c0_i32 = arith.constant 0 : i32
    %c0_i32_0 = arith.constant 0 : i32
    %c0_i32_1 = arith.constant 0 : i32
    return %c0_i32, %c0_i32_0 : i32, i32
  }
  func.func @transform_5(%arg0: i32, %arg1: i32) -> (i32, i32) {
    %c0_i32 = arith.constant 0 : i32
    %c0_i32_0 = arith.constant 0 : i32
    %c0_i32_1 = arith.constant 0 : i32
    return %c0_i32, %c0_i32_0 : i32, i32
  }
  func.func @transform_6(%arg0: i32, %arg1: i32) -> (i32, i32) {
    %c0_i32 = arith.constant 0 : i32
    %c0_i32_0 = arith.constant 0 : i32
    %c0_i32_1 = arith.constant 0 : i32
    return %c0_i32, %c0_i32_0 : i32, i32
  }
  func.func @transform_7(%arg0: i32, %arg1: i32) -> (i32, i32, i32) {
    %c0_i32 = arith.constant 0 : i32
    %c0_i32_0 = arith.constant 0 : i32
    return %arg0, %arg1, %c0_i32 : i32, i32, i32
  }
}

</mosaic_0001>

<bundles_post_ra>
// kernel: nonlocal_block.3
= control target key start
LH: loop header
LB: loop body
LE: loop exit
PB: predicated region body
PF: predicated region fallthrough
CT: control target
= control target key end

     0   :  { %s2970_s15 = smov 0   ;;  %s2972_s16 = smov 0   ;;  %s3704_s0 = inlined_call_operand.vmem [shape: bf16[2,256,384], index: 0, kind: input, shape index: {}, may-alias: {0,1,2}]   ;;  %s3705_s1 = inlined_call_operand.vmem [shape: bf16[2,256,384], index: 1, kind: input, shape index: {}, may-alias: {0,1,2}]   ;;  %s3706_s2 = inlined_call_operand.vmem [shape: bf16[2,256,384], index: 2, kind: input, shape index: {}, may-alias: {0,1,2}]   ;;  %s3707_s3 = inlined_call_operand.vmem [shape: f32[2,128,256], index: 3, kind: input, shape index: {}, may-alias: {3,4}]   ;;  %s3708_s4 = inlined_call_operand.vmem [shape: f32[2,128,256], index: 4, kind: output, shape index: {}, may-alias: {3,4}]  }
   0x1   :  { %s2974_s17 = smov 0   ;;  %s2976_s18 = smov 0  }
   0x2   :  { %s2978_s19 = smov 0  }
   0x3 LB: > { %s26_s20 = sadd.s32 1, %s2939_s18  ;;  %p42_p1 = scmp.ne.s32.totalorder %s2931_s16, %s2927_s15  ;;  %s2943_s19 = sphi %s2978_s19, %s14_s19   ;;  %s2939_s18 = sphi %s2976_s18, %s3752_s18   ;;  %s2935_s17 = sphi %s2974_s17, %s3751_s17   ;;  %s2931_s16 = sphi %s2972_s16, %s3750_s16   ;;  %s2927_s15 = sphi %s2970_s15, %s3749_s15  }
   0x4   : > { %p28_p0 = scmp.ge.s32.totalorder %s26_s20, 2  ;;  %p43_p2 = scmp.eq.s32.totalorder %s2943_s19, 0 }
   0x5   : > { %s35_s23 = sadd.s32 1, %s2931_s16  ;;  %p2333_p5 = scmp.ge.s32.totalorder %s2943_s19, 2 }
   0x6   : > { %s3754_s20 = smov (%p28_p0, %s26_s20), 0  ;;  %p3001_p3 = por %p43_p2, %p42_p1 }
   0x7   : > { %s30_s22 = ssub.s32 %s2939_s18, %s3754_s20  ;;  %176 = sbr.rel (%p2333_p5) target bundleno = 92 (0x5c), region = 16 }
   0x8   : > { %p33_p4 = scmp.eq.s32.totalorder %s30_s22, 0 }
   0xa   : > { %s3009_s24 = scalar_select %p33_p4, %s2931_s16, %s35_s23  }
   0xe   : > { %179 = sbr.rel (!%p3001_p3) target bundleno = 40 (0x28), region = 20  ;;  %s181_s25 = sand.u32 (%p3001_p3), 1, %s2931_s16  }
   0xf   : > { %s2624_s26 = smul.u32 (%p3001_p3), 384, %s2939_s18  ;;  %s2334_s27 = sshll.u32 (%p3001_p3), %s181_s25, 7 }
  0x10   : > { %s3024_s5 = scalar_lea.vmem (%p3001_p3), [#allocation2], %s2334_s27 }
  0x11   : > { %s3019_s30 = scalar_lea.vmem (%p3001_p3), %s3704_s0, %s2624_s26 }
  0x12   : > { %v205_v0 = vld [vmem:[%s3019_s30] sm:$0xf] (%p3001_p3)  ;;  %v207_v1 = vld [vmem:[%s3019_s30 + $0xc] sm:$0xf] (%p3001_p3)  ;;  %v209_v2 = vld [vmem:[%s3019_s30 + $0x18] sm:$0xf] (%p3001_p3) }
  0x13   : > { %206 = vst [vmem:[%s3024_s5] sm:$0xf] (%p3001_p3), %v205_v0  ;;  %208 = vst [vmem:[%s3024_s5 + $0x4] sm:$0xf] (%p3001_p3), %v207_v1  ;;  %v211_v3 = vld [vmem:[%s3019_s30 + $0x24] sm:$0xf] (%p3001_p3) }
  0x14   : > { %210 = vst [vmem:[%s3024_s5 + $0x8] sm:$0xf] (%p3001_p3), %v209_v2  ;;  %v213_v4 = vld [vmem:[%s3019_s30 + $0x30] sm:$0xf] (%p3001_p3)  ;;  %v215_v5 = vld [vmem:[%s3019_s30 + $0x3c] sm:$0xf] (%p3001_p3) }
  0x15   : > { %212 = vst [vmem:[%s3024_s5 + $0xc] sm:$0xf] %v211_v3  ;;  %214 = vst [vmem:[%s3024_s5 + $0x10] sm:$0xf] %v213_v4  ;;  %v217_v6 = vld [vmem:[%s3019_s30 + $0x48] sm:$0xf] }
  0x16   : > { %216 = vst [vmem:[%s3024_s5 + $0x14] sm:$0xf] %v215_v5  ;;  %v219_v7 = vld [vmem:[%s3019_s30 + $0x54] sm:$0xf]  ;;  %v221_v8 = vld [vmem:[%s3019_s30 + $0x60] sm:$0xf] }
  0x17   : > { %218 = vst [vmem:[%s3024_s5 + $0x18] sm:$0xf] %v217_v6  ;;  %220 = vst [vmem:[%s3024_s5 + $0x1c] sm:$0xf] %v219_v7  ;;  %v223_v9 = vld [vmem:[%s3019_s30 + $0x6c] sm:$0xf] }
  0x18   : > { %222 = vst [vmem:[%s3024_s5 + $0x20] sm:$0xf] %v221_v8  ;;  %v225_v10 = vld [vmem:[%s3019_s30 + $0x78] sm:$0xf]  ;;  %v227_v11 = vld [vmem:[%s3019_s30 + $0x84] sm:$0xf] }
  0x19   : > { %224 = vst [vmem:[%s3024_s5 + $0x24] sm:$0xf] %v223_v9  ;;  %226 = vst [vmem:[%s3024_s5 + $0x28] sm:$0xf] %v225_v10  ;;  %v229_v12 = vld [vmem:[%s3019_s30 + $0x90] sm:$0xf] }
  0x1a   : > { %228 = vst [vmem:[%s3024_s5 + $0x2c] sm:$0xf] %v227_v11  ;;  %v231_v13 = vld [vmem:[%s3019_s30 + $0x9c] sm:$0xf]  ;;  %v233_v14 = vld [vmem:[%s3019_s30 + $0xa8] sm:$0xf] }
  0x1b   : > { %230 = vst [vmem:[%s3024_s5 + $0x30] sm:$0xf] %v229_v12  ;;  %232 = vst [vmem:[%s3024_s5 + $0x34] sm:$0xf] %v231_v13  ;;  %v235_v15 = vld [vmem:[%s3019_s30 + $0xb4] sm:$0xf] }
  0x1c   : > { %234 = vst [vmem:[%s3024_s5 + $0x38] sm:$0xf] %v233_v14  ;;  %v237_v16 = vld [vmem:[%s3019_s30 + $0xc0] sm:$0xf]  ;;  %v239_v17 = vld [vmem:[%s3019_s30 + $0xcc] sm:$0xf] }
  0x1d   : > { %236 = vst [vmem:[%s3024_s5 + $0x3c] sm:$0xf] %v235_v15  ;;  %238 = vst [vmem:[%s3024_s5 + $0x40] sm:$0xf] %v237_v16  ;;  %v241_v18 = vld [vmem:[%s3019_s30 + $0xd8] sm:$0xf] }
  0x1e   : > { %240 = vst [vmem:[%s3024_s5 + $0x44] sm:$0xf] %v239_v17  ;;  %v243_v19 = vld [vmem:[%s3019_s30 + $0xe4] sm:$0xf]  ;;  %v245_v20 = vld [vmem:[%s3019_s30 + $0xf0] sm:$0xf] }
  0x1f   : > { %242 = vst [vmem:[%s3024_s5 + $0x48] sm:$0xf] %v241_v18  ;;  %244 = vst [vmem:[%s3024_s5 + $0x4c] sm:$0xf] %v243_v19  ;;  %v247_v21 = vld [vmem:[%s3019_s30 + $0xfc] sm:$0xf] }
  0x20   : > { %246 = vst [vmem:[%s3024_s5 + $0x50] sm:$0xf] %v245_v20  ;;  %v249_v22 = vld [vmem:[%s3019_s30 + $0x108] sm:$0xf]  ;;  %v251_v23 = vld [vmem:[%s3019_s30 + $0x114] sm:$0xf] }
  0x21   : > { %248 = vst [vmem:[%s3024_s5 + $0x54] sm:$0xf] %v247_v21  ;;  %250 = vst [vmem:[%s3024_s5 + $0x58] sm:$0xf] %v249_v22  ;;  %v253_v24 = vld [vmem:[%s3019_s30 + $0x120] sm:$0xf] }
  0x22   : > { %252 = vst [vmem:[%s3024_s5 + $0x5c] sm:$0xf] %v251_v23  ;;  %v255_v25 = vld [vmem:[%s3019_s30 + $0x12c] sm:$0xf]  ;;  %v257_v26 = vld [vmem:[%s3019_s30 + $0x138] sm:$0xf] }
  0x23   : > { %254 = vst [vmem:[%s3024_s5 + $0x60] sm:$0xf] %v253_v24  ;;  %256 = vst [vmem:[%s3024_s5 + $0x64] sm:$0xf] %v255_v25  ;;  %v259_v27 = vld [vmem:[%s3019_s30 + $0x144] sm:$0xf] }
  0x24   : > { %258 = vst [vmem:[%s3024_s5 + $0x68] sm:$0xf] %v257_v26  ;;  %v261_v28 = vld [vmem:[%s3019_s30 + $0x150] sm:$0xf]  ;;  %v263_v29 = vld [vmem:[%s3019_s30 + $0x15c] sm:$0xf] }
  0x25   : > { %260 = vst [vmem:[%s3024_s5 + $0x6c] sm:$0xf] %v259_v27  ;;  %262 = vst [vmem:[%s3024_s5 + $0x70] sm:$0xf] %v261_v28  ;;  %v265_v30 = vld [vmem:[%s3019_s30 + $0x168] sm:$0xf] }
  0x26   : > { %264 = vst [vmem:[%s3024_s5 + $0x74] sm:$0xf] %v263_v29  ;;  %v267_v31 = vld [vmem:[%s3019_s30 + $0x174] sm:$0xf]  ;;  %266 = vst [vmem:[%s3024_s5 + $0x78] sm:$0xf] %v265_v30 }
  0x27   : > { %268 = vst [vmem:[%s3024_s5 + $0x7c] sm:$0xf] %v267_v31 }
  0x28 PF: > { %355 = sbr.rel (!%p3001_p3) target bundleno = 66 (0x42), region = 61  ;;  %s357_s6 = sand.u32 (%p3001_p3), 1, %s2931_s16  }
  0x29   : > { %s2337_s7 = smul.u32 (%p3001_p3), 384, %s2939_s18  ;;  %s2336_s8 = sshll.u32 (%p3001_p3), %s357_s6, 7 }
  0x2a   : > { %s3099_s12 = scalar_lea.vmem (%p3001_p3), [#allocation3], %s2336_s8 }
  0x2b   : > { %s3094_s11 = scalar_lea.vmem (%p3001_p3), %s3705_s1, %s2337_s7 }
  0x2c   : > { %v2338_v32 = vld [vmem:[%s3094_s11 + $0x4] sm:$0xf] (%p3001_p3)  ;;  %v2339_v33 = vld [vmem:[%s3094_s11 + $0x10] sm:$0xf] (%p3001_p3)  ;;  %v2340_v34 = vld [vmem:[%s3094_s11 + $0x1c] sm:$0xf] (%p3001_p3) }
  0x2d   : > { %380 = vst [vmem:[%s3099_s12] sm:$0xf] (%p3001_p3), %v2338_v32  ;;  %382 = vst [vmem:[%s3099_s12 + $0x4] sm:$0xf] (%p3001_p3), %v2339_v33  ;;  %v2341_v35 = vld [vmem:[%s3094_s11 + $0x28] sm:$0xf] (%p3001_p3) }
  0x2e   : > { %384 = vst [vmem:[%s3099_s12 + $0x8] sm:$0xf] (%p3001_p3), %v2340_v34  ;;  %v2342_v36 = vld [vmem:[%s3094_s11 + $0x34] sm:$0xf] (%p3001_p3)  ;;  %v2343_v37 = vld [vmem:[%s3094_s11 + $0x40] sm:$0xf] (%p3001_p3) }
  0x2f   : > { %386 = vst [vmem:[%s3099_s12 + $0xc] sm:$0xf] %v2341_v35  ;;  %388 = vst [vmem:[%s3099_s12 + $0x10] sm:$0xf] %v2342_v36  ;;  %v2344_v38 = vld [vmem:[%s3094_s11 + $0x4c] sm:$0xf] }
  0x30   : > { %390 = vst [vmem:[%s3099_s12 + $0x14] sm:$0xf] %v2343_v37  ;;  %v2345_v39 = vld [vmem:[%s3094_s11 + $0x58] sm:$0xf]  ;;  %v2346_v40 = vld [vmem:[%s3094_s11 + $0x64] sm:$0xf] }
  0x31   : > { %392 = vst [vmem:[%s3099_s12 + $0x18] sm:$0xf] %v2344_v38  ;;  %394 = vst [vmem:[%s3099_s12 + $0x1c] sm:$0xf] %v2345_v39  ;;  %v2347_v41 = vld [vmem:[%s3094_s11 + $0x70] sm:$0xf] }
  0x32   : > { %396 = vst [vmem:[%s3099_s12 + $0x20] sm:$0xf] %v2346_v40  ;;  %v2348_v42 = vld [vmem:[%s3094_s11 + $0x7c] sm:$0xf]  ;;  %v2349_v43 = vld [vmem:[%s3094_s11 + $0x88] sm:$0xf] }
  0x33   : > { %398 = vst [vmem:[%s3099_s12 + $0x24] sm:$0xf] %v2347_v41  ;;  %400 = vst [vmem:[%s3099_s12 + $0x28] sm:$0xf] %v2348_v42  ;;  %v2350_v44 = vld [vmem:[%s3094_s11 + $0x94] sm:$0xf] }
  0x34   : > { %402 = vst [vmem:[%s3099_s12 + $0x2c] sm:$0xf] %v2349_v43  ;;  %v2351_v45 = vld [vmem:[%s3094_s11 + $0xa0] sm:$0xf]  ;;  %v2352_v46 = vld [vmem:[%s3094_s11 + $0xac] sm:$0xf] }
  0x35   : > { %404 = vst [vmem:[%s3099_s12 + $0x30] sm:$0xf] %v2350_v44  ;;  %406 = vst [vmem:[%s3099_s12 + $0x34] sm:$0xf] %v2351_v45  ;;  %v2353_v47 = vld [vmem:[%s3094_s11 + $0xb8] sm:$0xf] }
  0x36   : > { %408 = vst [vmem:[%s3099_s12 + $0x38] sm:$0xf] %v2352_v46  ;;  %v2354_v48 = vld [vmem:[%s3094_s11 + $0xc4] sm:$0xf]  ;;  %v2355_v49 = vld [vmem:[%s3094_s11 + $0xd0] sm:$0xf] }
  0x37   : > { %410 = vst [vmem:[%s3099_s12 + $0x3c] sm:$0xf] %v2353_v47  ;;  %412 = vst [vmem:[%s3099_s12 + $0x40] sm:$0xf] %v2354_v48  ;;  %v2356_v50 = vld [vmem:[%s3094_s11 + $0xdc] sm:$0xf] }
  0x38   : > { %414 = vst [vmem:[%s3099_s12 + $0x44] sm:$0xf] %v2355_v49  ;;  %v2357_v51 = vld [vmem:[%s3094_s11 + $0xe8] sm:$0xf]  ;;  %v2358_v52 = vld [vmem:[%s3094_s11 + $0xf4] sm:$0xf] }
  0x39   : > { %416 = vst [vmem:[%s3099_s12 + $0x48] sm:$0xf] %v2356_v50  ;;  %418 = vst [vmem:[%s3099_s12 + $0x4c] sm:$0xf] %v2357_v51  ;;  %v2359_v53 = vld [vmem:[%s3094_s11 + $0x100] sm:$0xf] }
  0x3a   : > { %420 = vst [vmem:[%s3099_s12 + $0x50] sm:$0xf] %v2358_v52  ;;  %v2360_v54 = vld [vmem:[%s3094_s11 + $0x10c] sm:$0xf]  ;;  %v2361_v55 = vld [vmem:[%s3094_s11 + $0x118] sm:$0xf] }
  0x3b   : > { %422 = vst [vmem:[%s3099_s12 + $0x54] sm:$0xf] %v2359_v53  ;;  %424 = vst [vmem:[%s3099_s12 + $0x58] sm:$0xf] %v2360_v54  ;;  %v2362_v56 = vld [vmem:[%s3094_s11 + $0x124] sm:$0xf] }
  0x3c   : > { %426 = vst [vmem:[%s3099_s12 + $0x5c] sm:$0xf] %v2361_v55  ;;  %v2363_v57 = vld [vmem:[%s3094_s11 + $0x130] sm:$0xf]  ;;  %v2364_v58 = vld [vmem:[%s3094_s11 + $0x13c] sm:$0xf] }
  0x3d   : > { %428 = vst [vmem:[%s3099_s12 + $0x60] sm:$0xf] %v2362_v56  ;;  %430 = vst [vmem:[%s3099_s12 + $0x64] sm:$0xf] %v2363_v57  ;;  %v2365_v59 = vld [vmem:[%s3094_s11 + $0x148] sm:$0xf] }
  0x3e   : > { %432 = vst [vmem:[%s3099_s12 + $0x68] sm:$0xf] %v2364_v58  ;;  %v2366_v60 = vld [vmem:[%s3094_s11 + $0x154] sm:$0xf]  ;;  %v2367_v61 = vld [vmem:[%s3094_s11 + $0x160] sm:$0xf] }
  0x3f   : > { %434 = vst [vmem:[%s3099_s12 + $0x6c] sm:$0xf] %v2365_v59  ;;  %436 = vst [vmem:[%s3099_s12 + $0x70] sm:$0xf] %v2366_v60  ;;  %v2368_v62 = vld [vmem:[%s3094_s11 + $0x16c] sm:$0xf] }
  0x40   : > { %438 = vst [vmem:[%s3099_s12 + $0x74] sm:$0xf] %v2367_v61  ;;  %v2369_v63 = vld [vmem:[%s3094_s11 + $0x178] sm:$0xf]  ;;  %440 = vst [vmem:[%s3099_s12 + $0x78] sm:$0xf] %v2368_v62 }
  0x41   : > { %442 = vst [vmem:[%s3099_s12 + $0x7c] sm:$0xf] %v2369_v63 }
  0x42 PF: > { %529 = sbr.rel (!%p3001_p3) target bundleno = 92 (0x5c), region = 102  ;;  %s531_s13 = sand.u32 (%p3001_p3), 1, %s2931_s16  }
  0x43   : > { %s2371_s14 = smul.u32 (%p3001_p3), 384, %s2939_s18  ;;  %s2370_s22 = sshll.u32 (%p3001_p3), %s531_s13, 7 }
  0x44   : > { %s3174_s21 = scalar_lea.vmem (%p3001_p3), [#allocation4], %s2370_s22 }
  0x45   : > { %s3169_s26 = scalar_lea.vmem (%p3001_p3), %s3706_s2, %s2371_s14 }
  0x46   : > { %v2372_v0 = vld [vmem:[%s3169_s26 + $0x8] sm:$0xf] (%p3001_p3)  ;;  %v2373_v1 = vld [vmem:[%s3169_s26 + $0x14] sm:$0xf] (%p3001_p3)  ;;  %v2374_v2 = vld [vmem:[%s3169_s26 + $0x20] sm:$0xf] (%p3001_p3) }
  0x47   : > { %554 = vst [vmem:[%s3174_s21] sm:$0xf] (%p3001_p3), %v2372_v0  ;;  %556 = vst [vmem:[%s3174_s21 + $0x4] sm:$0xf] (%p3001_p3), %v2373_v1  ;;  %v2375_v3 = vld [vmem:[%s3169_s26 + $0x2c] sm:$0xf] (%p3001_p3) }
  0x48   : > { %558 = vst [vmem:[%s3174_s21 + $0x8] sm:$0xf] (%p3001_p3), %v2374_v2  ;;  %v2376_v4 = vld [vmem:[%s3169_s26 + $0x38] sm:$0xf] (%p3001_p3)  ;;  %v2377_v5 = vld [vmem:[%s3169_s26 + $0x44] sm:$0xf] (%p3001_p3) }
  0x49   : > { %560 = vst [vmem:[%s3174_s21 + $0xc] sm:$0xf] %v2375_v3  ;;  %562 = vst [vmem:[%s3174_s21 + $0x10] sm:$0xf] %v2376_v4  ;;  %v2378_v6 = vld [vmem:[%s3169_s26 + $0x50] sm:$0xf] }
  0x4a   : > { %564 = vst [vmem:[%s3174_s21 + $0x14] sm:$0xf] %v2377_v5  ;;  %v2379_v7 = vld [vmem:[%s3169_s26 + $0x5c] sm:$0xf]  ;;  %v2380_v8 = vld [vmem:[%s3169_s26 + $0x68] sm:$0xf] }
  0x4b   : > { %566 = vst [vmem:[%s3174_s21 + $0x18] sm:$0xf] %v2378_v6  ;;  %568 = vst [vmem:[%s3174_s21 + $0x1c] sm:$0xf] %v2379_v7  ;;  %v2381_v9 = vld [vmem:[%s3169_s26 + $0x74] sm:$0xf] }
  0x4c   : > { %570 = vst [vmem:[%s3174_s21 + $0x20] sm:$0xf] %v2380_v8  ;;  %v2382_v10 = vld [vmem:[%s3169_s26 + $0x80] sm:$0xf]  ;;  %v2383_v11 = vld [vmem:[%s3169_s26 + $0x8c] sm:$0xf] }
  0x4d   : > { %572 = vst [vmem:[%s3174_s21 + $0x24] sm:$0xf] %v2381_v9  ;;  %574 = vst [vmem:[%s3174_s21 + $0x28] sm:$0xf] %v2382_v10  ;;  %v2384_v12 = vld [vmem:[%s3169_s26 + $0x98] sm:$0xf] }
  0x4e   : > { %576 = vst [vmem:[%s3174_s21 + $0x2c] sm:$0xf] %v2383_v11  ;;  %v2385_v13 = vld [vmem:[%s3169_s26 + $0xa4] sm:$0xf]  ;;  %v2386_v14 = vld [vmem:[%s3169_s26 + $0xb0] sm:$0xf] }
  0x4f   : > { %578 = vst [vmem:[%s3174_s21 + $0x30] sm:$0xf] %v2384_v12  ;;  %580 = vst [vmem:[%s3174_s21 + $0x34] sm:$0xf] %v2385_v13  ;;  %v2387_v15 = vld [vmem:[%s3169_s26 + $0xbc] sm:$0xf] }
  0x50   : > { %582 = vst [vmem:[%s3174_s21 + $0x38] sm:$0xf] %v2386_v14  ;;  %v2388_v16 = vld [vmem:[%s3169_s26 + $0xc8] sm:$0xf]  ;;  %v2389_v17 = vld [vmem:[%s3169_s26 + $0xd4] sm:$0xf] }
  0x51   : > { %584 = vst [vmem:[%s3174_s21 + $0x3c] sm:$0xf] %v2387_v15  ;;  %586 = vst [vmem:[%s3174_s21 + $0x40] sm:$0xf] %v2388_v16  ;;  %v2390_v18 = vld [vmem:[%s3169_s26 + $0xe0] sm:$0xf] }
  0x52   : > { %588 = vst [vmem:[%s3174_s21 + $0x44] sm:$0xf] %v2389_v17  ;;  %v2391_v19 = vld [vmem:[%s3169_s26 + $0xec] sm:$0xf]  ;;  %v2392_v20 = vld [vmem:[%s3169_s26 + $0xf8] sm:$0xf] }
  0x53   : > { %590 = vst [vmem:[%s3174_s21 + $0x48] sm:$0xf] %v2390_v18  ;;  %592 = vst [vmem:[%s3174_s21 + $0x4c] sm:$0xf] %v2391_v19  ;;  %v2393_v21 = vld [vmem:[%s3169_s26 + $0x104] sm:$0xf] }
  0x54   : > { %594 = vst [vmem:[%s3174_s21 + $0x50] sm:$0xf] %v2392_v20  ;;  %v2394_v22 = vld [vmem:[%s3169_s26 + $0x110] sm:$0xf]  ;;  %v2395_v23 = vld [vmem:[%s3169_s26 + $0x11c] sm:$0xf] }
  0x55   : > { %596 = vst [vmem:[%s3174_s21 + $0x54] sm:$0xf] %v2393_v21  ;;  %598 = vst [vmem:[%s3174_s21 + $0x58] sm:$0xf] %v2394_v22  ;;  %v2396_v24 = vld [vmem:[%s3169_s26 + $0x128] sm:$0xf] }
  0x56   : > { %600 = vst [vmem:[%s3174_s21 + $0x5c] sm:$0xf] %v2395_v23  ;;  %v2397_v25 = vld [vmem:[%s3169_s26 + $0x134] sm:$0xf]  ;;  %v2398_v26 = vld [vmem:[%s3169_s26 + $0x140] sm:$0xf] }
  0x57   : > { %602 = vst [vmem:[%s3174_s21 + $0x60] sm:$0xf] %v2396_v24  ;;  %604 = vst [vmem:[%s3174_s21 + $0x64] sm:$0xf] %v2397_v25  ;;  %v2399_v27 = vld [vmem:[%s3169_s26 + $0x14c] sm:$0xf] }
  0x58   : > { %606 = vst [vmem:[%s3174_s21 + $0x68] sm:$0xf] %v2398_v26  ;;  %v2400_v28 = vld [vmem:[%s3169_s26 + $0x158] sm:$0xf]  ;;  %v2401_v29 = vld [vmem:[%s3169_s26 + $0x164] sm:$0xf] }
  0x59   : > { %608 = vst [vmem:[%s3174_s21 + $0x6c] sm:$0xf] %v2399_v27  ;;  %610 = vst [vmem:[%s3174_s21 + $0x70] sm:$0xf] %v2400_v28  ;;  %v2402_v30 = vld [vmem:[%s3169_s26 + $0x170] sm:$0xf] }
  0x5a   : > { %612 = vst [vmem:[%s3174_s21 + $0x74] sm:$0xf] %v2401_v29  ;;  %v2403_v31 = vld [vmem:[%s3169_s26 + $0x17c] sm:$0xf]  ;;  %614 = vst [vmem:[%s3174_s21 + $0x78] sm:$0xf] %v2402_v30 }
  0x5b   : > { %616 = vst [vmem:[%s3174_s21 + $0x7c] sm:$0xf] %v2403_v31 }
  0x5c PF: > { %p2404_p6 = scmp.ge.s32.totalorder %s2943_s19, 1  ;;  %p715_p7 = scmp.lt.s32.totalorder %s2943_s19, 3 }
  0x5e   : > { %p716_p8 = pnand %p2404_p6, %p715_p7 }
  0x60   : > { %719 = sbr.rel (%p716_p8) target bundleno = 1024 (0x400), region = 147 }
  0x67   : > { %s722_s27 = sand.u32 1, %s2927_s15   ;;  %p784_p9 = scmp.lt.s32.totalorder %s2935_s17, 1 }
  0x68   : > { %s3240_s28 = sshll.u32 %s722_s27, 7 }
  0x69   : > { %s3243_s29 = scalar_lea.vmem [#allocation3], %s3240_s28  ;;  %s3253_s15 = scalar_lea.vmem [#allocation2], %s3240_s28 }
  0x6a   : > { %v2665_v32 = vld [vmem:[%s3243_s29 + $0x40] sm:$0xff]   ;;  %v2667_v34 = vld [vmem:[%s3243_s29 + $0x48] sm:$0xff]   ;;  %v2669_v36 = vld [vmem:[%s3243_s29 + $0x50] sm:$0xff]   ;;  %s3281_s30 = scalar_lea.vmem [#allocation4], %s3240_s28  ;;  %s3756_s17 = smov (!%p784_p9, %s2935_s17), 1 }
  0x6b   : > { %v2666_v33 = vld [vmem:[%s3243_s29] sm:$0xff]   ;;  %2464 = vmatprep.subr.bf16.mxu0 %v2665_v32  ;;  %v2668_v35 = vld [vmem:[%s3243_s29 + $0x8] sm:$0xff]   ;;  %v2670_v37 = vld [vmem:[%s3243_s29 + $0x10] sm:$0xff]   ;;  %s2462_s5 = sshll.u32 %s3756_s17, 8 }
  0x6c   : > { %2465 = vmatpush3.bf16.xpose.msra.mxu0 %v2666_v33  ;;  %v2671_v38 = vld [vmem:[%s3243_s29 + $0x58] sm:$0xff]   ;;  %v2681_v39 = vld [vmem:[%s3253_s15] sm:$0xff]   ;;  %v2675_v43 = vld [vmem:[%s3243_s29 + $0x68] sm:$0xff]   ;;  %s3571_s8 = scalar_lea.vmem %s3707_s3, %s2462_s5  ;;  %s3632_s11 = scalar_lea.vmem %s3708_s4, %s2462_s5 }
  0x6d   : > { %2466 = vmatprep.subr.bf16.mxu0 %v2667_v34  ;;  %2480 = vmatprep.mubr.bf16.mxu0 %v2681_v39  ;;  %v2672_v40 = vld [vmem:[%s3243_s29 + $0x18] sm:$0xff]   ;;  %v2673_v41 = vld [vmem:[%s3243_s29 + $0x60] sm:$0xff]   ;;  %v2676_v44 = vld [vmem:[%s3243_s29 + $0x28] sm:$0xff]  }
  0x6e   : > { %v2674_v42 = vld [vmem:[%s3243_s29 + $0x20] sm:$0xff]   ;;  %v2677_v45 = vld [vmem:[%s3243_s29 + $0x70] sm:$0xff]   ;;  %v2679_v47 = vld [vmem:[%s3243_s29 + $0x78] sm:$0xff]  }
  0x6f   : > { %v2678_v46 = vld [vmem:[%s3243_s29 + $0x30] sm:$0xff]   ;;  %v2680_v48 = vld [vmem:[%s3243_s29 + $0x38] sm:$0xff]   ;;  %v2682_v49 = vld [vmem:[%s3253_s15 + $0x8] sm:$0xff]  }
  0x70   : > { %v2683_v50 = vld [vmem:[%s3253_s15 + $0x10] sm:$0xff]   ;;  %v2684_v51 = vld [vmem:[%s3253_s15 + $0x18] sm:$0xff]   ;;  %v2685_v52 = vld [vmem:[%s3253_s15 + $0x20] sm:$0xff]  }
  0x71   : > { %v2686_v53 = vld [vmem:[%s3253_s15 + $0x28] sm:$0xff]   ;;  %v2687_v54 = vld [vmem:[%s3253_s15 + $0x30] sm:$0xff]   ;;  %v2688_v55 = vld [vmem:[%s3253_s15 + $0x38] sm:$0xff]  }
  0x72   : > { %v2689_v56 = vld [vmem:[%s3253_s15 + $0x40] sm:$0xff]   ;;  %v2690_v57 = vld [vmem:[%s3253_s15 + $0x48] sm:$0xff]   ;;  %v2691_v58 = vld [vmem:[%s3253_s15 + $0x50] sm:$0xff]  }
  0x73   : > { %v2692_v59 = vld [vmem:[%s3253_s15 + $0x58] sm:$0xff]   ;;  %v2693_v60 = vld [vmem:[%s3253_s15 + $0x60] sm:$0xff]   ;;  %v2694_v61 = vld [vmem:[%s3253_s15 + $0x68] sm:$0xff]  }
  0x74   : > { %2467 = vmatpush3.bf16.xpose.msra.mxu0 %v2668_v35  ;;  %v2695_v62 = vld [vmem:[%s3253_s15 + $0x70] sm:$0xff]   ;;  %v2696_v63 = vld [vmem:[%s3253_s15 + $0x78] sm:$0xff]   ;;  %v2697_v0 = vld [vmem:[%s3281_s30 + $0x40] sm:$0xff]  }
  0x75   : > { %2468 = vmatprep.subr.bf16.mxu0 %v2669_v36  ;;  %v2698_v2 = vld [vmem:[%s3281_s30] sm:$0xff]   ;;  %2512 = vmatprep.subr.bf16.mxu1 %v2697_v0  ;;  %v2699_v4 = vld [vmem:[%s3281_s30 + $0x48] sm:$0xff]   ;;  %v2701_v9 = vld [vmem:[%s3281_s30 + $0x50] sm:$0xff]  }
  0x76   : > { %2513 = vmatpush3.bf16.msra.mxu1 %v2698_v2  ;;  %v2700_v7 = vld [vmem:[%s3281_s30 + $0x8] sm:$0xff]   ;;  %v2702_v11 = vld [vmem:[%s3281_s30 + $0x10] sm:$0xff]   ;;  %v2703_v23 = vld [vmem:[%s3281_s30 + $0x58] sm:$0xff]  }
  0x77   : > { %2514 = vmatprep.subr.bf16.mxu1 %v2699_v4  ;;  %v2704_v25 = vld [vmem:[%s3281_s30 + $0x18] sm:$0xff]   ;;  %v2705_v26 = vld [vmem:[%s3281_s30 + $0x60] sm:$0xff]   ;;  %v2707_v33 = vld [vmem:[%s3281_s30 + $0x68] sm:$0xff]  }
  0x78   : > { %v2706_v28 = vld [vmem:[%s3281_s30 + $0x20] sm:$0xff]   ;;  %v2708_v35 = vld [vmem:[%s3281_s30 + $0x28] sm:$0xff]   ;;  %v2709_v36 = vld [vmem:[%s3281_s30 + $0x70] sm:$0xff]  }
  0x7a   : > { %2515 = vmatpush3.bf16.msra.mxu1 %v2700_v7 }
  0x7b   : > { %2516 = vmatprep.subr.bf16.mxu1 %v2701_v9 }
  0x7c   : > { %2469 = vmatpush3.bf16.xpose.msra.mxu0 %v2670_v37 }
  0x7d   : > { %2470 = vmatprep.subr.bf16.mxu0 %v2671_v38  ;;  %v2710_v38 = vld [vmem:[%s3281_s30 + $0x30] sm:$0xff]  }
  0x7e   : > { %2517 = vmatpush3.bf16.msra.mxu1 %v2702_v11 }
  0x7f   : > { %2518 = vmatprep.subr.bf16.mxu1 %v2703_v23 }
  0x82   : > { %2519 = vmatpush3.bf16.msra.mxu1 %v2704_v25 }
  0x83   : > { %2520 = vmatprep.subr.bf16.mxu1 %v2705_v26 }
  0x84   : > { %2471 = vmatpush3.bf16.xpose.msra.mxu0 %v2672_v40 }
  0x85   : > { %2472 = vmatprep.subr.bf16.mxu0 %v2673_v41 }
  0x86   : > { %2521 = vmatpush3.bf16.msra.mxu1 %v2706_v28 }
  0x87   : > { %2522 = vmatprep.subr.bf16.mxu1 %v2707_v33 }
  0x8a   : > { %2523 = vmatpush3.bf16.msra.mxu1 %v2708_v35 }
  0x8b   : > { %2524 = vmatprep.subr.bf16.mxu1 %v2709_v36 }
  0x8c   : > { %2473 = vmatpush3.bf16.xpose.msra.mxu0 %v2674_v42 }
  0x8d   : > { %2474 = vmatprep.subr.bf16.mxu0 %v2675_v43  ;;  %v2711_v43 = vld [vmem:[%s3281_s30 + $0x78] sm:$0xff]  }
  0x8e   : > { %2525 = vmatpush3.bf16.msra.mxu1 %v2710_v38 }
  0x8f   : > { %2526 = vmatprep.subr.bf16.mxu1 %v2711_v43 }
  0x94   : > { %2475 = vmatpush3.bf16.xpose.msra.mxu0 %v2676_v44 }
  0x95   : > { %2476 = vmatprep.subr.bf16.mxu0 %v2677_v45  ;;  %v2712_v45 = vld [vmem:[%s3281_s30 + $0x38] sm:$0xff]  }
  0x96   : > { %2527 = vmatpush3.bf16.msra.mxu1 %v2712_v45 }
  0x9c   : > { %2477 = vmatpush3.bf16.xpose.msra.mxu0 %v2678_v46 }
  0x9d   : > { %2478 = vmatprep.subr.bf16.mxu0 %v2679_v47 }
  0xa4   : > { %2479 = vmatpush3.bf16.xpose.msra.mxu0 %v2680_v48 }
  0xab   : > { %2481 = vmatmul.mubr.bf16.vlgmr.msra.gmra.mrb[0].mxu0 %v2681_v39 }
  0xac   : > { %2482 = vmatprep.mubr.bf16.mxu0 %v2682_v49 }
  0xb3   : > { %2483 = vmatmul.mubr.bf16.gmra.mrb[4].mxu0 %v2682_v49 }
  0xb4   : > { %2484 = vmatprep.mubr.bf16.mxu0 %v2683_v50 }
  0xbb   : > { %2485 = vmatmul.mubr.bf16.gmra.mrb[8].mxu0 %v2683_v50 }
  0xbc   : > { %2486 = vmatprep.mubr.bf16.mxu0 %v2684_v51 }
  0xc3   : > { %2487 = vmatmul.mubr.bf16.gmra.mrb[12].mxu0 %v2684_v51 }
  0xc4   : > { %2488 = vmatprep.mubr.bf16.mxu0 %v2685_v52 }
  0xcb   : > { %2489 = vmatmul.mubr.bf16.gmra.mrb[16].mxu0 %v2685_v52 }
  0xcc   : > { %2490 = vmatprep.mubr.bf16.mxu0 %v2686_v53 }
  0xd3   : > { %2491 = vmatmul.mubr.bf16.gmra.mrb[20].mxu0 %v2686_v53 }
  0xd4   : > { %2492 = vmatprep.mubr.bf16.mxu0 %v2687_v54 }
  0xdb   : > { %2493 = vmatmul.mubr.bf16.gmra.mrb[24].mxu0 %v2687_v54 }
  0xdc   : > { %2494 = vmatprep.mubr.bf16.mxu0 %v2688_v55 }
  0xe3   : > { %2495 = vmatmul.mubr.bf16.gmra.mrb[28].mxu0 %v2688_v55 }
  0xe4   : > { %2496 = vmatprep.mubr.bf16.mxu0 %v2689_v56 }
  0xeb   : > { %2497 = vmatmul.mubr.bf16.gmra.mrb[32].mxu0 %v2689_v56 }
  0xec   : > { %2498 = vmatprep.mubr.bf16.mxu0 %v2690_v57 }
  0xf3   : > { %2499 = vmatmul.mubr.bf16.gmra.mrb[36].mxu0 %v2690_v57 }
  0xf4   : > { %2500 = vmatprep.mubr.bf16.mxu0 %v2691_v58 }
  0xfb   : > { %2501 = vmatmul.mubr.bf16.gmra.mrb[40].mxu0 %v2691_v58 }
  0xfc   : > { %2502 = vmatprep.mubr.bf16.mxu0 %v2692_v59 }
 0x103   : > { %2503 = vmatmul.mubr.bf16.gmra.mrb[44].mxu0 %v2692_v59 }
 0x104   : > { %2504 = vmatprep.mubr.bf16.mxu0 %v2693_v60 }
 0x10b   : > { %2505 = vmatmul.mubr.bf16.gmra.mrb[48].mxu0 %v2693_v60 }
 0x10c   : > { %2506 = vmatprep.mubr.bf16.mxu0 %v2694_v61 }
 0x113   : > { %2507 = vmatmul.mubr.bf16.gmra.mrb[52].mxu0 %v2694_v61 }
 0x114   : > { %2508 = vmatprep.mubr.bf16.mxu0 %v2695_v62 }
 0x11b   : > { %2509 = vmatmul.mubr.bf16.gmra.mrb[56].mxu0 %v2695_v62 }
 0x11c   : > { %2510 = vmatprep.mubr.bf16.mxu0 %v2696_v63 }
 0x123   : > { %2511 = vmatmul.mubr.bf16.gmra.mrb[60].mxu0 %v2696_v63 }
 0x17e   : > { %v3284_v1 = vpop.f32.mrb[0].mxu0 }
 0x17f   : > { %v3287_v3 = vpop.f32.mrb[1].mxu0 }
 0x180   : > { %v3290_v5 = vpop.f32.mrb[2].mxu0  ;;  %v1285_v6 = vmax.f32 %v3284_v1, %v3287_v3 }
 0x181   : > { %v3295_v8 = vpop.f32.mrb[3].mxu0 }
 0x182   : > { %1286 = vmax.xlane.f32.xlu0 %v1285_v6  ;;  %v1288_v10 = vmax.f32 %v3290_v5, %v3295_v8 }
 0x186   : > { %1289 = vmax.xlane.f32.xlu0 %v1288_v10  ;;  %v3301_v12 = vpop.f32.mrb[4].mxu0 }
 0x187   : > { %v3303_v13 = vpop.f32.mrb[5].mxu0 }
 0x188   : > { %v3305_v14 = vpop.f32.mrb[6].mxu0  ;;  %v1291_v15 = vmax.f32 %v3301_v12, %v3303_v13 }
 0x189   : > { %v3309_v16 = vpop.f32.mrb[7].mxu0 }
 0x18a   : > { %1292 = vmax.xlane.f32.xlu1 %v1291_v15  ;;  %v1294_v17 = vmax.f32 %v3305_v14, %v3309_v16 }
 0x18e   : > { %1295 = vmax.xlane.f32.xlu1 %v1294_v17  ;;  %v3313_v18 = vpop.f32.mrb[8].mxu0 }
 0x18f   : > { %v3315_v19 = vpop.f32.mrb[9].mxu0 }
 0x190   : > { %v3317_v20 = vpop.f32.mrb[10].mxu0  ;;  %v1297_v21 = vmax.f32 %v3313_v18, %v3315_v19 }
 0x191   : > { %v3321_v22 = vpop.f32.mrb[11].mxu0 }
 0x192   : > { %1298 = vmax.xlane.f32.xlu0 %v1297_v21  ;;  %v1300_v24 = vmax.f32 %v3317_v20, %v3321_v22 }
 0x194   : > { %1301 = vmax.xlane.f32.xlu1 %v1300_v24 }
 0x196   : > { %v3328_v27 = vpop.f32.mrb[12].mxu0 }
 0x197   : > { %v3331_v29 = vpop.f32.mrb[13].mxu0 }
 0x198   : > { %v3333_v30 = vpop.f32.mrb[14].mxu0  ;;  %v1303_v31 = vmax.f32 %v3328_v27, %v3331_v29 }
 0x199   : > { %v3337_v32 = vpop.f32.mrb[15].mxu0 }
 0x19a   : > { %1304 = vmax.xlane.f32.xlu0 %v1303_v31  ;;  %v1306_v34 = vmax.f32 %v3333_v30, %v3337_v32 }
 0x19c   : > { %1307 = vmax.xlane.f32.xlu1 %v1306_v34 }
 0x19e   : > { %v3344_v37 = vpop.f32.mrb[16].mxu0 }
 0x19f   : > { %v3347_v39 = vpop.f32.mrb[17].mxu0 }
 0x1a0   : > { %v3349_v40 = vpop.f32.mrb[18].mxu0  ;;  %v1309_v41 = vmax.f32 %v3344_v37, %v3347_v39 }
 0x1a1   : > { %v3353_v42 = vpop.f32.mrb[19].mxu0 }
 0x1a2   : > { %1310 = vmax.xlane.f32.xlu0 %v1309_v41  ;;  %v1312_v44 = vmax.f32 %v3349_v40, %v3353_v42 }
 0x1a4   : > { %1313 = vmax.xlane.f32.xlu1 %v1312_v44 }
 0x1a6   : > { %v3359_v46 = vpop.f32.mrb[20].mxu0 }
 0x1a7   : > { %v3361_v47 = vpop.f32.mrb[21].mxu0 }
 0x1a8   : > { %v3363_v48 = vpop.f32.mrb[22].mxu0  ;;  %v1315_v49 = vmax.f32 %v3359_v46, %v3361_v47 }
 0x1a9   : > { %v3367_v50 = vpop.f32.mrb[23].mxu0 }
 0x1aa   : > { %1316 = vmax.xlane.f32.xlu0 %v1315_v49  ;;  %v1318_v51 = vmax.f32 %v3363_v48, %v3367_v50 }
 0x1ac   : > { %1319 = vmax.xlane.f32.xlu1 %v1318_v51 }
 0x1ae   : > { %v3371_v52 = vpop.f32.mrb[24].mxu0 }
 0x1af   : > { %v3373_v53 = vpop.f32.mrb[25].mxu0 }
 0x1b0   : > { %v3375_v54 = vpop.f32.mrb[26].mxu0  ;;  %v1321_v55 = vmax.f32 %v3371_v52, %v3373_v53 }
 0x1b1   : > { %v3379_v56 = vpop.f32.mrb[27].mxu0 }
 0x1b2   : > { %1322 = vmax.xlane.f32.xlu0 %v1321_v55  ;;  %v1324_v57 = vmax.f32 %v3375_v54, %v3379_v56 }
 0x1b4   : > { %1325 = vmax.xlane.f32.xlu1 %v1324_v57 }
 0x1b6   : > { %v3383_v58 = vpop.f32.mrb[28].mxu0 }
 0x1b7   : > { %v3385_v59 = vpop.f32.mrb[29].mxu0 }
 0x1b8   : > { %v3387_v60 = vpop.f32.mrb[30].mxu0  ;;  %v1327_v61 = vmax.f32 %v3383_v58, %v3385_v59 }
 0x1b9   : > { %v3391_v62 = vpop.f32.mrb[31].mxu0 }
 0x1ba   : > { %1328 = vmax.xlane.f32.xlu0 %v1327_v61  ;;  %v1330_v63 = vmax.f32 %v3387_v60, %v3391_v62 }
 0x1bc   : > { %1331 = vmax.xlane.f32.xlu1 %v1330_v63 }
 0x1be   : > { %v3395_v0 = vpop.f32.mrb[32].mxu0 }
 0x1bf   : > { %v3397_v2 = vpop.f32.mrb[33].mxu0 }
 0x1c0   : > { %v3399_v4 = vpop.f32.mrb[34].mxu0  ;;  %v1333_v6 = vmax.f32 %v3395_v0, %v3397_v2 }
 0x1c1   : > { %v3403_v7 = vpop.f32.mrb[35].mxu0 }
 0x1c2   : > { %1334 = vmax.xlane.f32.xlu0 %v1333_v6  ;;  %v1336_v9 = vmax.f32 %v3399_v4, %v3403_v7 }
 0x1c4   : > { %1337 = vmax.xlane.f32.xlu1 %v1336_v9 }
 0x1c6   : > { %v3407_v10 = vpop.f32.mrb[36].mxu0 }
 0x1c7   : > { %v3409_v11 = vpop.f32.mrb[37].mxu0 }
 0x1c8   : > { %v3411_v15 = vpop.f32.mrb[38].mxu0  ;;  %v1339_v17 = vmax.f32 %v3407_v10, %v3409_v11 }
 0x1c9   : > { %v3415_v21 = vpop.f32.mrb[39].mxu0 }
 0x1ca   : > { %1340 = vmax.xlane.f32.xlu0 %v1339_v17  ;;  %v1342_v23 = vmax.f32 %v3411_v15, %v3415_v21 }
 0x1cc   : > { %1343 = vmax.xlane.f32.xlu1 %v1342_v23 }
 0x1ce   : > { %v3419_v24 = vpop.f32.mrb[40].mxu0 }
 0x1cf   : > { %v3421_v25 = vpop.f32.mrb[41].mxu0 }
 0x1d0   : > { %v3423_v26 = vpop.f32.mrb[42].mxu0  ;;  %v1345_v28 = vmax.f32 %v3419_v24, %v3421_v25 }
 0x1d1   : > { %v3427_v31 = vpop.f32.mrb[43].mxu0 }
 0x1d2   : > { %1346 = vmax.xlane.f32.xlu0 %v1345_v28  ;;  %v1348_v33 = vmax.f32 %v3423_v26, %v3427_v31 }
 0x1d4   : > { %1349 = vmax.xlane.f32.xlu1 %v1348_v33 }
 0x1d6   : > { %v3431_v34 = vpop.f32.mrb[44].mxu0 }
 0x1d7   : > { %v3433_v35 = vpop.f32.mrb[45].mxu0 }
 0x1d8   : > { %v3435_v36 = vpop.f32.mrb[46].mxu0  ;;  %v1351_v38 = vmax.f32 %v3431_v34, %v3433_v35 }
 0x1d9   : > { %v3439_v41 = vpop.f32.mrb[47].mxu0 }
 0x1da   : > { %1352 = vmax.xlane.f32.xlu0 %v1351_v38  ;;  %v1354_v43 = vmax.f32 %v3435_v36, %v3439_v41 }
 0x1dc   : > { %1355 = vmax.xlane.f32.xlu1 %v1354_v43 }
 0x1de   : > { %v3443_v44 = vpop.f32.mrb[48].mxu0 }
 0x1df   : > { %v3445_v45 = vpop.f32.mrb[49].mxu0 }
 0x1e0   : > { %3723 = vst [vmem:[#allocation5_spill] sm:$0xff] %v3445_v45  ;;  %v3447_v49 = vpop.f32.mrb[50].mxu0  ;;  %v1357_v51 = vmax.f32 %v3443_v44, %v3445_v45 }
 0x1e1   : > { %3724 = vst [vmem:[#allocation6_spill] sm:$0xff] %v3447_v49  ;;  %v3451_v55 = vpop.f32.mrb[51].mxu0 }
 0x1e2   : > { %3725 = vst [vmem:[#allocation7_spill] sm:$0xff] %v3451_v55  ;;  %1358 = vmax.xlane.f32.xlu0 %v1357_v51  ;;  %v1360_v57 = vmax.f32 %v3447_v49, %v3451_v55 }
 0x1e4   : > { %1361 = vmax.xlane.f32.xlu1 %v1360_v57 }
 0x1e6   : > { %v3455_v61 = vpop.f32.mrb[52].mxu0 }
 0x1e7   : > { %3726 = vst [vmem:[#allocation8_spill] sm:$0xff] %v3455_v61  ;;  %v3457_v63 = vpop.f32.mrb[53].mxu0 }
 0x1e8   : > { %3727 = vst [vmem:[#allocation9_spill] sm:$0xff] %v3457_v63  ;;  %v3459_v6 = vpop.f32.mrb[54].mxu0  ;;  %v1363_v9 = vmax.f32 %v3455_v61, %v3457_v63 }
 0x1e9   : > { %3728 = vst [vmem:[#allocation10_spill] sm:$0xff] %v3459_v6  ;;  %v3463_v17 = vpop.f32.mrb[55].mxu0 }
 0x1ea   : > { %3729 = vst [vmem:[#allocation11_spill] sm:$0xff] %v3463_v17  ;;  %1364 = vmax.xlane.f32.xlu0 %v1363_v9  ;;  %v1366_v23 = vmax.f32 %v3459_v6, %v3463_v17 }
 0x1ec   : > { %1367 = vmax.xlane.f32.xlu1 %v1366_v23 }
 0x1ee   : > { %v3467_v28 = vpop.f32.mrb[56].mxu0 }
 0x1ef   : > { %3730 = vst [vmem:[#allocation12_spill] sm:$0xff] %v3467_v28  ;;  %v3469_v33 = vpop.f32.mrb[57].mxu0 }
 0x1f0   : > { %3731 = vst [vmem:[#allocation13_spill] sm:$0xff] %v3469_v33  ;;  %v3471_v38 = vpop.f32.mrb[58].mxu0  ;;  %v1369_v43 = vmax.f32 %v3467_v28, %v3469_v33 }
 0x1f1   : > { %3732 = vst [vmem:[#allocation14_spill] sm:$0xff] %v3471_v38  ;;  %v3475_v51 = vpop.f32.mrb[59].mxu0 }
 0x1f2   : > { %3733 = vst [vmem:[#allocation15_spill] sm:$0xff] %v3475_v51  ;;  %1370 = vmax.xlane.f32.xlu0 %v1369_v43  ;;  %v1372_v57 = vmax.f32 %v3471_v38, %v3475_v51 }
 0x1f4   : > { %1373 = vmax.xlane.f32.xlu1 %v1372_v57 }
 0x1f6   : > { %v3479_v9 = vpop.f32.mrb[60].mxu0 }
 0x1f7   : > { %3734 = vst [vmem:[#allocation16_spill] sm:$0xff] %v3479_v9  ;;  %v3481_v17 = vpop.f32.mrb[61].mxu0 }
 0x1f8   : > { %3735 = vst [vmem:[#allocation17_spill] sm:$0xff] %v3481_v17  ;;  %v3483_v23 = vpop.f32.mrb[62].mxu0  ;;  %v1375_v6 = vmax.f32 %v3479_v9, %v3481_v17 }
 0x1f9   : > { %v3487_v63 = vpop.f32.mrb[63].mxu0 }
 0x1fa   : > { %v1378_v33 = vmax.f32 %v3483_v23, %v3487_v63  ;;  %1376 = vmax.xlane.f32.xlu0 %v1375_v6 }
 0x1fc   : > { %1379 = vmax.xlane.f32.xlu1 %v1378_v33 }
 0x20f   : > { %v1287_v43 = vpop.xlane.xlu0 %1286 }
 0x210   : > { %v1381_v51 = vsub.f32 %v3284_v1, %v1287_v43  ;;  %v1382_v57 = vsub.f32 %v3287_v3, %v1287_v43 }
 0x212   : > { %v1445_v38 = vmul.f32 1.442695, %v1381_v51  ;;  %v1447_v28 = vmul.f32 1.442695, %v1382_v57 }
 0x213   : > { %v1290_v61 = vpop.xlane.xlu0 %1289 }
 0x214   : > { %2713 = vpow2.f32 %v1445_v38  ;;  %v1383_v55 = vsub.f32 %v3290_v5, %v1290_v61  ;;  %v1384_v17 = vsub.f32 %v3295_v8, %v1290_v61 }
 0x215   : > { %2715 = vpow2.f32 %v1447_v28 }
 0x216   : > { %v1449_v9 = vmul.f32 1.442695, %v1383_v55  ;;  %v1451_v49 = vmul.f32 1.442695, %v1384_v17 }
 0x217   : > { %v1293_v45 = vpop.xlane.xlu1 %1292 }
 0x218   : > { %2717 = vpow2.f32 %v1449_v9  ;;  %v1385_v6 = vsub.f32 %v3301_v12, %v1293_v45  ;;  %v1386_v33 = vsub.f32 %v3303_v13, %v1293_v45 }
 0x219   : > { %2719 = vpow2.f32 %v1451_v49 }
 0x21a   : > { %v1453_v1 = vmul.f32 1.442695, %v1385_v6  ;;  %v1455_v3 = vmul.f32 1.442695, %v1386_v33 }
 0x21b   : > { %v1296_v51 = vpop.xlane.xlu1 %1295 }
 0x21c   : > { %2721 = vpow2.f32 %v1453_v1  ;;  %v1387_v38 = vsub.f32 %v3305_v14, %v1296_v51  ;;  %v1388_v5 = vsub.f32 %v3309_v16, %v1296_v51 }
 0x21d   : > { %2723 = vpow2.f32 %v1455_v3 }
 0x21e   : > { %v2714_v8 = vpop.eup %2713  ;;  %v1457_v61 = vmul.f32 1.442695, %v1387_v38  ;;  %v1459_v55 = vmul.f32 1.442695, %v1388_v5 }
 0x21f   : > { %v2716_v17 = vpop.eup %2715  ;;  %v1299_v28 = vpop.xlane.xlu0 %1298 }
 0x220   : > { %2725 = vpow2.f32 %v1457_v61  ;;  %v1389_v12 = vsub.f32 %v3313_v18, %v1299_v28  ;;  %v1390_v13 = vsub.f32 %v3315_v19, %v1299_v28  ;;  %v1573_v45 = vadd.f32 %v2716_v17, %v2714_v8 }
 0x221   : > { %2727 = vpow2.f32 %v1459_v55  ;;  %v1302_v49 = vpop.xlane.xlu1 %1301 }
 0x222   : > { %v2718_v9 = vpop.eup %2717  ;;  %v1461_v43 = vmul.f32 1.442695, %v1389_v12  ;;  %v1463_v57 = vmul.f32 1.442695, %v1390_v13  ;;  %v1391_v14 = vsub.f32 %v3317_v20, %v1302_v49  ;;  %v1392_v16 = vsub.f32 %v3321_v22, %v1302_v49  ;;  %1574 = vadd.xlane.f32.xlu0 %v1573_v45 }
 0x223   : > { %v2720_v6 = vpop.eup %2719  ;;  %v1669_v33 = vpack.c.bf16 %v2718_v9, %v2714_v8 }
 0x224   : > { %2729 = vpow2.f32 %v1461_v43  ;;  %v1465_v1 = vmul.f32 1.442695, %v1391_v14  ;;  %v1467_v3 = vmul.f32 1.442695, %v1392_v16  ;;  %v1670_v51 = vpack.c.bf16 %v2720_v6, %v2716_v17 }
 0x225   : > { %2731 = vpow2.f32 %v1463_v57  ;;  %v1576_v18 = vadd.f32 %v2720_v6, %v2718_v9 }
 0x226   : > { %v2722_v19 = vpop.eup %2721  ;;  %2733 = vpow2.f32 %v1465_v1  ;;  %1829 = vmatprep.mubr.bf16.mxu1 %v1670_v51 }
 0x227   : > { %v2724_v38 = vpop.eup %2723  ;;  %2735 = vpow2.f32 %v1467_v3  ;;  %1577 = vadd.xlane.f32.xlu0 %v1576_v18  ;;  %1830 = vmatmul.mubr.bf16.vlgmr.msra.gmra.mrb[0].mxu1 %v1669_v33  ;;  %v1305_v5 = vpop.xlane.xlu0 %1304 }
 0x228   : > { %v1393_v20 = vsub.f32 %v3328_v27, %v1305_v5  ;;  %v1394_v22 = vsub.f32 %v3331_v29, %v1305_v5  ;;  %v1579_v61 = vadd.f32 %v2724_v38, %v2722_v19 }
 0x229   : > { %v1308_v8 = vpop.xlane.xlu1 %1307 }
 0x22a   : > { %v2726_v55 = vpop.eup %2725  ;;  %v1469_v28 = vmul.f32 1.442695, %v1393_v20  ;;  %v1471_v12 = vmul.f32 1.442695, %v1394_v22  ;;  %v1395_v17 = vsub.f32 %v3333_v30, %v1308_v8  ;;  %v1396_v13 = vsub.f32 %v3337_v32, %v1308_v8 }
 0x22b   : > { %v2728_v45 = vpop.eup %2727  ;;  %1580 = vadd.xlane.f32.xlu0 %v1579_v61  ;;  %v1671_v49 = vpack.c.bf16 %v2726_v55, %v2722_v19 }
 0x22c   : > { %2737 = vpow2.f32 %v1469_v28  ;;  %v1473_v9 = vmul.f32 1.442695, %v1395_v17  ;;  %v1475_v43 = vmul.f32 1.442695, %v1396_v13  ;;  %v1672_v57 = vpack.c.bf16 %v2728_v45, %v2724_v38 }
 0x22d   : > { %2739 = vpow2.f32 %v1471_v12  ;;  %v1582_v27 = vadd.f32 %v2728_v45, %v2726_v55 }
 0x22e   : > { %v2730_v14 = vpop.eup %2729  ;;  %2741 = vpow2.f32 %v1473_v9  ;;  %1837 = vmatprep.mubr.bf16.mxu1 %v1672_v57 }
 0x22f   : > { %v2732_v29 = vpop.eup %2731  ;;  %2743 = vpow2.f32 %v1475_v43  ;;  %1583 = vadd.xlane.f32.xlu0 %v1582_v27  ;;  %1838 = vmatmul.mubr.bf16.gmra.mrb[4].mxu1 %v1671_v49  ;;  %v1311_v16 = vpop.xlane.xlu0 %1310 }
 0x230   : > { %v2734_v30 = vpop.eup %2733  ;;  %v1397_v32 = vsub.f32 %v3344_v37, %v1311_v16  ;;  %v1398_v6 = vsub.f32 %v3347_v39, %v1311_v16  ;;  %v1585_v33 = vadd.f32 %v2732_v29, %v2730_v14 }
 0x231   : > { %v2736_v1 = vpop.eup %2735  ;;  %v1314_v3 = vpop.xlane.xlu1 %1313  ;;  %v1673_v51 = vpack.c.bf16 %v2734_v30, %v2730_v14 }
 0x232   : > { %v1477_v18 = vmul.f32 1.442695, %v1397_v32  ;;  %v1479_v19 = vmul.f32 1.442695, %v1398_v6  ;;  %v1399_v38 = vsub.f32 %v3349_v40, %v1314_v3  ;;  %v1400_v5 = vsub.f32 %v3353_v42, %v1314_v3 }
 0x233   : > { %1586 = vadd.xlane.f32.xlu0 %v1585_v33  ;;  %v1674_v20 = vpack.c.bf16 %v2736_v1, %v2732_v29  ;;  %v1588_v22 = vadd.f32 %v2736_v1, %v2734_v30 }
 0x234   : > { %2745 = vpow2.f32 %v1477_v18  ;;  %v1481_v61 = vmul.f32 1.442695, %v1399_v38  ;;  %v1483_v8 = vmul.f32 1.442695, %v1400_v5 }
 0x235   : > { %2747 = vpow2.f32 %v1479_v19  ;;  %1845 = vmatprep.mubr.bf16.mxu1 %v1674_v20 }
 0x236   : > { %v2738_v37 = vpop.eup %2737  ;;  %2749 = vpow2.f32 %v1481_v61 }
 0x237   : > { %v2740_v39 = vpop.eup %2739  ;;  %2751 = vpow2.f32 %v1483_v8  ;;  %1589 = vadd.xlane.f32.xlu0 %v1588_v22  ;;  %1846 = vmatmul.mubr.bf16.gmra.mrb[8].mxu1 %v1673_v51  ;;  %v1317_v55 = vpop.xlane.xlu0 %1316 }
 0x238   : > { %v2742_v28 = vpop.eup %2741  ;;  %v1401_v40 = vsub.f32 %v3359_v46, %v1317_v55  ;;  %v1402_v42 = vsub.f32 %v3361_v47, %v1317_v55  ;;  %v1591_v12 = vadd.f32 %v2740_v39, %v2738_v37 }
 0x239   : > { %v2744_v17 = vpop.eup %2743  ;;  %v1320_v13 = vpop.xlane.xlu1 %1319  ;;  %v1675_v45 = vpack.c.bf16 %v2742_v28, %v2738_v37 }
 0x23a   : > { %v1485_v49 = vmul.f32 1.442695, %v1401_v40  ;;  %v1487_v9 = vmul.f32 1.442695, %v1402_v42  ;;  %v1403_v43 = vsub.f32 %v3363_v48, %v1320_v13  ;;  %v1404_v57 = vsub.f32 %v3367_v50, %v1320_v13 }
 0x23b   : > { %1592 = vadd.xlane.f32.xlu0 %v1591_v12  ;;  %v1676_v27 = vpack.c.bf16 %v2744_v17, %v2740_v39  ;;  %v1594_v14 = vadd.f32 %v2744_v17, %v2742_v28 }
 0x23c   : > { %2753 = vpow2.f32 %v1485_v49  ;;  %v1489_v29 = vmul.f32 1.442695, %v1403_v43  ;;  %v1491_v16 = vmul.f32 1.442695, %v1404_v57 }
 0x23d   : > { %2755 = vpow2.f32 %v1487_v9  ;;  %1853 = vmatprep.mubr.bf16.mxu1 %v1676_v27 }
 0x23e   : > { %v2746_v46 = vpop.eup %2745  ;;  %2757 = vpow2.f32 %v1489_v29 }
 0x23f   : > { %v2748_v47 = vpop.eup %2747  ;;  %2759 = vpow2.f32 %v1491_v16  ;;  %1595 = vadd.xlane.f32.xlu0 %v1594_v14  ;;  %1854 = vmatmul.mubr.bf16.gmra.mrb[12].mxu1 %v1675_v45  ;;  %v1323_v30 = vpop.xlane.xlu0 %1322 }
 0x240   : > { %v2750_v32 = vpop.eup %2749  ;;  %v1405_v48 = vsub.f32 %v3371_v52, %v1323_v30  ;;  %v1406_v50 = vsub.f32 %v3373_v53, %v1323_v30  ;;  %v1597_v6 = vadd.f32 %v2748_v47, %v2746_v46 }
 0x241   : > { %v2752_v33 = vpop.eup %2751  ;;  %v1326_v1 = vpop.xlane.xlu1 %1325  ;;  %v1677_v3 = vpack.c.bf16 %v2750_v32, %v2746_v46 }
 0x242   : > { %v1493_v51 = vmul.f32 1.442695, %v1405_v48  ;;  %v1495_v18 = vmul.f32 1.442695, %v1406_v50  ;;  %v1407_v19 = vsub.f32 %v3375_v54, %v1326_v1  ;;  %v1408_v38 = vsub.f32 %v3379_v56, %v1326_v1 }
 0x243   : > { %1598 = vadd.xlane.f32.xlu0 %v1597_v6  ;;  %v1678_v5 = vpack.c.bf16 %v2752_v33, %v2748_v47  ;;  %v1600_v20 = vadd.f32 %v2752_v33, %v2750_v32 }
 0x244   : > { %2761 = vpow2.f32 %v1493_v51  ;;  %v1497_v22 = vmul.f32 1.442695, %v1407_v19  ;;  %v1499_v61 = vmul.f32 1.442695, %v1408_v38 }
 0x245   : > { %2763 = vpow2.f32 %v1495_v18  ;;  %1861 = vmatprep.mubr.bf16.mxu1 %v1678_v5 }
 0x246   : > { %v2754_v52 = vpop.eup %2753  ;;  %2765 = vpow2.f32 %v1497_v22 }
 0x247   : > { %v2756_v53 = vpop.eup %2755  ;;  %2767 = vpow2.f32 %v1499_v61  ;;  %1601 = vadd.xlane.f32.xlu0 %v1600_v20  ;;  %1862 = vmatmul.mubr.bf16.gmra.mrb[16].mxu1 %v1677_v3  ;;  %v1329_v8 = vpop.xlane.xlu0 %1328 }
 0x248   : > { %v2758_v37 = vpop.eup %2757  ;;  %v1409_v54 = vsub.f32 %v3383_v58, %v1329_v8  ;;  %v1410_v56 = vsub.f32 %v3385_v59, %v1329_v8  ;;  %v1603_v39 = vadd.f32 %v2756_v53, %v2754_v52 }
 0x249   : > { %v2760_v55 = vpop.eup %2759  ;;  %v1332_v28 = vpop.xlane.xlu1 %1331  ;;  %v1679_v40 = vpack.c.bf16 %v2758_v37, %v2754_v52 }
 0x24a   : > { %v1501_v42 = vmul.f32 1.442695, %v1409_v54  ;;  %v1503_v12 = vmul.f32 1.442695, %v1410_v56  ;;  %v1411_v17 = vsub.f32 %v3387_v60, %v1332_v28  ;;  %v1412_v13 = vsub.f32 %v3391_v62, %v1332_v28 }
 0x24b   : > { %1604 = vadd.xlane.f32.xlu0 %v1603_v39  ;;  %v1680_v45 = vpack.c.bf16 %v2760_v55, %v2756_v53  ;;  %v1606_v49 = vadd.f32 %v2760_v55, %v2758_v37 }
 0x24c   : > { %2769 = vpow2.f32 %v1501_v42  ;;  %v1505_v9 = vmul.f32 1.442695, %v1411_v17  ;;  %v1507_v43 = vmul.f32 1.442695, %v1412_v13 }
 0x24d   : > { %2771 = vpow2.f32 %v1503_v12  ;;  %1869 = vmatprep.mubr.bf16.mxu1 %v1680_v45 }
 0x24e   : > { %v2762_v58 = vpop.eup %2761  ;;  %2773 = vpow2.f32 %v1505_v9 }
 0x24f   : > { %v2764_v59 = vpop.eup %2763  ;;  %2775 = vpow2.f32 %v1507_v43  ;;  %1607 = vadd.xlane.f32.xlu0 %v1606_v49  ;;  %1870 = vmatmul.mubr.bf16.gmra.mrb[20].mxu1 %v1679_v40  ;;  %v1335_v57 = vpop.xlane.xlu0 %1334 }
 0x250   : > { %v2766_v27 = vpop.eup %2765  ;;  %v1413_v60 = vsub.f32 %v3395_v0, %v1335_v57  ;;  %v1414_v62 = vsub.f32 %v3397_v2, %v1335_v57  ;;  %v1609_v14 = vadd.f32 %v2764_v59, %v2762_v58 }
 0x251   : > { %v2768_v29 = vpop.eup %2767  ;;  %v1338_v16 = vpop.xlane.xlu1 %1337  ;;  %v1681_v46 = vpack.c.bf16 %v2766_v27, %v2762_v58 }
 0x252   : > { %v1509_v47 = vmul.f32 1.442695, %v1413_v60  ;;  %v1511_v30 = vmul.f32 1.442695, %v1414_v62  ;;  %v1415_v32 = vsub.f32 %v3399_v4, %v1338_v16  ;;  %v1416_v48 = vsub.f32 %v3403_v7, %v1338_v16 }
 0x253   : > { %1610 = vadd.xlane.f32.xlu0 %v1609_v14  ;;  %v1682_v50 = vpack.c.bf16 %v2768_v29, %v2764_v59  ;;  %v1612_v6 = vadd.f32 %v2768_v29, %v2766_v27 }
 0x254   : > { %2777 = vpow2.f32 %v1509_v47  ;;  %v1513_v33 = vmul.f32 1.442695, %v1415_v32  ;;  %v1515_v1 = vmul.f32 1.442695, %v1416_v48 }
 0x255   : > { %2779 = vpow2.f32 %v1511_v30  ;;  %1877 = vmatprep.mubr.bf16.mxu1 %v1682_v50 }
 0x256   : > { %v2770_v0 = vpop.eup %2769  ;;  %2781 = vpow2.f32 %v1513_v33 }
 0x257   : > { %v2772_v2 = vpop.eup %2771  ;;  %2783 = vpow2.f32 %v1515_v1  ;;  %1613 = vadd.xlane.f32.xlu0 %v1612_v6  ;;  %1878 = vmatmul.mubr.bf16.gmra.mrb[24].mxu1 %v1681_v46  ;;  %v1341_v3 = vpop.xlane.xlu0 %1340  ;;  %v3736_v1 = vld [vmem:[#allocation5_spill] sm:$0xff] }
 0x258   : > { %v2774_v51 = vpop.eup %2773  ;;  %v1417_v4 = vsub.f32 %v3407_v10, %v1341_v3  ;;  %v1418_v7 = vsub.f32 %v3409_v11, %v1341_v3  ;;  %v1615_v18 = vadd.f32 %v2772_v2, %v2770_v0 }
 0x259   : > { %v2776_v19 = vpop.eup %2775  ;;  %v1344_v38 = vpop.xlane.xlu1 %1343  ;;  %v1683_v5 = vpack.c.bf16 %v2774_v51, %v2770_v0 }
 0x25a   : > { %v1517_v20 = vmul.f32 1.442695, %v1417_v4  ;;  %v1519_v22 = vmul.f32 1.442695, %v1418_v7  ;;  %v1419_v61 = vsub.f32 %v3411_v15, %v1344_v38  ;;  %v1420_v52 = vsub.f32 %v3415_v21, %v1344_v38  ;;  %v3738_v38 = vld [vmem:[#allocation7_spill] sm:$0xff] }
 0x25b   : > { %1616 = vadd.xlane.f32.xlu0 %v1615_v18  ;;  %v1684_v53 = vpack.c.bf16 %v2776_v19, %v2772_v2  ;;  %v1618_v8 = vadd.f32 %v2776_v19, %v2774_v51  ;;  %v3737_v18 = vld [vmem:[#allocation6_spill] sm:$0xff] }
 0x25c   : > { %2785 = vpow2.f32 %v1517_v20  ;;  %v1521_v37 = vmul.f32 1.442695, %v1419_v61  ;;  %v1523_v54 = vmul.f32 1.442695, %v1420_v52 }
 0x25d   : > { %2787 = vpow2.f32 %v1519_v22  ;;  %1885 = vmatprep.mubr.bf16.mxu1 %v1684_v53 }
 0x25e   : > { %v2778_v10 = vpop.eup %2777  ;;  %2789 = vpow2.f32 %v1521_v37 }
 0x25f   : > { %v2780_v11 = vpop.eup %2779  ;;  %2791 = vpow2.f32 %v1523_v54  ;;  %1619 = vadd.xlane.f32.xlu0 %v1618_v8  ;;  %1886 = vmatmul.mubr.bf16.gmra.mrb[28].mxu1 %v1683_v5  ;;  %v1347_v56 = vpop.xlane.xlu0 %1346  ;;  %v3739_v54 = vld [vmem:[#allocation8_spill] sm:$0xff] }
 0x260   : > { %v2782_v39 = vpop.eup %2781  ;;  %v1421_v15 = vsub.f32 %v3419_v24, %v1347_v56  ;;  %v1422_v21 = vsub.f32 %v3421_v25, %v1347_v56  ;;  %v1621_v55 = vadd.f32 %v2780_v11, %v2778_v10 }
 0x261   : > { %v2784_v28 = vpop.eup %2783  ;;  %v1350_v40 = vpop.xlane.xlu1 %1349  ;;  %v1685_v42 = vpack.c.bf16 %v2782_v39, %v2778_v10 }
 0x262   : > { %v1525_v12 = vmul.f32 1.442695, %v1421_v15  ;;  %v1527_v17 = vmul.f32 1.442695, %v1422_v21  ;;  %v1423_v13 = vsub.f32 %v3423_v26, %v1350_v40  ;;  %v1424_v45 = vsub.f32 %v3427_v31, %v1350_v40  ;;  %1622 = vadd.xlane.f32.xlu1 %v1621_v55 }
 0x263   : > { %v1686_v49 = vpack.c.bf16 %v2784_v28, %v2780_v11  ;;  %v1624_v9 = vadd.f32 %v2784_v28, %v2782_v39  ;;  %v3740_v11 = vld [vmem:[#allocation9_spill] sm:$0xff] }
 0x264   : > { %2793 = vpow2.f32 %v1525_v12  ;;  %v1529_v43 = vmul.f32 1.442695, %v1423_v13  ;;  %v1531_v58 = vmul.f32 1.442695, %v1424_v45 }
 0x265   : > { %2795 = vpow2.f32 %v1527_v17  ;;  %1893 = vmatprep.mubr.bf16.mxu1 %v1686_v49  ;;  %v3742_v17 = vld [vmem:[#allocation11_spill] sm:$0xff] }
 0x266   : > { %v2786_v24 = vpop.eup %2785  ;;  %2797 = vpow2.f32 %v1529_v43  ;;  %1625 = vadd.xlane.f32.xlu1 %v1624_v9 }
 0x267   : > { %v2788_v25 = vpop.eup %2787  ;;  %2799 = vpow2.f32 %v1531_v58  ;;  %1894 = vmatmul.mubr.bf16.gmra.mrb[32].mxu1 %v1685_v42  ;;  %v1353_v59 = vpop.xlane.xlu0 %1352  ;;  %v3741_v42 = vld [vmem:[#allocation10_spill] sm:$0xff] }
 0x268   : > { %v2790_v57 = vpop.eup %2789  ;;  %v1425_v26 = vsub.f32 %v3431_v34, %v1353_v59  ;;  %v1426_v31 = vsub.f32 %v3433_v35, %v1353_v59  ;;  %v1627_v27 = vadd.f32 %v2788_v25, %v2786_v24 }
 0x269   : > { %v2792_v60 = vpop.eup %2791  ;;  %v1356_v62 = vpop.xlane.xlu1 %1355  ;;  %v1687_v14 = vpack.c.bf16 %v2790_v57, %v2786_v24 }
 0x26a   : > { %v1533_v29 = vmul.f32 1.442695, %v1425_v26  ;;  %v1535_v16 = vmul.f32 1.442695, %v1426_v31  ;;  %v1427_v46 = vsub.f32 %v3435_v36, %v1356_v62  ;;  %v1428_v47 = vsub.f32 %v3439_v41, %v1356_v62  ;;  %1628 = vadd.xlane.f32.xlu1 %v1627_v27  ;;  %v3744_v31 = vld [vmem:[#allocation13_spill] sm:$0xff] }
 0x26b   : > { %v1688_v30 = vpack.c.bf16 %v2792_v60, %v2788_v25  ;;  %v1630_v32 = vadd.f32 %v2792_v60, %v2790_v57  ;;  %v3743_v57 = vld [vmem:[#allocation12_spill] sm:$0xff] }
 0x26c   : > { %2801 = vpow2.f32 %v1533_v29  ;;  %v1537_v48 = vmul.f32 1.442695, %v1427_v46  ;;  %v1539_v50 = vmul.f32 1.442695, %v1428_v47  ;;  %v3745_v47 = vld [vmem:[#allocation14_spill] sm:$0xff] }
 0x26d   : > { %2803 = vpow2.f32 %v1535_v16  ;;  %1901 = vmatprep.mubr.bf16.mxu1 %v1688_v30 }
 0x26e   : > { %v2794_v34 = vpop.eup %2793  ;;  %2805 = vpow2.f32 %v1537_v48  ;;  %1631 = vadd.xlane.f32.xlu1 %v1630_v32  ;;  %v3746_v32 = vld [vmem:[#allocation15_spill] sm:$0xff] }
 0x26f   : > { %v2796_v35 = vpop.eup %2795  ;;  %2807 = vpow2.f32 %v1539_v50  ;;  %1902 = vmatmul.mubr.bf16.gmra.mrb[36].mxu1 %v1687_v14  ;;  %v1359_v6 = vpop.xlane.xlu0 %1358 }
 0x270   : > { %v2798_v33 = vpop.eup %2797  ;;  %v1429_v36 = vsub.f32 %v3443_v44, %v1359_v6  ;;  %v1430_v41 = vsub.f32 %v3736_v1, %v1359_v6  ;;  %v1633_v0 = vadd.f32 %v2796_v35, %v2794_v34 }
 0x271   : > { %v2800_v2 = vpop.eup %2799  ;;  %v1362_v3 = vpop.xlane.xlu1 %1361  ;;  %v1689_v51 = vpack.c.bf16 %v2798_v33, %v2794_v34 }
 0x272   : > { %v1541_v4 = vmul.f32 1.442695, %v1429_v36  ;;  %v1543_v7 = vmul.f32 1.442695, %v1430_v41  ;;  %v1431_v19 = vsub.f32 %v3737_v18, %v1362_v3  ;;  %v1432_v5 = vsub.f32 %v3738_v38, %v1362_v3  ;;  %1634 = vadd.xlane.f32.xlu1 %v1633_v0  ;;  %v3747_v0 = vld [vmem:[#allocation16_spill] sm:$0xff]  ;;  %v3748_v3 = vld [vmem:[#allocation17_spill] sm:$0xff] }
 0x273   : > { %v1690_v20 = vpack.c.bf16 %v2800_v2, %v2796_v35  ;;  %v1636_v22 = vadd.f32 %v2800_v2, %v2798_v33 }
 0x274   : > { %2809 = vpow2.f32 %v1541_v4  ;;  %v1545_v61 = vmul.f32 1.442695, %v1431_v19  ;;  %v1547_v52 = vmul.f32 1.442695, %v1432_v5 }
 0x275   : > { %2811 = vpow2.f32 %v1543_v7  ;;  %1909 = vmatprep.mubr.bf16.mxu1 %v1690_v20 }
 0x276   : > { %v2802_v44 = vpop.eup %2801  ;;  %2813 = vpow2.f32 %v1545_v61  ;;  %1637 = vadd.xlane.f32.xlu1 %v1636_v22 }
 0x277   : > { %v2804_v53 = vpop.eup %2803  ;;  %2815 = vpow2.f32 %v1547_v52  ;;  %1910 = vmatmul.mubr.bf16.gmra.mrb[40].mxu1 %v1689_v51  ;;  %v1365_v8 = vpop.xlane.xlu0 %1364 }
 0x278   : > { %v2806_v37 = vpop.eup %2805  ;;  %v1433_v10 = vsub.f32 %v3739_v54, %v1365_v8  ;;  %v1434_v56 = vsub.f32 %v3740_v11, %v1365_v8  ;;  %v1639_v39 = vadd.f32 %v2804_v53, %v2802_v44 }
 0x279   : > { %v2808_v15 = vpop.eup %2807  ;;  %v1368_v21 = vpop.xlane.xlu1 %1367  ;;  %v1691_v55 = vpack.c.bf16 %v2806_v37, %v2802_v44 }
 0x27a   : > { %v1549_v28 = vmul.f32 1.442695, %v1433_v10  ;;  %v1551_v40 = vmul.f32 1.442695, %v1434_v56  ;;  %v1435_v12 = vsub.f32 %v3741_v42, %v1368_v21  ;;  %v1436_v13 = vsub.f32 %v3742_v17, %v1368_v21  ;;  %1640 = vadd.xlane.f32.xlu1 %v1639_v39 }
 0x27b   : > { %v1692_v45 = vpack.c.bf16 %v2808_v15, %v2804_v53  ;;  %v1642_v49 = vadd.f32 %v2808_v15, %v2806_v37 }
 0x27c   : > { %2817 = vpow2.f32 %v1549_v28  ;;  %v1553_v9 = vmul.f32 1.442695, %v1435_v12  ;;  %v1555_v43 = vmul.f32 1.442695, %v1436_v13 }
 0x27d   : > { %2819 = vpow2.f32 %v1551_v40  ;;  %1917 = vmatprep.mubr.bf16.mxu1 %v1692_v45 }
 0x27e   : > { %v2810_v58 = vpop.eup %2809  ;;  %2821 = vpow2.f32 %v1553_v9  ;;  %1643 = vadd.xlane.f32.xlu1 %v1642_v49 }
 0x27f   : > { %v2812_v24 = vpop.eup %2811  ;;  %2823 = vpow2.f32 %v1555_v43  ;;  %1918 = vmatmul.mubr.bf16.gmra.mrb[44].mxu1 %v1691_v55  ;;  %v1371_v25 = vpop.xlane.xlu0 %1370 }
 0x280   : > { %v2814_v59 = vpop.eup %2813  ;;  %v1437_v26 = vsub.f32 %v3743_v57, %v1371_v25  ;;  %v1438_v27 = vsub.f32 %v3744_v31, %v1371_v25  ;;  %v1645_v60 = vadd.f32 %v2812_v24, %v2810_v58 }
 0x281   : > { %v2816_v62 = vpop.eup %2815  ;;  %v1374_v14 = vpop.xlane.xlu1 %1373  ;;  %v1693_v29 = vpack.c.bf16 %v2814_v59, %v2810_v58 }
 0x282   : > { %v1557_v16 = vmul.f32 1.442695, %v1437_v26  ;;  %v1559_v46 = vmul.f32 1.442695, %v1438_v27  ;;  %v1439_v30 = vsub.f32 %v3745_v47, %v1374_v14  ;;  %v1440_v48 = vsub.f32 %v3746_v32, %v1374_v14  ;;  %1646 = vadd.xlane.f32.xlu1 %v1645_v60 }
 0x283   : > { %v1694_v50 = vpack.c.bf16 %v2816_v62, %v2812_v24  ;;  %v1648_v34 = vadd.f32 %v2816_v62, %v2814_v59 }
 0x284   : > { %2825 = vpow2.f32 %v1557_v16  ;;  %v1561_v35 = vmul.f32 1.442695, %v1439_v30  ;;  %v1563_v6 = vmul.f32 1.442695, %v1440_v48 }
 0x285   : > { %2827 = vpow2.f32 %v1559_v46  ;;  %1925 = vmatprep.mubr.bf16.mxu1 %v1694_v50 }
 0x286   : > { %v2818_v33 = vpop.eup %2817  ;;  %2829 = vpow2.f32 %v1561_v35  ;;  %1649 = vadd.xlane.f32.xlu1 %v1648_v34 }
 0x287   : > { %v2820_v36 = vpop.eup %2819  ;;  %2831 = vpow2.f32 %v1563_v6  ;;  %1926 = vmatmul.mubr.bf16.gmra.mrb[48].mxu1 %v1693_v29  ;;  %v1377_v1 = vpop.xlane.xlu0 %1376 }
 0x288   : > { %v2822_v41 = vpop.eup %2821  ;;  %v1441_v2 = vsub.f32 %v3747_v0, %v1377_v1  ;;  %v1442_v51 = vsub.f32 %v3748_v3, %v1377_v1  ;;  %v1651_v4 = vadd.f32 %v2820_v36, %v2818_v33 }
 0x289   : > { %v2824_v7 = vpop.eup %2823  ;;  %v1380_v18 = vpop.xlane.xlu1 %1379  ;;  %v1695_v19 = vpack.c.bf16 %v2822_v41, %v2818_v33 }
 0x28a   : > { %v1565_v38 = vmul.f32 1.442695, %v1441_v2  ;;  %v1567_v5 = vmul.f32 1.442695, %v1442_v51  ;;  %1652 = vadd.xlane.f32.xlu1 %v1651_v4  ;;  %v1443_v20 = vsub.f32 %v3483_v23, %v1380_v18  ;;  %v1444_v22 = vsub.f32 %v3487_v63, %v1380_v18 }
 0x28b   : > { %v1696_v61 = vpack.c.bf16 %v2824_v7, %v2820_v36  ;;  %v1654_v52 = vadd.f32 %v2824_v7, %v2822_v41 }
 0x28c   : > { %2833 = vpow2.f32 %v1565_v38  ;;  %v1569_v44 = vmul.f32 1.442695, %v1443_v20  ;;  %v1571_v53 = vmul.f32 1.442695, %v1444_v22 }
 0x28d   : > { %2835 = vpow2.f32 %v1567_v5  ;;  %1933 = vmatprep.mubr.bf16.mxu1 %v1696_v61 }
 0x28e   : > { %v2826_v8 = vpop.eup %2825  ;;  %2837 = vpow2.f32 %v1569_v44  ;;  %1655 = vadd.xlane.f32.xlu1 %v1654_v52 }
 0x28f   : > { %v2828_v37 = vpop.eup %2827  ;;  %2839 = vpow2.f32 %v1571_v53  ;;  %1934 = vmatmul.mubr.bf16.gmra.mrb[52].mxu1 %v1695_v19 }
 0x290   : > { %v2830_v54 = vpop.eup %2829  ;;  %v1657_v10 = vadd.f32 %v2828_v37, %v2826_v8 }
 0x291   : > { %v2832_v11 = vpop.eup %2831  ;;  %v1697_v56 = vpack.c.bf16 %v2830_v54, %v2826_v8 }
 0x292   : > { %1658 = vadd.xlane.f32.xlu1 %v1657_v10  ;;  %v1698_v23 = vpack.c.bf16 %v2832_v11, %v2828_v37  ;;  %v1660_v63 = vadd.f32 %v2832_v11, %v2830_v54 }
 0x294   : > { %1941 = vmatprep.mubr.bf16.mxu1 %v1698_v23 }
 0x296   : > { %v2834_v39 = vpop.eup %2833  ;;  %1661 = vadd.xlane.f32.xlu1 %v1660_v63 }
 0x297   : > { %v2836_v15 = vpop.eup %2835  ;;  %1942 = vmatmul.mubr.bf16.gmra.mrb[56].mxu1 %v1697_v56 }
 0x298   : > { %v2838_v21 = vpop.eup %2837  ;;  %v1663_v55 = vadd.f32 %v2836_v15, %v2834_v39 }
 0x299   : > { %v2840_v28 = vpop.eup %2839  ;;  %v1699_v40 = vpack.c.bf16 %v2838_v21, %v2834_v39 }
 0x29a   : > { %1664 = vadd.xlane.f32.xlu1 %v1663_v55  ;;  %v1700_v42 = vpack.c.bf16 %v2840_v28, %v2836_v15  ;;  %v1666_v12 = vadd.f32 %v2840_v28, %v2838_v21 }
 0x29c   : > { %1949 = vmatprep.mubr.bf16.mxu1 %v1700_v42 }
 0x29e   : > { %1667 = vadd.xlane.f32.xlu1 %v1666_v12 }
 0x29f   : > { %1950 = vmatmul.mubr.bf16.gmra.mrb[60].mxu1 %v1699_v40 }
 0x2af   : > { %v1575_v17 = vpop.xlane.xlu0 %1574 }
 0x2b0   : > { %2841 = vrcp.f32 %v1575_v17 }
 0x2b4   : > { %v1578_v13 = vpop.xlane.xlu0 %1577 }
 0x2b5   : > { %2843 = vrcp.f32 %v1578_v13 }
 0x2b8   : > { %v1581_v45 = vpop.xlane.xlu0 %1580 }
 0x2b9   : > { %2845 = vrcp.f32 %v1581_v45 }
 0x2ba   : > { %v2842_v31 = vpop.eup %2841 }
 0x2bc   : > { %v1584_v49 = vpop.xlane.xlu0 %1583 }
 0x2bd   : > { %2847 = vrcp.f32 %v1584_v49 }
 0x2bf   : > { %v2844_v14 = vpop.eup %2843 }
 0x2c0   : > { %v1587_v9 = vpop.xlane.xlu0 %1586 }
 0x2c1   : > { %2849 = vrcp.f32 %v1587_v9 }
 0x2c3   : > { %v2846_v48 = vpop.eup %2845 }
 0x2c4   : > { %v1590_v43 = vpop.xlane.xlu0 %1589 }
 0x2c5   : > { %2851 = vrcp.f32 %v1590_v43 }
 0x2c7   : > { %v2848_v33 = vpop.eup %2847 }
 0x2c8   : > { %v1593_v58 = vpop.xlane.xlu0 %1592 }
 0x2c9   : > { %2853 = vrcp.f32 %v1593_v58 }
 0x2cb   : > { %v2850_v3 = vpop.eup %2849 }
 0x2cc   : > { %v1596_v59 = vpop.xlane.xlu0 %1595 }
 0x2cd   : > { %2855 = vrcp.f32 %v1596_v59 }
 0x2cf   : > { %v2852_v19 = vpop.eup %2851 }
 0x2d0   : > { %v1599_v29 = vpop.xlane.xlu0 %1598 }
 0x2d1   : > { %2857 = vrcp.f32 %v1599_v29 }
 0x2d3   : > { %v2854_v53 = vpop.eup %2853 }
 0x2d4   : > { %v1602_v6 = vpop.xlane.xlu0 %1601 }
 0x2d5   : > { %2859 = vrcp.f32 %v1602_v6 }
 0x2d7   : > { %v2856_v11 = vpop.eup %2855 }
 0x2d8   : > { %v1605_v4 = vpop.xlane.xlu0 %1604 }
 0x2d9   : > { %2861 = vrcp.f32 %v1605_v4 }
 0x2db   : > { %v2858_v55 = vpop.eup %2857 }
 0x2dc   : > { %v1608_v61 = vpop.xlane.xlu0 %1607 }
 0x2dd   : > { %2863 = vrcp.f32 %v1608_v61 }
 0x2df   : > { %v2860_v13 = vpop.eup %2859 }
 0x2e0   : > { %v1611_v56 = vpop.xlane.xlu0 %1610 }
 0x2e1   : > { %2865 = vrcp.f32 %v1611_v56 }
 0x2e4   : > { %v1614_v17 = vpop.xlane.xlu0 %1613 }
 0x2e5   : > { %2867 = vrcp.f32 %v1614_v17 }
 0x2ef   : > { %v3555_v38 = vpop.xlane.xlu1 %1622 }
 0x2f3   : > { %v3557_v10 = vpop.xlane.xlu1 %1625 }
 0x2f7   : > { %v1629_v40 = vpop.xlane.xlu1 %1628 }
 0x2fa   : > { %v2528_v24 = vpop.f32.mrb[0].mxu1 }
 0x2fb   : > { %v2529_v25 = vpop.f32.mrb[1].mxu1  ;;  %v1632_v43 = vpop.xlane.xlu1 %1631 }
 0x2fc   : > { %v2530_v57 = vadd.f32 %v2529_v25, %v2528_v24  ;;  %v2531_v26 = vpop.f32.mrb[2].mxu1  ;;  %v2862_v25 = vpop.eup %2861 }
 0x2fd   : > { %v2532_v27 = vpop.f32.mrb[3].mxu1 }
 0x2fe   : > { %v2533_v60 = vadd.f32 %v2532_v27, %v2531_v26  ;;  %v1990_v62 = vmul.f32 %v2842_v31, %v2530_v57  ;;  %v1617_v57 = vpop.xlane.xlu0 %1616  ;;  %v2864_v27 = vpop.eup %2863 }
 0x2ff   : > { %2869 = vrcp.f32 %v1617_v57 }
 0x300   : > { %2054 = vxpose.xlu0.b32.start [1/16] %v1990_v62, 128  ;;  %v1991_v16 = vmul.f32 %v2844_v14, %v2533_v60  ;;  %v1635_v60 = vpop.xlane.xlu1 %1634 }
 0x302   : > { %v2534_v46 = vpop.f32.mrb[4].mxu1 }
 0x303   : > { %v2535_v47 = vpop.f32.mrb[5].mxu1 }
 0x304   : > { %v2536_v30 = vadd.f32 %v2535_v47, %v2534_v46  ;;  %v2537_v32 = vpop.f32.mrb[6].mxu1  ;;  %2055 = vxpose.xlu0.b32.cont [2/16] %v1991_v16, 128  ;;  %v1620_v16 = vpop.xlane.xlu0 %1619 }
 0x305   : > { %v2538_v50 = vpop.f32.mrb[7].mxu1  ;;  %2871 = vrcp.f32 %v1620_v16 }
 0x306   : > { %v1992_v34 = vmul.f32 %v2846_v48, %v2536_v30  ;;  %v2539_v35 = vadd.f32 %v2538_v50, %v2537_v32  ;;  %v2866_v30 = vpop.eup %2865  ;;  %2873 = vrcp.f32 %v3555_v38 }
 0x307   : > { %2875 = vrcp.f32 %v3557_v10 }
 0x308   : > { %2056 = vxpose.xlu0.b32.cont [3/16] %v1992_v34, 128  ;;  %v1993_v36 = vmul.f32 %v2848_v33, %v2539_v35  ;;  %v1638_v34 = vpop.xlane.xlu1 %1637  ;;  %v2868_v35 = vpop.eup %2867  ;;  %2877 = vrcp.f32 %v1629_v40 }
 0x309   : > { %2879 = vrcp.f32 %v1632_v43 }
 0x30a   : > { %v2540_v1 = vpop.f32.mrb[8].mxu1  ;;  %2881 = vrcp.f32 %v1635_v60 }
 0x30b   : > { %v2541_v41 = vpop.f32.mrb[9].mxu1  ;;  %2883 = vrcp.f32 %v1638_v34 }
 0x30c   : > { %v2542_v0 = vadd.f32 %v2541_v41, %v2540_v1  ;;  %v2543_v2 = vpop.f32.mrb[10].mxu1  ;;  %2057 = vxpose.xlu0.b32.cont [4/16] %v1993_v36, 128 }
 0x30d   : > { %v2544_v51 = vpop.f32.mrb[11].mxu1 }
 0x30e   : > { %v1994_v7 = vmul.f32 %v2850_v3, %v2542_v0  ;;  %v2545_v18 = vadd.f32 %v2544_v51, %v2543_v2  ;;  %v2870_v0 = vpop.eup %2869  ;;  %v1641_v3 = vpop.xlane.xlu1 %1640 }
 0x30f   : > { %2885 = vrcp.f32 %v1641_v3 }
 0x310   : > { %2058 = vxpose.xlu0.b32.cont [5/16] %v1994_v7, 128  ;;  %v1995_v5 = vmul.f32 %v2852_v19, %v2545_v18  ;;  %v2872_v7 = vpop.eup %2871 }
 0x311   : > { %v2874_v61 = vpop.eup %2873 }
 0x312   : > { %v2546_v20 = vpop.f32.mrb[12].mxu1 }
 0x313   : > { %v2547_v22 = vpop.f32.mrb[13].mxu1 }
 0x314   : > { %v2548_v52 = vadd.f32 %v2547_v22, %v2546_v20  ;;  %v2549_v44 = vpop.f32.mrb[14].mxu1  ;;  %2059 = vxpose.xlu0.b32.cont [6/16] %v1995_v5, 128  ;;  %v1644_v20 = vpop.xlane.xlu1 %1643 }
 0x315   : > { %v2550_v8 = vpop.f32.mrb[15].mxu1  ;;  %2887 = vrcp.f32 %v1644_v20 }
 0x316   : > { %v1996_v37 = vmul.f32 %v2854_v53, %v2548_v52  ;;  %v2551_v54 = vadd.f32 %v2550_v8, %v2549_v44  ;;  %v2876_v8 = vpop.eup %2875 }
 0x318   : > { %2060 = vxpose.xlu0.b32.cont [7/16] %v1996_v37, 128  ;;  %v1997_v23 = vmul.f32 %v2856_v11, %v2551_v54  ;;  %v1647_v37 = vpop.xlane.xlu1 %1646 }
 0x319   : > { %2889 = vrcp.f32 %v1647_v37 }
 0x31a   : > { %v2552_v63 = vpop.f32.mrb[16].mxu1 }
 0x31b   : > { %v2553_v39 = vpop.f32.mrb[17].mxu1 }
 0x31c   : > { %v2554_v15 = vadd.f32 %v2553_v39, %v2552_v63  ;;  %v2555_v21 = vpop.f32.mrb[18].mxu1  ;;  %2061 = vxpose.xlu0.b32.cont [8/16] %v1997_v23, 128  ;;  %v2878_v63 = vpop.eup %2877 }
 0x31d   : > { %v2556_v28 = vpop.f32.mrb[19].mxu1 }
 0x31e   : > { %v1998_v42 = vmul.f32 %v2858_v55, %v2554_v15  ;;  %v2557_v12 = vadd.f32 %v2556_v28, %v2555_v21  ;;  %v1650_v55 = vpop.xlane.xlu1 %1649  ;;  %v2880_v28 = vpop.eup %2879 }
 0x31f   : > { %2891 = vrcp.f32 %v1650_v55 }
 0x320   : > { %2062 = vxpose.xlu0.b32.cont [9/16] %v1998_v42, 128  ;;  %v1999_v45 = vmul.f32 %v2860_v13, %v2557_v12 }
 0x322   : > { %v2558_v49 = vpop.f32.mrb[20].mxu1 }
 0x323   : > { %v2559_v9 = vpop.f32.mrb[21].mxu1 }
 0x324   : > { %v2560_v58 = vadd.f32 %v2559_v9, %v2558_v49  ;;  %v2561_v24 = vpop.f32.mrb[22].mxu1  ;;  %2063 = vxpose.xlu0.b32.cont [10/16] %v1999_v45, 128  ;;  %v2882_v45 = vpop.eup %2881 }
 0x325   : > { %v2562_v59 = vpop.f32.mrb[23].mxu1  ;;  %v1653_v9 = vpop.xlane.xlu1 %1652 }
 0x326   : > { %v2000_v26 = vmul.f32 %v2862_v25, %v2560_v58  ;;  %v2563_v31 = vadd.f32 %v2562_v59, %v2561_v24  ;;  %v2884_v24 = vpop.eup %2883  ;;  %2893 = vrcp.f32 %v1653_v9  ;;  %v3580_v9 = vld [vmem:[%s3571_s8 + $0x28] sm:$0xff] }
 0x327   : > { %v2886_v60 = vpop.eup %2885 }
 0x328   : > { %2064 = vxpose.xlu0.b32.cont [11/16] %v2000_v26, 128  ;;  %v2001_v62 = vmul.f32 %v2864_v27, %v2563_v31  ;;  %v2888_v16 = vpop.eup %2887 }
 0x329   : > { %v1656_v26 = vpop.xlane.xlu1 %1655  ;;  %v2890_v34 = vpop.eup %2889 }
 0x32a   : > { %v2564_v14 = vpop.f32.mrb[24].mxu1  ;;  %2895 = vrcp.f32 %v1656_v26  ;;  %v2034_v26 = vld [vmem:[%s3571_s8 + $0x60] sm:$0xff] }
 0x32b   : > { %v2565_v29 = vpop.f32.mrb[25].mxu1 }
 0x32c   : > { %v2566_v46 = vadd.f32 %v2565_v29, %v2564_v14  ;;  %v2567_v47 = vpop.f32.mrb[26].mxu1  ;;  %2065 = vxpose.xlu0.b32.cont [12/16] %v2001_v62, 128 }
 0x32d   : > { %v2568_v32 = vpop.f32.mrb[27].mxu1 }
 0x32e   : > { %v2002_v48 = vmul.f32 %v2866_v30, %v2566_v46  ;;  %v2569_v50 = vadd.f32 %v2568_v32, %v2567_v47  ;;  %v1659_v46 = vpop.xlane.xlu1 %1658 }
 0x32f   : > { %2897 = vrcp.f32 %v1659_v46  ;;  %v2042_v46 = vld [vmem:[%s3571_s8 + $0xa0] sm:$0xff] }
 0x330   : > { %2066 = vxpose.xlu0.b32.cont [13/16] %v2002_v48, 128  ;;  %v2003_v6 = vmul.f32 %v2868_v35, %v2569_v50 }
 0x332   : > { %v2570_v33 = vpop.f32.mrb[28].mxu1 }
 0x333   : > { %v2571_v36 = vpop.f32.mrb[29].mxu1 }
 0x334   : > { %v2572_v1 = vadd.f32 %v2571_v36, %v2570_v33  ;;  %v2573_v41 = vpop.f32.mrb[30].mxu1  ;;  %2067 = vxpose.xlu0.b32.cont [14/16] %v2003_v6, 128  ;;  %v1662_v36 = vpop.xlane.xlu1 %1661 }
 0x335   : > { %v2574_v2 = vpop.f32.mrb[31].mxu1  ;;  %2899 = vrcp.f32 %v1662_v36  ;;  %v3635_v36 = vld [vmem:[%s3571_s8 + $0xe8] sm:$0xff] }
 0x336   : > { %v2004_v51 = vmul.f32 %v2870_v0, %v2572_v1  ;;  %v2575_v4 = vadd.f32 %v2574_v2, %v2573_v41  ;;  %v2892_v1 = vpop.eup %2891 }
 0x338   : > { %2068 = vxpose.xlu0.b32.cont [15/16] %v2004_v51, 128  ;;  %v2005_v18 = vmul.f32 %v2872_v7, %v2575_v4  ;;  %v2894_v4 = vpop.eup %2893 }
 0x339   : > { %v2896_v20 = vpop.eup %2895 }
 0x33a   : > { %v2576_v19 = vpop.f32.mrb[32].mxu1 }
 0x33b   : > { %v2577_v5 = vpop.f32.mrb[33].mxu1 }
 0x33c   : > { %v2578_v22 = vadd.f32 %v2577_v5, %v2576_v19  ;;  %v2579_v38 = vpop.f32.mrb[34].mxu1  ;;  %2069 = vxpose.xlu0.b32.end [16/16] %v2005_v18, 128  ;;  %v1665_v18 = vpop.xlane.xlu1 %1664 }
 0x33d   : > { %v2580_v52 = vpop.f32.mrb[35].mxu1  ;;  %2901 = vrcp.f32 %v1665_v18 }
 0x33e   : > { %v2581_v44 = vadd.f32 %v2580_v52, %v2579_v38  ;;  %v2006_v53 = vmul.f32 %v2874_v61, %v2578_v22 }
 0x340   : > { %2086 = vxpose.xlu1.b32.start [1/16] %v2006_v53, 128  ;;  %v2007_v54 = vmul.f32 %v2876_v8, %v2581_v44  ;;  %v1668_v52 = vpop.xlane.xlu1 %1667  ;;  %v2898_v8 = vpop.eup %2897 }
 0x341   : > { %2903 = vrcp.f32 %v1668_v52 }
 0x342   : > { %v2582_v10 = vpop.f32.mrb[36].mxu1 }
 0x343   : > { %v2583_v11 = vpop.f32.mrb[37].mxu1 }
 0x344   : > { %v2584_v56 = vadd.f32 %v2583_v11, %v2582_v10  ;;  %v2585_v23 = vpop.f32.mrb[38].mxu1  ;;  %2087 = vxpose.xlu1.b32.cont [2/16] %v2007_v54, 128  ;;  %v2900_v11 = vpop.eup %2899 }
 0x345   : > { %v2586_v39 = vpop.f32.mrb[39].mxu1 }
 0x346   : > { %v2008_v15 = vmul.f32 %v2878_v63, %v2584_v56  ;;  %v2587_v21 = vadd.f32 %v2586_v39, %v2585_v23 }
 0x348   : > { %2088 = vxpose.xlu1.b32.cont [3/16] %v2008_v15, 128  ;;  %v2009_v40 = vmul.f32 %v2880_v28, %v2587_v21  ;;  %v2902_v21 = vpop.eup %2901 }
 0x34a   : > { %v2588_v42 = vpop.f32.mrb[40].mxu1 }
 0x34b   : > { %v2589_v12 = vpop.f32.mrb[41].mxu1 }
 0x34c   : > { %v2590_v17 = vadd.f32 %v2589_v12, %v2588_v42  ;;  %v2591_v13 = vpop.f32.mrb[42].mxu1  ;;  %2089 = vxpose.xlu1.b32.cont [4/16] %v2009_v40, 128  ;;  %v2904_v42 = vpop.eup %2903 }
 0x34d   : > { %v2592_v49 = vpop.f32.mrb[43].mxu1 }
 0x34e   : > { %v2010_v43 = vmul.f32 %v2882_v45, %v2590_v17  ;;  %v2593_v58 = vadd.f32 %v2592_v49, %v2591_v13  ;;  %v2022_v17 = vld [vmem:[%s3571_s8] sm:$0xff]  ;;  %v2024_v13 = vld [vmem:[%s3571_s8 + $0x10] sm:$0xff]  ;;  %v3576_v45 = vld [vmem:[%s3571_s8 + $0x18] sm:$0xff] }
 0x34f   : > { %v2026_v49 = vld [vmem:[%s3571_s8 + $0x20] sm:$0xff] }
 0x350   : > { %2090 = vxpose.xlu1.b32.cont [5/16] %v2010_v43, 128  ;;  %v2011_v25 = vmul.f32 %v2884_v24, %v2593_v58  ;;  %v2028_v43 = vld [vmem:[%s3571_s8 + $0x30] sm:$0xff]  ;;  %v3584_v58 = vld [vmem:[%s3571_s8 + $0x38] sm:$0xff]  ;;  %v2030_v24 = vld [vmem:[%s3571_s8 + $0x40] sm:$0xff] }
 0x352   : > { %v2594_v59 = vpop.f32.mrb[44].mxu1 }
 0x353   : > { %v2595_v57 = vpop.f32.mrb[45].mxu1 }
 0x354   : > { %v2596_v31 = vadd.f32 %v2595_v57, %v2594_v59  ;;  %v2597_v27 = vpop.f32.mrb[46].mxu1  ;;  %2091 = vxpose.xlu1.b32.cont [6/16] %v2011_v25, 128  ;;  %v3588_v25 = vld [vmem:[%s3571_s8 + $0x48] sm:$0xff]  ;;  %v2032_v59 = vld [vmem:[%s3571_s8 + $0x50] sm:$0xff]  ;;  %v3592_v57 = vld [vmem:[%s3571_s8 + $0x58] sm:$0xff] }
 0x355   : > { %v2598_v62 = vpop.f32.mrb[47].mxu1 }
 0x356   : > { %v2012_v14 = vmul.f32 %v2886_v60, %v2596_v31  ;;  %v2599_v29 = vadd.f32 %v2598_v62, %v2597_v27  ;;  %v3596_v31 = vld [vmem:[%s3571_s8 + $0x68] sm:$0xff]  ;;  %v2036_v27 = vld [vmem:[%s3571_s8 + $0x70] sm:$0xff]  ;;  %v3600_v60 = vld [vmem:[%s3571_s8 + $0x78] sm:$0xff] }
 0x357   : > { %v2038_v62 = vld [vmem:[%s3571_s8 + $0x80] sm:$0xff] }
 0x358   : > { %2092 = vxpose.xlu1.b32.cont [7/16] %v2012_v14, 128  ;;  %v2013_v47 = vmul.f32 %v2888_v16, %v2599_v29  ;;  %v3604_v14 = vld [vmem:[%s3571_s8 + $0x88] sm:$0xff]  ;;  %v2040_v29 = vld [vmem:[%s3571_s8 + $0x90] sm:$0xff]  ;;  %v3608_v16 = vld [vmem:[%s3571_s8 + $0x98] sm:$0xff] }
 0x35a   : > { %v2600_v30 = vpop.f32.mrb[48].mxu1 }
 0x35b   : > { %v2601_v32 = vpop.f32.mrb[49].mxu1 }
 0x35c   : > { %v2602_v48 = vadd.f32 %v2601_v32, %v2600_v30  ;;  %v2603_v50 = vpop.f32.mrb[50].mxu1  ;;  %2093 = vxpose.xlu1.b32.cont [8/16] %v2013_v47, 128  ;;  %v3612_v47 = vld [vmem:[%s3571_s8 + $0xa8] sm:$0xff]  ;;  %v2044_v30 = vld [vmem:[%s3571_s8 + $0xb0] sm:$0xff]  ;;  %v3616_v32 = vld [vmem:[%s3571_s8 + $0xb8] sm:$0xff] }
 0x35d   : > { %v2604_v35 = vpop.f32.mrb[51].mxu1 }
 0x35e   : > { %v2014_v6 = vmul.f32 %v2890_v34, %v2602_v48  ;;  %v2605_v33 = vadd.f32 %v2604_v35, %v2603_v50  ;;  %v2046_v48 = vld [vmem:[%s3571_s8 + $0xc0] sm:$0xff]  ;;  %v3620_v50 = vld [vmem:[%s3571_s8 + $0xc8] sm:$0xff]  ;;  %v2048_v34 = vld [vmem:[%s3571_s8 + $0xd0] sm:$0xff] }
 0x35f   : > { %v3624_v35 = vld [vmem:[%s3571_s8 + $0xd8] sm:$0xff] }
 0x360   : > { %2094 = vxpose.xlu1.b32.cont [9/16] %v2014_v6, 128  ;;  %v2015_v41 = vmul.f32 %v2892_v1, %v2605_v33  ;;  %v2050_v6 = vld [vmem:[%s3571_s8 + $0xe0] sm:$0xff]  ;;  %v2052_v1 = vld [vmem:[%s3571_s8 + $0xf0] sm:$0xff] }
 0x362   : > { %v2606_v0 = vpop.f32.mrb[52].mxu1 }
 0x363   : > { %v2607_v2 = vpop.f32.mrb[53].mxu1 }
 0x364   : > { %v2608_v3 = vadd.f32 %v2607_v2, %v2606_v0  ;;  %v2609_v51 = vpop.f32.mrb[54].mxu1  ;;  %2095 = vxpose.xlu1.b32.cont [10/16] %v2015_v41, 128  ;;  %v3639_v41 = vld [vmem:[%s3571_s8 + $0xf8] sm:$0xff]  ;;  %v2023_v2 = vld [vmem:[%s3571_s8 + $0x8] sm:$0xff] }
 0x365   : > { %v2610_v7 = vpop.f32.mrb[55].mxu1 }
 0x366   : > { %v2016_v19 = vmul.f32 %v2894_v4, %v2608_v3  ;;  %v2611_v5 = vadd.f32 %v2610_v7, %v2609_v51 }
 0x368   : > { %2096 = vxpose.xlu1.b32.cont [11/16] %v2016_v19, 128  ;;  %v2017_v22 = vmul.f32 %v2896_v20, %v2611_v5 }
 0x36a   : > { %v2612_v38 = vpop.f32.mrb[56].mxu1 }
 0x36b   : > { %v2613_v61 = vpop.f32.mrb[57].mxu1 }
 0x36c   : > { %v2614_v44 = vadd.f32 %v2613_v61, %v2612_v38  ;;  %v2615_v53 = vpop.f32.mrb[58].mxu1  ;;  %2097 = vxpose.xlu1.b32.cont [12/16] %v2017_v22, 128 }
 0x36d   : > { %v2616_v37 = vpop.f32.mrb[59].mxu1 }
 0x36e   : > { %v2018_v54 = vmul.f32 %v2898_v8, %v2614_v44  ;;  %v2617_v10 = vadd.f32 %v2616_v37, %v2615_v53 }
 0x370   : > { %2098 = vxpose.xlu1.b32.cont [13/16] %v2018_v54, 128  ;;  %v2019_v56 = vmul.f32 %v2900_v11, %v2617_v10 }
 0x372   : > { %v2618_v23 = vpop.f32.mrb[60].mxu1 }
 0x373   : > { %v2619_v63 = vpop.f32.mrb[61].mxu1 }
 0x374   : > { %v2620_v39 = vadd.f32 %v2619_v63, %v2618_v23  ;;  %v2621_v15 = vpop.f32.mrb[62].mxu1  ;;  %2099 = vxpose.xlu1.b32.cont [14/16] %v2019_v56, 128 }
 0x375   : > { %v2622_v55 = vpop.f32.mrb[63].mxu1 }
 0x376   : > { %v2020_v28 = vmul.f32 %v2902_v21, %v2620_v39  ;;  %v2623_v40 = vadd.f32 %v2622_v55, %v2621_v15 }
 0x378   : > { %2100 = vxpose.xlu1.b32.cont [15/16] %v2020_v28, 128  ;;  %v2021_v12 = vmul.f32 %v2904_v42, %v2623_v40 }
 0x37c   : > { %2101 = vxpose.xlu1.b32.end [16/16] %v2021_v12, 128 }
 0x380   : > { %v2070_v33 = vpop.trf.xlu0 }
 0x381   : > { %v2118_v0 = vadd.f32 %v2070_v33, %v2022_v17 }
 0x383   : > { %2150 = vst [vmem:[%s3632_s11] sm:$0xff] %v2118_v0 }
 0x384   : > { %v2071_v3 = vpop.trf.xlu0 }
 0x385   : > { %v2120_v51 = vadd.f32 %v2071_v3, %v2024_v13 }
 0x387   : > { %2152 = vst [vmem:[%s3632_s11 + $0x10] sm:$0xff] %v2120_v51 }
 0x388   : > { %v2072_v4 = vpop.trf.xlu0 }
 0x389   : > { %v2122_v7 = vadd.f32 %v2072_v4, %v2026_v49 }
 0x38b   : > { %2154 = vst [vmem:[%s3632_s11 + $0x20] sm:$0xff] %v2122_v7 }
 0x38c   : > { %v2073_v18 = vpop.trf.xlu0 }
 0x38d   : > { %v2124_v19 = vadd.f32 %v2073_v18, %v2028_v43 }
 0x38f   : > { %2156 = vst [vmem:[%s3632_s11 + $0x30] sm:$0xff] %v2124_v19 }
 0x390   : > { %v2074_v5 = vpop.trf.xlu0 }
 0x391   : > { %v2126_v20 = vadd.f32 %v2074_v5, %v2030_v24 }
 0x393   : > { %2158 = vst [vmem:[%s3632_s11 + $0x40] sm:$0xff] %v2126_v20 }
 0x394   : > { %v2075_v22 = vpop.trf.xlu0 }
 0x395   : > { %v2128_v38 = vadd.f32 %v2075_v22, %v2032_v59 }
 0x397   : > { %2160 = vst [vmem:[%s3632_s11 + $0x50] sm:$0xff] %v2128_v38 }
 0x398   : > { %v2076_v61 = vpop.trf.xlu0 }
 0x399   : > { %v2130_v52 = vadd.f32 %v2076_v61, %v2034_v26 }
 0x39b   : > { %2162 = vst [vmem:[%s3632_s11 + $0x60] sm:$0xff] %v2130_v52 }
 0x39c   : > { %v2077_v44 = vpop.trf.xlu0 }
 0x39d   : > { %v2132_v53 = vadd.f32 %v2077_v44, %v2036_v27 }
 0x39f   : > { %2164 = vst [vmem:[%s3632_s11 + $0x70] sm:$0xff] %v2132_v53 }
 0x3a0   : > { %v2078_v8 = vpop.trf.xlu0 }
 0x3a1   : > { %v2134_v37 = vadd.f32 %v2078_v8, %v2038_v62 }
 0x3a3   : > { %2166 = vst [vmem:[%s3632_s11 + $0x80] sm:$0xff] %v2134_v37 }
 0x3a4   : > { %v2079_v54 = vpop.trf.xlu0 }
 0x3a5   : > { %v2136_v10 = vadd.f32 %v2079_v54, %v2040_v29 }
 0x3a7   : > { %2168 = vst [vmem:[%s3632_s11 + $0x90] sm:$0xff] %v2136_v10 }
 0x3a8   : > { %v2080_v11 = vpop.trf.xlu0 }
 0x3a9   : > { %v2138_v56 = vadd.f32 %v2080_v11, %v2042_v46 }
 0x3ab   : > { %2170 = vst [vmem:[%s3632_s11 + $0xa0] sm:$0xff] %v2138_v56 }
 0x3ac   : > { %v2081_v23 = vpop.trf.xlu0 }
 0x3ad   : > { %v2140_v63 = vadd.f32 %v2081_v23, %v2044_v30 }
 0x3af   : > { %2172 = vst [vmem:[%s3632_s11 + $0xb0] sm:$0xff] %v2140_v63 }
 0x3b0   : > { %v2082_v39 = vpop.trf.xlu0 }
 0x3b1   : > { %v2142_v15 = vadd.f32 %v2082_v39, %v2046_v48 }
 0x3b3   : > { %2174 = vst [vmem:[%s3632_s11 + $0xc0] sm:$0xff] %v2142_v15 }
 0x3b4   : > { %v2083_v21 = vpop.trf.xlu0 }
 0x3b5   : > { %v2144_v55 = vadd.f32 %v2083_v21, %v2048_v34 }
 0x3b7   : > { %2176 = vst [vmem:[%s3632_s11 + $0xd0] sm:$0xff] %v2144_v55 }
 0x3b8   : > { %v2084_v28 = vpop.trf.xlu0 }
 0x3b9   : > { %v2146_v40 = vadd.f32 %v2084_v28, %v2050_v6 }
 0x3bb   : > { %2178 = vst [vmem:[%s3632_s11 + $0xe0] sm:$0xff] %v2146_v40 }
 0x3bc   : > { %v2085_v42 = vpop.trf.xlu0 }
 0x3bd   : > { %v2148_v12 = vadd.f32 %v2085_v42, %v2052_v1 }
 0x3bf   : > { %2180 = vst [vmem:[%s3632_s11 + $0xf0] sm:$0xff] %v2148_v12 }
 0x3c0   : > { %v2102_v17 = vpop.trf.xlu1 }
 0x3c1   : > { %v2119_v13 = vadd.f32 %v2102_v17, %v2023_v2 }
 0x3c3   : > { %2151 = vst [vmem:[%s3632_s11 + $0x8] sm:$0xff] %v2119_v13 }
 0x3c4   : > { %v2103_v49 = vpop.trf.xlu1 }
 0x3c5   : > { %v2121_v43 = vadd.f32 %v2103_v49, %v3576_v45 }
 0x3c7   : > { %2153 = vst [vmem:[%s3632_s11 + $0x18] sm:$0xff] %v2121_v43 }
 0x3c8   : > { %v2104_v24 = vpop.trf.xlu1 }
 0x3c9   : > { %v2123_v59 = vadd.f32 %v2104_v24, %v3580_v9 }
 0x3cb   : > { %2155 = vst [vmem:[%s3632_s11 + $0x28] sm:$0xff] %v2123_v59 }
 0x3cc   : > { %v2105_v26 = vpop.trf.xlu1 }
 0x3cd   : > { %v2125_v27 = vadd.f32 %v2105_v26, %v3584_v58 }
 0x3cf   : > { %2157 = vst [vmem:[%s3632_s11 + $0x38] sm:$0xff] %v2125_v27 }
 0x3d0   : > { %v2106_v62 = vpop.trf.xlu1 }
 0x3d1   : > { %v2127_v29 = vadd.f32 %v2106_v62, %v3588_v25 }
 0x3d3   : > { %2159 = vst [vmem:[%s3632_s11 + $0x48] sm:$0xff] %v2127_v29 }
 0x3d4   : > { %v2107_v46 = vpop.trf.xlu1 }
 0x3d5   : > { %v2129_v45 = vadd.f32 %v2107_v46, %v3592_v57 }
 0x3d7   : > { %2161 = vst [vmem:[%s3632_s11 + $0x58] sm:$0xff] %v2129_v45 }
 0x3d8   : > { %v2108_v30 = vpop.trf.xlu1 }
 0x3d9   : > { %v2131_v9 = vadd.f32 %v2108_v30, %v3596_v31 }
 0x3db   : > { %2163 = vst [vmem:[%s3632_s11 + $0x68] sm:$0xff] %v2131_v9 }
 0x3dc   : > { %v2109_v48 = vpop.trf.xlu1 }
 0x3dd   : > { %v2133_v58 = vadd.f32 %v2109_v48, %v3600_v60 }
 0x3df   : > { %2165 = vst [vmem:[%s3632_s11 + $0x78] sm:$0xff] %v2133_v58 }
 0x3e0   : > { %v2110_v34 = vpop.trf.xlu1 }
 0x3e1   : > { %v2135_v25 = vadd.f32 %v2110_v34, %v3604_v14 }
 0x3e3   : > { %2167 = vst [vmem:[%s3632_s11 + $0x88] sm:$0xff] %v2135_v25 }
 0x3e4   : > { %v2111_v6 = vpop.trf.xlu1 }
 0x3e5   : > { %v2137_v57 = vadd.f32 %v2111_v6, %v3608_v16 }
 0x3e7   : > { %2169 = vst [vmem:[%s3632_s11 + $0x98] sm:$0xff] %v2137_v57 }
 0x3e8   : > { %v2112_v33 = vpop.trf.xlu1 }
 0x3e9   : > { %v2139_v31 = vadd.f32 %v2112_v33, %v3612_v47 }
 0x3eb   : > { %2171 = vst [vmem:[%s3632_s11 + $0xa8] sm:$0xff] %v2139_v31 }
 0x3ec   : > { %v2113_v1 = vpop.trf.xlu1 }
 0x3ed   : > { %v2141_v60 = vadd.f32 %v2113_v1, %v3616_v32 }
 0x3ef   : > { %2173 = vst [vmem:[%s3632_s11 + $0xb8] sm:$0xff] %v2141_v60 }
 0x3f0   : > { %v2114_v0 = vpop.trf.xlu1 }
 0x3f1   : > { %v2143_v2 = vadd.f32 %v2114_v0, %v3620_v50 }
 0x3f3   : > { %2175 = vst [vmem:[%s3632_s11 + $0xc8] sm:$0xff] %v2143_v2 }
 0x3f4   : > { %v2115_v14 = vpop.trf.xlu1 }
 0x3f5   : > { %v2145_v3 = vadd.f32 %v2115_v14, %v3624_v35 }
 0x3f7   : > { %2177 = vst [vmem:[%s3632_s11 + $0xd8] sm:$0xff] %v2145_v3 }
 0x3f8   : > { %v2116_v16 = vpop.trf.xlu1 }
 0x3f9   : > { %v2147_v51 = vadd.f32 %v2116_v16, %v3635_v36 }
 0x3fb   : > { %2179 = vst [vmem:[%s3632_s11 + $0xe8] sm:$0xff] %v2147_v51 }
 0x3fc   : > { %v2117_v4 = vpop.trf.xlu1 }
 0x3fd   : > { %v2149_v47 = vadd.f32 %v2117_v4, %v3639_v41 }
 0x3ff   : > { %2181 = vst [vmem:[%s3632_s11 + $0xf8] sm:$0xff] %v2149_v47 }
 0x400 PF: > { %s14_s19 = sadd.s32 1, %s2943_s19   ;;  %s3749_s15 = smov %s2931_s16 }
 0x401   : > { %p11_p10 = scmp.ge.s32.totalorder %s14_s19, 4   ;;  %s3750_s16 = smov %s3009_s24 }
 0x402   : > { %s3751_s17 = smov %s2939_s18  ;;  %s3752_s18 = smov %s3754_s20 }
 0x403   :  { %13 = sbr.rel (!%p11_p10) target bundleno = 3 (0x3), region = 213 }

// kernel: nonlocal_block.2
= control target key start
LH: loop header
LB: loop body
LE: loop exit
PB: predicated region body
PF: predicated region fallthrough
CT: control target
= control target key end

     0   :  { %s3340_s24 = smov 0   ;;  %s3342_s25 = smov 0   ;;  %s4192_s0 = inlined_call_operand.vmem [shape: f32[2,128,256], index: 0, kind: input, shape index: {}]   ;;  %s4193_s1 = inlined_call_operand.vmem [shape: f32[32,128], index: 1, kind: input, shape index: {}]   ;;  %s4194_s2 = inlined_call_operand.vmem [shape: f32[128,32], index: 2, kind: input, shape index: {}]   ;;  %s4195_s3 = inlined_call_operand.vmem [shape: f32[128,1], index: 3, kind: input, shape index: {}]   ;;  %s4196_s4 = inlined_call_operand.vmem [shape: f32[128,1], index: 4, kind: input, shape index: {}]   ;;  %s4197_s5 = inlined_call_operand.vmem [shape: bf16[128,384], index: 5, kind: input, shape index: {}]   ;;  %s4198_s6 = inlined_call_operand.vmem [shape: f32[1,384], index: 6, kind: input, shape index: {}]   ;;  %s4199_s7 = inlined_call_operand.vmem [shape: bf16[2,256,384], index: 7, kind: output, shape index: {}]  }
   0x1   :  { %s3344_s26 = smov 0  }
   0x2 LB: > { %s29_s27 = sadd.s32 1, %s3293_s25  ;;  %p2620_p0 = scmp.ge.s32.totalorder %s3297_s26, 1  ;;  %s3297_s26 = sphi %s3344_s26, %s17_s26   ;;  %s3293_s25 = sphi %s3342_s25, %s4258_s25   ;;  %s3289_s24 = sphi %s3340_s24, %s4257_s24  }
   0x3   : > { %p31_p1 = scmp.ge.s32.totalorder %s29_s27, 2  ;;  %p251_p2 = scmp.lt.s32.totalorder %s3297_s26, 3 }
   0x5   : > { %s4260_s27 = smov (%p31_p1, %s29_s27), 0  ;;  %p252_p3 = pnand %p2620_p0, %p251_p2 }
   0x7   : > { %255 = sbr.rel (%p252_p3) target bundleno = 2027 (0x7eb), region = 48 }
   0xe   : > { %p288_p4 = scmp.lt.s32.totalorder %s3289_s24, 1  ;;  %v3497_v48 = vld [vmem:[%s4193_s1] sm:$0xff]  ;;  %vm510_vm0 = vcmask 261120   ;;  %vm1190_vm1 = vcmask 7168  }
   0xf   : > { %2947 = vmatprep.mubr.f32.mxu1 %v3497_v48 }
  0x10   : > { %s4262_s24 = smov (!%p288_p4, %s3289_s24), 1 }
  0x11   : > { %s2746_s28 = sshll.u32 %s4262_s24, 8  ;;  %s3183_s18 = smul.u32 384, %s4262_s24 }
  0x12   : > { %s3364_s8 = scalar_lea.vmem %s4192_s0, %s2746_s28 }
  0x13   : > { %v3367_v0 = vld [vmem:[%s3364_s8 + $0x20] sm:$0xff]  ;;  %v3370_v1 = vld [vmem:[%s3364_s8 + $0x28] sm:$0xff]  ;;  %v3381_v5 = vld [vmem:[%s3364_s8 + $0x30] sm:$0xff]  ;;  %s4023_s21 = scalar_lea.vmem %s4199_s7, %s3183_s18 }
  0x14   : > { %v3373_v2 = vld [vmem:[%s3364_s8] sm:$0xff]  ;;  %v347_v3 = vadd.f32 %v3370_v1, %v3367_v0  ;;  %v3378_v4 = vld [vmem:[%s3364_s8 + $0x8] sm:$0xff]  ;;  %v3384_v6 = vld [vmem:[%s3364_s8 + $0x38] sm:$0xff] }
  0x15   : > { %v341_v7 = vadd.f32 %v3378_v4, %v3373_v2  ;;  %v3389_v8 = vld [vmem:[%s3364_s8 + $0x10] sm:$0xff]  ;;  %v3392_v9 = vld [vmem:[%s3364_s8 + $0x18] sm:$0xff]  ;;  %v350_v10 = vadd.f32 %v3384_v6, %v3381_v5  ;;  %v3405_v14 = vld [vmem:[%s3364_s8 + $0x40] sm:$0xff] }
  0x16   : > { %348 = vadd.xlane.f32.xlu1 %v347_v3  ;;  %v344_v11 = vadd.f32 %v3392_v9, %v3389_v8  ;;  %v3399_v12 = vld [vmem:[%s3364_s8 + $0x50] sm:$0xff]  ;;  %v3402_v13 = vld [vmem:[%s3364_s8 + $0x58] sm:$0xff]  ;;  %v3408_v15 = vld [vmem:[%s3364_s8 + $0x48] sm:$0xff] }
  0x17   : > { %342 = vadd.xlane.f32.xlu0 %v341_v7  ;;  %v356_v16 = vadd.f32 %v3402_v13, %v3399_v12  ;;  %v353_v17 = vadd.f32 %v3408_v15, %v3405_v14  ;;  %v3415_v18 = vld [vmem:[%s3364_s8 + $0x70] sm:$0xff]  ;;  %v3418_v19 = vld [vmem:[%s3364_s8 + $0x78] sm:$0xff]  ;;  %v3421_v20 = vld [vmem:[%s3364_s8 + $0x60] sm:$0xff] }
  0x18   : > { %v3424_v21 = vld [vmem:[%s3364_s8 + $0x68] sm:$0xff]  ;;  %v3427_v22 = vld [vmem:[%s3364_s8 + $0x90] sm:$0xff]  ;;  %v3430_v23 = vld [vmem:[%s3364_s8 + $0x98] sm:$0xff]  ;;  %v362_v24 = vadd.f32 %v3418_v19, %v3415_v18 }
  0x19   : > { %v3435_v25 = vld [vmem:[%s3364_s8 + $0x80] sm:$0xff]  ;;  %v3438_v26 = vld [vmem:[%s3364_s8 + $0x88] sm:$0xff]  ;;  %v359_v27 = vadd.f32 %v3424_v21, %v3421_v20  ;;  %v368_v28 = vadd.f32 %v3430_v23, %v3427_v22  ;;  %v3447_v30 = vld [vmem:[%s3364_s8 + $0xb0] sm:$0xff] }
  0x1a   : > { %351 = vadd.xlane.f32.xlu1 %v350_v10  ;;  %v365_v29 = vadd.f32 %v3438_v26, %v3435_v25  ;;  %v3450_v31 = vld [vmem:[%s3364_s8 + $0xb8] sm:$0xff]  ;;  %v3453_v32 = vld [vmem:[%s3364_s8 + $0xa0] sm:$0xff]  ;;  %v3456_v33 = vld [vmem:[%s3364_s8 + $0xa8] sm:$0xff] }
  0x1b   : > { %345 = vadd.xlane.f32.xlu0 %v344_v11  ;;  %v374_v34 = vadd.f32 %v3450_v31, %v3447_v30  ;;  %v371_v35 = vadd.f32 %v3456_v33, %v3453_v32  ;;  %v3463_v36 = vld [vmem:[%s3364_s8 + $0xd0] sm:$0xff]  ;;  %v3466_v37 = vld [vmem:[%s3364_s8 + $0xd8] sm:$0xff]  ;;  %v3469_v38 = vld [vmem:[%s3364_s8 + $0xc0] sm:$0xff] }
  0x1c   : > { %v3472_v39 = vld [vmem:[%s3364_s8 + $0xc8] sm:$0xff]  ;;  %v380_v40 = vadd.f32 %v3466_v37, %v3463_v36  ;;  %v3479_v42 = vld [vmem:[%s3364_s8 + $0xf0] sm:$0xff]  ;;  %v3482_v43 = vld [vmem:[%s3364_s8 + $0xf8] sm:$0xff] }
  0x1d   : > { %v377_v41 = vadd.f32 %v3472_v39, %v3469_v38  ;;  %v3485_v44 = vld [vmem:[%s3364_s8 + $0xe0] sm:$0xff]  ;;  %v3488_v45 = vld [vmem:[%s3364_s8 + $0xe8] sm:$0xff]  ;;  %v386_v46 = vadd.f32 %v3482_v43, %v3479_v42 }
  0x1e   : > { %357 = vadd.xlane.f32.xlu1 %v356_v16  ;;  %v383_v47 = vadd.f32 %v3488_v45, %v3485_v44 }
  0x1f   : > { %354 = vadd.xlane.f32.xlu0 %v353_v17 }
  0x22   : > { %363 = vadd.xlane.f32.xlu1 %v362_v24 }
  0x23   : > { %360 = vadd.xlane.f32.xlu0 %v359_v27 }
  0x26   : > { %369 = vadd.xlane.f32.xlu1 %v368_v28 }
  0x27   : > { %366 = vadd.xlane.f32.xlu0 %v365_v29  ;;  %v3503_v29 = vld [vmem:[%s4193_s1 + $0x8] sm:$0xff] }
  0x2a   : > { %375 = vadd.xlane.f32.xlu1 %v374_v34  ;;  %v3508_v34 = vld [vmem:[%s4193_s1 + $0x10] sm:$0xff] }
  0x2b   : > { %372 = vadd.xlane.f32.xlu0 %v371_v35  ;;  %v3515_v35 = vld [vmem:[%s4193_s1 + $0x18] sm:$0xff] }
  0x2e   : > { %381 = vadd.xlane.f32.xlu1 %v380_v40  ;;  %v494_v40 = vld [vmem:[%s4194_s2] sm:$0xff] }
  0x2f   : > { %378 = vadd.xlane.f32.xlu0 %v377_v41  ;;  %3031 = vmatprep.mubr.msk.f32.mxu0 %vm510_vm0, %v494_v40  ;;  %v4200_v41 = vmov 0  }
  0x30   : > { %3210 = vset.pattern.permute.xlu1 %v4200_v41  ;;  %3209 = vset.pattern.permute.xlu0 %v4200_v41 }
  0x32   : > { %387 = vadd.xlane.f32.xlu1 %v386_v46 }
  0x33   : > { %384 = vadd.xlane.f32.xlu0 %v383_v47 }
  0xa3   : > { %v349_v49 = vpop.xlane.xlu1 %348 }
  0xa4   : > { %v343_v50 = vpop.xlane.xlu0 %342 }
  0xa7   : > { %v352_v51 = vpop.xlane.xlu1 %351 }
  0xa8   : > { %v346_v52 = vpop.xlane.xlu0 %345  ;;  %v3107_v54 = vpack.c.bf16 %v352_v51, %v349_v49 }
  0xa9   : > { %v3103_v53 = vpack.c.bf16 %v346_v52, %v343_v50 }
  0xab   : > { %3104 = vmatprep.subr.bf16.mxu1 %v3103_v53  ;;  %v358_v55 = vpop.xlane.xlu1 %357 }
  0xac   : > { %3106 = vmatpush3.bf16.msra.mxu1 %v3103_v53  ;;  %v355_v56 = vpop.xlane.xlu0 %354  ;;  %v3528_v53 = vld [vmem:[%s4194_s2 + $0x8] sm:$0xff] }
  0xad   : > { %3108 = vmatprep.subr.bf16.mxu1 %v3107_v54  ;;  %v3111_v57 = vpack.c.bf16 %v358_v55, %v355_v56  ;;  %v3542_v55 = vld [vmem:[%s4194_s2 + $0x18] sm:$0xff]  ;;  %v3547_v56 = vld [vmem:[%s4194_s2 + $0x20] sm:$0xff] }
  0xaf   : > { %v364_v58 = vpop.xlane.xlu1 %363 }
  0xb0   : > { %3110 = vmatpush3.bf16.msra.mxu1 %v3107_v54  ;;  %v361_v59 = vpop.xlane.xlu0 %360  ;;  %v3533_v54 = vld [vmem:[%s4194_s2 + $0x10] sm:$0xff] }
  0xb1   : > { %3112 = vmatprep.subr.bf16.mxu1 %v3111_v57  ;;  %v3115_v60 = vpack.c.bf16 %v364_v58, %v361_v59  ;;  %v3561_v58 = vld [vmem:[%s4194_s2 + $0x30] sm:$0xff]  ;;  %v3570_v59 = vld [vmem:[%s4194_s2 + $0x38] sm:$0xff] }
  0xb3   : > { %v370_v61 = vpop.xlane.xlu1 %369 }
  0xb4   : > { %3114 = vmatpush3.bf16.msra.mxu1 %v3111_v57  ;;  %v367_v62 = vpop.xlane.xlu0 %366  ;;  %v3556_v57 = vld [vmem:[%s4194_s2 + $0x28] sm:$0xff] }
  0xb5   : > { %3116 = vmatprep.subr.bf16.mxu1 %v3115_v60  ;;  %v3119_v63 = vpack.c.bf16 %v370_v61, %v367_v62  ;;  %v3584_v61 = vld [vmem:[%s4194_s2 + $0x48] sm:$0xff]  ;;  %v3589_v62 = vld [vmem:[%s4194_s2 + $0x50] sm:$0xff] }
  0xb7   : > { %v376_v3 = vpop.xlane.xlu1 %375 }
  0xb8   : > { %3118 = vmatpush3.bf16.msra.mxu1 %v3115_v60  ;;  %v373_v7 = vpop.xlane.xlu0 %372  ;;  %v3575_v60 = vld [vmem:[%s4194_s2 + $0x40] sm:$0xff] }
  0xb9   : > { %3120 = vmatprep.subr.bf16.mxu1 %v3119_v63  ;;  %v3123_v10 = vpack.c.bf16 %v376_v3, %v373_v7  ;;  %v3603_v3 = vld [vmem:[%s4194_s2 + $0x60] sm:$0xff]  ;;  %v3612_v7 = vld [vmem:[%s4194_s2 + $0x68] sm:$0xff] }
  0xbb   : > { %v382_v11 = vpop.xlane.xlu1 %381 }
  0xbc   : > { %3122 = vmatpush3.bf16.msra.mxu1 %v3119_v63  ;;  %v379_v16 = vpop.xlane.xlu0 %378  ;;  %v3598_v63 = vld [vmem:[%s4194_s2 + $0x58] sm:$0xff] }
  0xbd   : > { %3124 = vmatprep.subr.bf16.mxu1 %v3123_v10  ;;  %v3127_v17 = vpack.c.bf16 %v382_v11, %v379_v16  ;;  %v3626_v11 = vld [vmem:[%s4194_s2 + $0x78] sm:$0xff] }
  0xbe   : > { %4221 = vst [vmem:[#allocation5_spill] sm:$0xff] %v3626_v11 }
  0xbf   : > { %v388_v24 = vpop.xlane.xlu1 %387 }
  0xc0   : > { %3126 = vmatpush3.bf16.msra.mxu1 %v3123_v10  ;;  %v385_v27 = vpop.xlane.xlu0 %384  ;;  %v3617_v10 = vld [vmem:[%s4194_s2 + $0x70] sm:$0xff] }
  0xc1   : > { %3128 = vmatprep.subr.bf16.mxu1 %v3127_v17  ;;  %v3131_v28 = vpack.c.bf16 %v388_v24, %v385_v27  ;;  %4220 = vst [vmem:[#allocation4_spill] sm:$0xff] %v3617_v10 }
  0xc4   : > { %3130 = vmatpush3.bf16.msra.mxu1 %v3127_v17 }
  0xc5   : > { %3132 = vmatprep.subr.bf16.mxu1 %v3131_v28 }
  0xc8   : > { %3134 = vmatpush3.bf16.msra.mxu1 %v3131_v28 }
  0xcb   : > { %2948 = vmatmul.mubr.f32.vlgmr.msra.gmra.mrb[0].mxu1 %v3503_v29 }
  0xcc   : > { %2950 = vmatprep.mubr.f32.mxu1 %v3508_v34 }
  0xcf   : > { %2951 = vmatmul.mubr.f32.gmra.mrb[2].mxu1 %v3515_v35 }
  0xd0   : > { %2961 = vmatprep.mubr.msk.f32.mxu1 %vm510_vm0, %v494_v40 }
 0x19e   : > { %v2949_v46 = vpop.f32.mrb[0].mxu1 }
 0x19f   : > { %v475_v47 = vpop.f32.mrb[1].mxu1 }
 0x1a0   : > { %v3135_v49 = vpack.c.bf16 %v2949_v46, %v475_v47 }
 0x1a2   : > { %v2952_v50 = vpop.f32.mrb[2].mxu1  ;;  %3136 = vmatprep.subr.bf16.mxu1 %v3135_v49 }
 0x1a3   : > { %v485_v51 = vpop.f32.mrb[3].mxu1  ;;  %3138 = vmatpush3.bf16.msra.mxu1 %v3135_v49 }
 0x1a4   : > { %v3139_v52 = vpack.c.bf16 %v2952_v50, %v485_v51 }
 0x1a6   : > { %3140 = vmatprep.subr.bf16.mxu1 %v3139_v52 }
 0x1a7   : > { %3142 = vmatpush3.bf16.msra.mxu1 %v3139_v52 }
 0x1aa   : > { %2962 = vmatmul.mubr.msk.f32.vlgmr.msra.gmra.mrb[4].mxu1 %vm510_vm0, %v3528_v53 }
 0x1ab   : > { %2964 = vmatprep.mubr.msk.f32.mxu1 %vm510_vm0, %v3533_v54 }
 0x1ae   : > { %2965 = vmatmul.mubr.msk.f32.gmra.mrb[6].mxu1 %vm510_vm0, %v3542_v55 }
 0x1af   : > { %2967 = vmatprep.mubr.msk.f32.mxu1 %vm510_vm0, %v3547_v56 }
 0x1b2   : > { %2968 = vmatmul.mubr.msk.f32.gmra.mrb[8].mxu1 %vm510_vm0, %v3556_v57 }
 0x1b3   : > { %2970 = vmatprep.mubr.msk.f32.mxu1 %vm510_vm0, %v3561_v58 }
 0x1b6   : > { %2971 = vmatmul.mubr.msk.f32.gmra.mrb[10].mxu1 %vm510_vm0, %v3570_v59 }
 0x1b7   : > { %2973 = vmatprep.mubr.msk.f32.mxu1 %vm510_vm0, %v3575_v60 }
 0x1ba   : > { %2974 = vmatmul.mubr.msk.f32.gmra.mrb[12].mxu1 %vm510_vm0, %v3584_v61 }
 0x1bb   : > { %2976 = vmatprep.mubr.msk.f32.mxu1 %vm510_vm0, %v3589_v62 }
 0x1be   : > { %2977 = vmatmul.mubr.msk.f32.gmra.mrb[14].mxu1 %vm510_vm0, %v3598_v63 }
 0x1bf   : > { %2979 = vmatprep.mubr.msk.f32.mxu1 %vm510_vm0, %v3603_v3 }
 0x1c2   : > { %2980 = vmatmul.mubr.msk.f32.gmra.mrb[16].mxu1 %vm510_vm0, %v3612_v7 }
 0x1c3   : > { %2982 = vmatprep.mubr.msk.f32.mxu1 %vm510_vm0, %v3617_v10 }
 0x1c6   : > { %2983 = vmatmul.mubr.msk.f32.gmra.mrb[18].mxu1 %vm510_vm0, %v3626_v11 }
 0x1c7   : > { %3017 = vmatprep.mubr.f32.mxu1 %v3497_v48 }
 0x27d   : > { %v3631_v16 = vpop.f32.mrb[4].mxu1 }
 0x27e   : > { %4222 = vst [vmem:[#allocation6_spill] sm:$0xff] %v3631_v16  ;;  %711 = vperm.xlu1 %3210, %v3631_v16   ;;  %v3634_v17 = vpop.f32.mrb[5].mxu1 }
 0x27f   : > { %4223 = vst [vmem:[#allocation7_spill] sm:$0xff] %v3634_v17  ;;  %706 = vperm.xlu0 %3209, %v3634_v17  }
 0x281   : > { %v3637_v24 = vpop.f32.mrb[6].mxu1 }
 0x282   : > { %4224 = vst [vmem:[#allocation8_spill] sm:$0xff] %v3637_v24  ;;  %721 = vperm.xlu1 %3210, %v3637_v24   ;;  %v3640_v27 = vpop.f32.mrb[7].mxu1 }
 0x283   : > { %4225 = vst [vmem:[#allocation9_spill] sm:$0xff] %v3640_v27 }
 0x285   : > { %v3642_v28 = vpop.f32.mrb[8].mxu1 }
 0x286   : > { %4226 = vst [vmem:[#allocation10_spill] sm:$0xff] %v3642_v28  ;;  %716 = vperm.xlu1 %3210, %v3640_v27   ;;  %v3645_v40 = vpop.f32.mrb[9].mxu1 }
 0x287   : > { %4227 = vst [vmem:[#allocation11_spill] sm:$0xff] %v3645_v40 }
 0x289   : > { %v3647_v48 = vpop.f32.mrb[10].mxu1 }
 0x28a   : > { %4228 = vst [vmem:[#allocation12_spill] sm:$0xff] %v3647_v48  ;;  %731 = vperm.xlu1 %3210, %v3642_v28   ;;  %v3650_v46 = vpop.f32.mrb[11].mxu1 }
 0x28b   : > { %4229 = vst [vmem:[#allocation13_spill] sm:$0xff] %v3650_v46 }
 0x28d   : > { %v3652_v47 = vpop.f32.mrb[12].mxu1 }
 0x28e   : > { %4230 = vst [vmem:[#allocation14_spill] sm:$0xff] %v3652_v47  ;;  %726 = vperm.xlu1 %3210, %v3645_v40   ;;  %751 = vperm.xlu0 %3209, %v3652_v47   ;;  %v3656_v49 = vpop.f32.mrb[13].mxu1 }
 0x28f   : > { %4231 = vst [vmem:[#allocation15_spill] sm:$0xff] %v3656_v49 }
 0x291   : > { %v3658_v50 = vpop.f32.mrb[14].mxu1 }
 0x292   : > { %4232 = vst [vmem:[#allocation16_spill] sm:$0xff] %v3658_v50  ;;  %741 = vperm.xlu1 %3210, %v3647_v48   ;;  %761 = vperm.xlu0 %3209, %v3658_v50   ;;  %v3662_v51 = vpop.f32.mrb[15].mxu1 }
 0x293   : > { %4233 = vst [vmem:[#allocation17_spill] sm:$0xff] %v3662_v51 }
 0x295   : > { %v3664_v52 = vpop.f32.mrb[16].mxu1 }
 0x296   : > { %4234 = vst [vmem:[#allocation18_spill] sm:$0xff] %v3664_v52  ;;  %736 = vperm.xlu1 %3210, %v3650_v46   ;;  %771 = vperm.xlu0 %3209, %v3664_v52   ;;  %v3668_v41 = vpop.f32.mrb[17].mxu1 }
 0x297   : > { %4235 = vst [vmem:[#allocation19_spill] sm:$0xff] %v3668_v41 }
 0x299   : > { %v3670_v40 = vpop.f32.mrb[18].mxu1 }
 0x29a   : > { %4236 = vst [vmem:[#allocation20_spill] sm:$0xff] %v3670_v40  ;;  %746 = vperm.xlu1 %3210, %v3656_v49   ;;  %781 = vperm.xlu0 %3209, %v3670_v40   ;;  %v3674_v47 = vpop.f32.mrb[19].mxu1 }
 0x29b   : > { %4237 = vst [vmem:[#allocation21_spill] sm:$0xff] %v3674_v47 }
 0x29e   : > { %756 = vperm.xlu1 %3210, %v3662_v51  }
 0x2a2   : > { %766 = vperm.xlu1 %3210, %v3668_v41  }
 0x2a6   : > { %776 = vperm.xlu1 %3210, %v3674_v47  }
 0x2fd   : > { %v712_v50 = vpop.permute.xlu1 %711 }
 0x2fe   : > { %v786_v46 = vsub.f32 %v3389_v8, %v712_v50  ;;  %v787_v52 = vsub.f32 %v3392_v9, %v712_v50  ;;  %v707_v48 = vpop.permute.xlu0 %706 }
 0x2ff   : > { %v784_v28 = vsub.f32 %v3373_v2, %v707_v48  ;;  %v785_v49 = vsub.f32 %v3378_v4, %v707_v48 }
 0x300   : > { %v818_v27 = vmul.f32 %v786_v46, %v786_v46  ;;  %v819_v40 = vmul.f32 %v787_v52, %v787_v52 }
 0x301   : > { %v816_v24 = vmul.f32 %v784_v28, %v784_v28  ;;  %v817_v17 = vmul.f32 %v785_v49, %v785_v49  ;;  %v722_v16 = vpop.permute.xlu1 %721 }
 0x302   : > { %v790_v51 = vsub.f32 %v3381_v5, %v722_v16  ;;  %v791_v41 = vsub.f32 %v3384_v6, %v722_v16  ;;  %v851_v47 = vadd.f32 %v819_v40, %v818_v27 }
 0x303   : > { %v848_v11 = vadd.f32 %v817_v17, %v816_v24 }
 0x304   : > { %v822_v10 = vmul.f32 %v790_v51, %v790_v51  ;;  %v823_v8 = vmul.f32 %v791_v41, %v791_v41  ;;  %852 = vadd.xlane.f32.xlu0 %v851_v47 }
 0x305   : > { %v717_v9 = vpop.permute.xlu1 %716  ;;  %849 = vadd.xlane.f32.xlu1 %v848_v11 }
 0x306   : > { %v788_v2 = vsub.f32 %v3367_v0, %v717_v9  ;;  %v789_v4 = vsub.f32 %v3370_v1, %v717_v9  ;;  %v857_v48 = vadd.f32 %v823_v8, %v822_v10 }
 0x308   : > { %v820_v46 = vmul.f32 %v788_v2, %v788_v2  ;;  %v821_v28 = vmul.f32 %v789_v4, %v789_v4 }
 0x309   : > { %v732_v49 = vpop.permute.xlu1 %731  ;;  %858 = vadd.xlane.f32.xlu1 %v857_v48 }
 0x30a   : > { %v794_v5 = vsub.f32 %v3399_v12, %v732_v49  ;;  %v795_v6 = vsub.f32 %v3402_v13, %v732_v49  ;;  %v854_v16 = vadd.f32 %v821_v28, %v820_v46 }
 0x30c   : > { %v826_v17 = vmul.f32 %v794_v5, %v794_v5  ;;  %v827_v24 = vmul.f32 %v795_v6, %v795_v6  ;;  %855 = vadd.xlane.f32.xlu0 %v854_v16 }
 0x30d   : > { %v727_v41 = vpop.permute.xlu1 %726  ;;  %v752_v27 = vpop.permute.xlu0 %751 }
 0x30e   : > { %v792_v11 = vsub.f32 %v3405_v14, %v727_v41  ;;  %v793_v0 = vsub.f32 %v3408_v15, %v727_v41  ;;  %v863_v1 = vadd.f32 %v827_v24, %v826_v17  ;;  %v802_v51 = vsub.f32 %v3427_v22, %v752_v27 }
 0x30f   : > { %v803_v52 = vsub.f32 %v3430_v23, %v752_v27 }
 0x310   : > { %v824_v10 = vmul.f32 %v792_v11, %v792_v11  ;;  %v825_v40 = vmul.f32 %v793_v0, %v793_v0  ;;  %864 = vadd.xlane.f32.xlu1 %v863_v1  ;;  %v834_v28 = vmul.f32 %v802_v51, %v802_v51 }
 0x311   : > { %v742_v47 = vpop.permute.xlu1 %741  ;;  %v762_v50 = vpop.permute.xlu0 %761 }
 0x312   : > { %v798_v12 = vsub.f32 %v3415_v18, %v742_v47  ;;  %v799_v13 = vsub.f32 %v3418_v19, %v742_v47  ;;  %v860_v8 = vadd.f32 %v825_v40, %v824_v10  ;;  %v806_v15 = vsub.f32 %v3447_v30, %v762_v50 }
 0x313   : > { %v807_v4 = vsub.f32 %v3450_v31, %v762_v50  ;;  %v835_v19 = vmul.f32 %v803_v52, %v803_v52 }
 0x314   : > { %v830_v9 = vmul.f32 %v798_v12, %v798_v12  ;;  %v831_v2 = vmul.f32 %v799_v13, %v799_v13  ;;  %861 = vadd.xlane.f32.xlu0 %v860_v8  ;;  %v838_v6 = vmul.f32 %v806_v15, %v806_v15 }
 0x315   : > { %v737_v14 = vpop.permute.xlu1 %736  ;;  %v772_v18 = vpop.permute.xlu0 %771  ;;  %v839_v16 = vmul.f32 %v807_v4, %v807_v4 }
 0x316   : > { %v796_v48 = vsub.f32 %v3421_v20, %v737_v14  ;;  %v797_v46 = vsub.f32 %v3424_v21, %v737_v14  ;;  %v869_v49 = vadd.f32 %v831_v2, %v830_v9  ;;  %v810_v31 = vsub.f32 %v3463_v36, %v772_v18 }
 0x317   : > { %v811_v20 = vsub.f32 %v3466_v37, %v772_v18  ;;  %v875_v21 = vadd.f32 %v835_v19, %v834_v28 }
 0x318   : > { %v828_v22 = vmul.f32 %v796_v48, %v796_v48  ;;  %v829_v5 = vmul.f32 %v797_v46, %v797_v46  ;;  %870 = vadd.xlane.f32.xlu1 %v869_v49  ;;  %v842_v47 = vmul.f32 %v810_v31, %v810_v31 }
 0x319   : > { %v747_v23 = vpop.permute.xlu1 %746  ;;  %v782_v11 = vpop.permute.xlu0 %781 }
 0x31a   : > { %v800_v17 = vsub.f32 %v3435_v25, %v747_v23  ;;  %v801_v30 = vsub.f32 %v3438_v26, %v747_v23  ;;  %v866_v24 = vadd.f32 %v829_v5, %v828_v22  ;;  %v881_v25 = vadd.f32 %v839_v16, %v838_v6 }
 0x31b   : > { %v843_v26 = vmul.f32 %v811_v20, %v811_v20  ;;  %v814_v36 = vsub.f32 %v3479_v42, %v782_v11  ;;  %v815_v37 = vsub.f32 %v3482_v43, %v782_v11 }
 0x31c   : > { %v832_v41 = vmul.f32 %v800_v17, %v800_v17  ;;  %v833_v27 = vmul.f32 %v801_v30, %v801_v30  ;;  %867 = vadd.xlane.f32.xlu0 %v866_v24  ;;  %876 = vadd.xlane.f32.xlu1 %v875_v21 }
 0x31d   : > { %v757_v0 = vpop.permute.xlu1 %756  ;;  %v846_v8 = vmul.f32 %v814_v36, %v814_v36  ;;  %v887_v9 = vadd.f32 %v843_v26, %v842_v47 }
 0x31e   : > { %v804_v1 = vsub.f32 %v3453_v32, %v757_v0  ;;  %v805_v10 = vsub.f32 %v3456_v33, %v757_v0  ;;  %v872_v40 = vadd.f32 %v833_v27, %v832_v41  ;;  %v847_v33 = vmul.f32 %v815_v37, %v815_v37 }
 0x320   : > { %v836_v50 = vmul.f32 %v804_v1, %v804_v1  ;;  %v837_v12 = vmul.f32 %v805_v10, %v805_v10  ;;  %873 = vadd.xlane.f32.xlu0 %v872_v40  ;;  %882 = vadd.xlane.f32.xlu1 %v881_v25  ;;  %v893_v48 = vadd.f32 %v847_v33, %v846_v8 }
 0x321   : > { %v767_v13 = vpop.permute.xlu1 %766 }
 0x322   : > { %v808_v51 = vsub.f32 %v3469_v38, %v767_v13  ;;  %v809_v52 = vsub.f32 %v3472_v39, %v767_v13  ;;  %v878_v32 = vadd.f32 %v837_v12, %v836_v50  ;;  %v1158_v12 = vld [vmem:[%s4195_s3] sm:$0xff] }
 0x324   : > { %v840_v2 = vmul.f32 %v808_v51, %v808_v51  ;;  %v841_v14 = vmul.f32 %v809_v52, %v809_v52  ;;  %879 = vadd.xlane.f32.xlu0 %v878_v32  ;;  %888 = vadd.xlane.f32.xlu1 %v887_v9 }
 0x325   : > { %v777_v42 = vpop.permute.xlu1 %776 }
 0x326   : > { %v812_v43 = vsub.f32 %v3485_v44, %v777_v42  ;;  %v813_v15 = vsub.f32 %v3488_v45, %v777_v42  ;;  %v884_v4 = vadd.f32 %v841_v14, %v840_v2  ;;  %v1208_v2 = vld [vmem:[%s4196_s4 + $0x8] sm:$0xff]  ;;  %v1161_v42 = vld [vmem:[%s4195_s3 + $0x18] sm:$0xff] }
 0x328   : > { %v844_v46 = vmul.f32 %v812_v43, %v812_v43  ;;  %v845_v18 = vmul.f32 %v813_v15, %v813_v15  ;;  %885 = vadd.xlane.f32.xlu0 %v884_v4  ;;  %894 = vadd.xlane.f32.xlu1 %v893_v48  ;;  %v4241_v43 = vld [vmem:[#allocation6_spill] sm:$0xff]  ;;  %v1207_v4 = vld [vmem:[%s4196_s4] sm:$0xff] }
 0x329   : > { %v1160_v48 = vld [vmem:[%s4195_s3 + $0x10] sm:$0xff] }
 0x32a   : > { %v890_v38 = vadd.f32 %v845_v18, %v844_v46 }
 0x32c   : > { %891 = vadd.xlane.f32.xlu0 %v890_v38  ;;  %v4242_v38 = vld [vmem:[#allocation7_spill] sm:$0xff] }
 0x391   : > { %v853_v39 = vpop.xlane.xlu0 %852 }
 0x392   : > { %v850_v28 = vpop.xlane.xlu1 %849 }
 0x393   : > { %v3143_v19 = vpack.c.bf16 %v853_v39, %v850_v28 }
 0x395   : > { %3144 = vmatprep.subr.bf16.mxu1 %v3143_v19 }
 0x396   : > { %3146 = vmatpush3.bf16.msra.mxu1 %v3143_v19  ;;  %v859_v49 = vpop.xlane.xlu1 %858 }
 0x399   : > { %v856_v22 = vpop.xlane.xlu0 %855 }
 0x39a   : > { %v3147_v5 = vpack.c.bf16 %v859_v49, %v856_v22 }
 0x39c   : > { %3148 = vmatprep.subr.bf16.mxu1 %v3147_v5 }
 0x39d   : > { %3150 = vmatpush3.bf16.msra.mxu1 %v3147_v5  ;;  %v865_v44 = vpop.xlane.xlu1 %864 }
 0x3a1   : > { %v862_v45 = vpop.xlane.xlu0 %861 }
 0x3a2   : > { %v3151_v23 = vpack.c.bf16 %v865_v44, %v862_v45 }
 0x3a4   : > { %3152 = vmatprep.subr.bf16.mxu1 %v3151_v23 }
 0x3a5   : > { %3154 = vmatpush3.bf16.msra.mxu1 %v3151_v23  ;;  %v871_v6 = vpop.xlane.xlu1 %870  ;;  %v1210_v23 = vld [vmem:[%s4196_s4 + $0x18] sm:$0xff] }
 0x3a9   : > { %v868_v16 = vpop.xlane.xlu0 %867  ;;  %v877_v17 = vpop.xlane.xlu1 %876 }
 0x3aa   : > { %v3155_v30 = vpack.c.bf16 %v871_v6, %v868_v16  ;;  %v1163_v16 = vld [vmem:[%s4195_s3 + $0x28] sm:$0xff] }
 0x3ac   : > { %3156 = vmatprep.subr.bf16.mxu1 %v3155_v30 }
 0x3ad   : > { %v874_v31 = vpop.xlane.xlu0 %873  ;;  %3158 = vmatpush3.bf16.msra.mxu1 %v3155_v30  ;;  %v883_v20 = vpop.xlane.xlu1 %882 }
 0x3ae   : > { %v3159_v24 = vpack.c.bf16 %v877_v17, %v874_v31  ;;  %v4243_v17 = vld [vmem:[#allocation8_spill] sm:$0xff]  ;;  %v1209_v31 = vld [vmem:[%s4196_s4 + $0x10] sm:$0xff] }
 0x3b0   : > { %3160 = vmatprep.subr.bf16.mxu1 %v3159_v24 }
 0x3b1   : > { %v880_v21 = vpop.xlane.xlu0 %879  ;;  %3162 = vmatpush3.bf16.msra.mxu1 %v3159_v24  ;;  %v889_v27 = vpop.xlane.xlu1 %888 }
 0x3b2   : > { %v3163_v41 = vpack.c.bf16 %v883_v20, %v880_v21  ;;  %v1162_v20 = vld [vmem:[%s4195_s3 + $0x20] sm:$0xff] }
 0x3b4   : > { %3164 = vmatprep.subr.bf16.mxu1 %v3163_v41 }
 0x3b5   : > { %v886_v11 = vpop.xlane.xlu0 %885  ;;  %3166 = vmatpush3.bf16.msra.mxu1 %v3163_v41  ;;  %v895_v1 = vpop.xlane.xlu1 %894  ;;  %v4244_v41 = vld [vmem:[#allocation9_spill] sm:$0xff] }
 0x3b6   : > { %v3167_v0 = vpack.c.bf16 %v889_v27, %v886_v11 }
 0x3b8   : > { %3168 = vmatprep.subr.bf16.mxu1 %v3167_v0 }
 0x3b9   : > { %v892_v10 = vpop.xlane.xlu0 %891  ;;  %3170 = vmatpush3.bf16.msra.mxu1 %v3167_v0 }
 0x3ba   : > { %v3171_v40 = vpack.c.bf16 %v895_v1, %v892_v10 }
 0x3bc   : > { %3172 = vmatprep.subr.bf16.mxu1 %v3171_v40 }
 0x3bd   : > { %3174 = vmatpush3.bf16.msra.mxu1 %v3171_v40 }
 0x3c0   : > { %3018 = vmatmul.mubr.f32.vlgmr.msra.gmra.mrb[20].mxu1 %v3503_v29  ;;  %v4238_v29 = vld [vmem:[#allocation4_spill] sm:$0xff] }
 0x3c1   : > { %3020 = vmatprep.mubr.f32.mxu1 %v3508_v34  ;;  %v4239_v34 = vld [vmem:[#allocation5_spill] sm:$0xff] }
 0x3c4   : > { %3021 = vmatmul.mubr.f32.gmra.mrb[22].mxu1 %v3515_v35  ;;  %v4240_v35 = vmov 0  }
 0x493   : > { %v3019_v25 = vpop.f32.mrb[20].mxu1 }
 0x494   : > { %v978_v47 = vpop.f32.mrb[21].mxu1 }
 0x495   : > { %v3175_v26 = vpack.c.bf16 %v3019_v25, %v978_v47 }
 0x497   : > { %v3022_v36 = vpop.f32.mrb[22].mxu1  ;;  %3176 = vmatprep.subr.bf16.mxu0 %v3175_v26 }
 0x498   : > { %v988_v37 = vpop.f32.mrb[23].mxu1  ;;  %3178 = vmatpush3.bf16.msra.mxu0 %v3175_v26  ;;  %v1212_v26 = vld [vmem:[%s4196_s4 + $0x28] sm:$0xff] }
 0x499   : > { %v3179_v50 = vpack.c.bf16 %v3022_v36, %v988_v37  ;;  %v1165_v37 = vld [vmem:[%s4195_s3 + $0x38] sm:$0xff] }
 0x49b   : > { %3180 = vmatprep.subr.bf16.mxu0 %v3179_v50 }
 0x49c   : > { %3182 = vmatpush3.bf16.msra.mxu0 %v3179_v50 }
 0x49f   : > { %3032 = vmatmul.mubr.msk.f32.vlgmr.msra.gmra.mrb[0].mxu0 %vm510_vm0, %v3528_v53 }
 0x4a0   : > { %3034 = vmatprep.mubr.msk.f32.mxu0 %vm510_vm0, %v3533_v54 }
 0x4a3   : > { %3035 = vmatmul.mubr.msk.f32.gmra.mrb[2].mxu0 %vm510_vm0, %v3542_v55 }
 0x4a4   : > { %3037 = vmatprep.mubr.msk.f32.mxu0 %vm510_vm0, %v3547_v56 }
 0x4a7   : > { %3038 = vmatmul.mubr.msk.f32.gmra.mrb[4].mxu0 %vm510_vm0, %v3556_v57 }
 0x4a8   : > { %3040 = vmatprep.mubr.msk.f32.mxu0 %vm510_vm0, %v3561_v58 }
 0x4ab   : > { %3041 = vmatmul.mubr.msk.f32.gmra.mrb[6].mxu0 %vm510_vm0, %v3570_v59 }
 0x4ac   : > { %3043 = vmatprep.mubr.msk.f32.mxu0 %vm510_vm0, %v3575_v60 }
 0x4af   : > { %3044 = vmatmul.mubr.msk.f32.gmra.mrb[8].mxu0 %vm510_vm0, %v3584_v61 }
 0x4b0   : > { %3046 = vmatprep.mubr.msk.f32.mxu0 %vm510_vm0, %v3589_v62 }
 0x4b3   : > { %3047 = vmatmul.mubr.msk.f32.gmra.mrb[10].mxu0 %vm510_vm0, %v3598_v63 }
 0x4b4   : > { %3049 = vmatprep.mubr.msk.f32.mxu0 %vm510_vm0, %v3603_v3 }
 0x4b7   : > { %3050 = vmatmul.mubr.msk.f32.gmra.mrb[12].mxu0 %vm510_vm0, %v3612_v7  ;;  %v1159_v7 = vld [vmem:[%s4195_s3 + $0x8] sm:$0xff] }
 0x4b8   : > { %3052 = vmatprep.mubr.msk.f32.mxu0 %vm510_vm0, %v4238_v29  ;;  %v4245_v29 = vld [vmem:[#allocation10_spill] sm:$0xff] }
 0x4bb   : > { %3053 = vmatmul.mubr.msk.f32.gmra.mrb[14].mxu0 %vm510_vm0, %v4239_v34 }
 0x4bc   : > { %1821 = vmatprep.mubr.bf16.mxu0 %v4240_v35 }
 0x572   : > { %v3033_v53 = vpop.f32.mrb[0].mxu0 }
 0x573   : > { %v1069_v54 = vadd.f32 1e-05, %v3033_v53  ;;  %v1063_v55 = vpop.f32.mrb[1].mxu0  ;;  %v1211_v53 = vld [vmem:[%s4196_s4 + $0x20] sm:$0xff] }
 0x574   : > { %v1064_v56 = vadd.f32 1e-05, %v1063_v55 }
 0x575   : > { %3243 = vrsqrt.f32 %v1069_v54  ;;  %v1164_v54 = vld [vmem:[%s4195_s3 + $0x30] sm:$0xff] }
 0x576   : > { %3245 = vrsqrt.f32 %v1064_v56  ;;  %v3036_v57 = vpop.f32.mrb[2].mxu0 }
 0x577   : > { %v1079_v58 = vadd.f32 1e-05, %v3036_v57  ;;  %v1073_v59 = vpop.f32.mrb[3].mxu0 }
 0x578   : > { %v1074_v60 = vadd.f32 1e-05, %v1073_v59 }
 0x579   : > { %3247 = vrsqrt.f32 %v1079_v58  ;;  %v4246_v58 = vld [vmem:[#allocation11_spill] sm:$0xff] }
 0x57a   : > { %3249 = vrsqrt.f32 %v1074_v60  ;;  %v3039_v61 = vpop.f32.mrb[4].mxu0 }
 0x57b   : > { %v1089_v62 = vadd.f32 1e-05, %v3039_v61  ;;  %v1083_v63 = vpop.f32.mrb[5].mxu0 }
 0x57c   : > { %v1084_v3 = vadd.f32 1e-05, %v1083_v63 }
 0x57d   : > { %3251 = vrsqrt.f32 %v1089_v62 }
 0x57e   : > { %3253 = vrsqrt.f32 %v1084_v3  ;;  %v3042_v13 = vpop.f32.mrb[6].mxu0 }
 0x57f   : > { %v3244_v51 = vpop.eup %3243  ;;  %v1099_v52 = vadd.f32 1e-05, %v3042_v13  ;;  %v1093_v32 = vpop.f32.mrb[7].mxu0  ;;  %v1214_v13 = vld [vmem:[%s4196_s4 + $0x38] sm:$0xff] }
 0x580   : > { %v3246_v8 = vpop.eup %3245  ;;  %v1175_v33 = vmul.f32 %v3244_v51, %v1159_v7  ;;  %v1094_v9 = vadd.f32 1e-05, %v1093_v32 }
 0x581   : > { %v1174_v14 = vmul.f32 %v3246_v8, %v1158_v12  ;;  %3255 = vrsqrt.f32 %v1099_v52  ;;  %v1167_v52 = vld [vmem:[%s4195_s3 + $0x48] sm:$0xff]  ;;  %v4247_v8 = vld [vmem:[#allocation12_spill] sm:$0xff] }
 0x582   : > { %1192 = vst.msk [vmem:[#allocation2 + $0x8] sm:$0xff] %vm1190_vm1, %v1175_v33  ;;  %v1224_v15 = vmul.f32 %v4241_v43, %v1175_v33  ;;  %3257 = vrsqrt.f32 %v1094_v9  ;;  %v3045_v46 = vpop.f32.mrb[8].mxu0  ;;  %v1213_v9 = vld [vmem:[%s4196_s4 + $0x30] sm:$0xff] }
 0x583   : > { %v3248_v18 = vpop.eup %3247  ;;  %1191 = vst.msk [vmem:[#allocation2] sm:$0xff] %vm1190_vm1, %v1174_v14  ;;  %v1223_v39 = vmul.f32 %v1174_v14, %v4242_v38  ;;  %v1109_v28 = vadd.f32 1e-05, %v3045_v46  ;;  %v1103_v19 = vpop.f32.mrb[9].mxu0 }
 0x584   : > { %v3250_v49 = vpop.eup %3249  ;;  %v1240_v22 = vsub.f32 %v1208_v2, %v1224_v15  ;;  %v1177_v5 = vmul.f32 %v3248_v18, %v1161_v42  ;;  %v1104_v44 = vadd.f32 1e-05, %v1103_v19  ;;  %v1166_v2 = vld [vmem:[%s4195_s3 + $0x40] sm:$0xff]  ;;  %v4248_v15 = vld [vmem:[#allocation13_spill] sm:$0xff] }
 0x585   : > { %v1239_v45 = vsub.f32 %v1207_v4, %v1223_v39  ;;  %v1176_v6 = vmul.f32 %v3250_v49, %v1160_v48  ;;  %3259 = vrsqrt.f32 %v1109_v28  ;;  %v1216_v49 = vld [vmem:[%s4196_s4 + $0x48] sm:$0xff] }
 0x586   : > { %1256 = vst.msk [vmem:[#allocation3 + $0x8] sm:$0xff] %vm1190_vm1, %v1240_v22  ;;  %1194 = vst.msk [vmem:[#allocation2 + $0x18] sm:$0xff] %vm1190_vm1, %v1177_v5  ;;  %v1226_v30 = vmul.f32 %v4243_v17, %v1177_v5  ;;  %3261 = vrsqrt.f32 %v1104_v44  ;;  %v3048_v24 = vpop.f32.mrb[10].mxu0  ;;  %v1215_v5 = vld [vmem:[%s4196_s4 + $0x40] sm:$0xff]  ;;  %v1169_v44 = vld [vmem:[%s4195_s3 + $0x58] sm:$0xff] }
 0x587   : > { %v3252_v21 = vpop.eup %3251  ;;  %1255 = vst.msk [vmem:[#allocation3] sm:$0xff] %vm1190_vm1, %v1239_v45  ;;  %1193 = vst.msk [vmem:[#allocation2 + $0x10] sm:$0xff] %vm1190_vm1, %v1176_v6  ;;  %v1225_v27 = vmul.f32 %v1176_v6, %v4244_v41  ;;  %v1119_v11 = vadd.f32 1e-05, %v3048_v24  ;;  %v1113_v0 = vpop.f32.mrb[11].mxu0  ;;  %v4249_v45 = vld [vmem:[#allocation14_spill] sm:$0xff] }
 0x588   : > { %v3254_v1 = vpop.eup %3253  ;;  %v1242_v10 = vsub.f32 %v1210_v23, %v1226_v30  ;;  %v1179_v40 = vmul.f32 %v3252_v21, %v1163_v16  ;;  %v1114_v25 = vadd.f32 1e-05, %v1113_v0  ;;  %v1168_v6 = vld [vmem:[%s4195_s3 + $0x50] sm:$0xff] }
 0x589   : > { %v1241_v47 = vsub.f32 %v1209_v31, %v1225_v27  ;;  %v1178_v36 = vmul.f32 %v3254_v1, %v1162_v20  ;;  %3263 = vrsqrt.f32 %v1119_v11  ;;  %v1309_v50 = vld [vmem:[#allocation2 + $0x8] sm:$0xff]  ;;  %v4250_v31 = vld [vmem:[#allocation15_spill] sm:$0xff] }
 0x58a   : > { %1258 = vst.msk [vmem:[#allocation3 + $0x18] sm:$0xff] %vm1190_vm1, %v1242_v10  ;;  %1196 = vst.msk [vmem:[#allocation2 + $0x28] sm:$0xff] %vm1190_vm1, %v1179_v40  ;;  %v1228_v34 = vmul.f32 %v4245_v29, %v1179_v40  ;;  %3265 = vrsqrt.f32 %v1114_v25  ;;  %1331 = vperm.xlu1 %3210, %v1309_v50   ;;  %v3051_v55 = vpop.f32.mrb[12].mxu0  ;;  %v1308_v56 = vld [vmem:[#allocation2] sm:$0xff]  ;;  %v1218_v1 = vld [vmem:[%s4196_s4 + $0x58] sm:$0xff] }
 0x58b   : > { %v3256_v57 = vpop.eup %3255  ;;  %1257 = vst.msk [vmem:[#allocation3 + $0x10] sm:$0xff] %vm1190_vm1, %v1241_v47  ;;  %1195 = vst.msk [vmem:[#allocation2 + $0x20] sm:$0xff] %vm1190_vm1, %v1178_v36  ;;  %v1227_v59 = vmul.f32 %v1178_v36, %v4246_v58  ;;  %v1129_v60 = vadd.f32 1e-05, %v3051_v55  ;;  %v1123_v61 = vpop.f32.mrb[13].mxu0  ;;  %1326 = vperm.xlu0 %3209, %v1308_v56   ;;  %v1171_v40 = vld [vmem:[%s4195_s3 + $0x68] sm:$0xff] }
 0x58c   : > { %v3258_v62 = vpop.eup %3257  ;;  %v1244_v63 = vsub.f32 %v1212_v26, %v1228_v34  ;;  %v1181_v3 = vmul.f32 %v3256_v57, %v1165_v37  ;;  %v1124_v7 = vadd.f32 1e-05, %v1123_v61  ;;  %v4251_v25 = vld [vmem:[#allocation16_spill] sm:$0xff]  ;;  %v1217_v26 = vld [vmem:[%s4196_s4 + $0x50] sm:$0xff]  ;;  %v4252_v50 = vld [vmem:[#allocation17_spill] sm:$0xff] }
 0x58d   : > { %v1243_v12 = vsub.f32 %v1211_v53, %v1227_v59  ;;  %v1180_v51 = vmul.f32 %v3258_v62, %v1164_v54  ;;  %3267 = vrsqrt.f32 %v1129_v60  ;;  %v1311_v32 = vld [vmem:[#allocation2 + $0x18] sm:$0xff]  ;;  %v1437_v17 = vld [vmem:[#allocation3 + $0x8] sm:$0xff]  ;;  %v1170_v36 = vld [vmem:[%s4195_s3 + $0x60] sm:$0xff] }
 0x58e   : > { %1260 = vst.msk [vmem:[#allocation3 + $0x28] sm:$0xff] %vm1190_vm1, %v1244_v63  ;;  %1198 = vst.msk [vmem:[#allocation2 + $0x38] sm:$0xff] %vm1190_vm1, %v1181_v3  ;;  %v1230_v33 = vmul.f32 %v4247_v8, %v1181_v3  ;;  %3269 = vrsqrt.f32 %v1124_v7  ;;  %v3054_v14 = vpop.f32.mrb[14].mxu0  ;;  %v1310_v42 = vld [vmem:[#allocation2 + $0x10] sm:$0xff]  ;;  %v1436_v16 = vld [vmem:[#allocation3] sm:$0xff] }
 0x58f   : > { %v3260_v43 = vpop.eup %3259  ;;  %1259 = vst.msk [vmem:[#allocation3 + $0x20] sm:$0xff] %vm1190_vm1, %v1243_v12  ;;  %1197 = vst.msk [vmem:[#allocation2 + $0x30] sm:$0xff] %vm1190_vm1, %v1180_v51  ;;  %v1229_v4 = vmul.f32 %v1180_v51, %v4248_v15  ;;  %v1139_v48 = vadd.f32 1e-05, %v3054_v14  ;;  %v1133_v46 = vpop.f32.mrb[15].mxu0  ;;  %1336 = vperm.xlu1 %3210, %v1310_v42   ;;  %1341 = vperm.xlu0 %3209, %v1311_v32   ;;  %v1220_v56 = vld [vmem:[%s4196_s4 + $0x68] sm:$0xff] }
 0x590   : > { %v3262_v18 = vpop.eup %3261  ;;  %v1246_v38 = vsub.f32 %v1214_v13, %v1230_v33  ;;  %v1183_v39 = vmul.f32 %v3260_v43, %v1167_v52  ;;  %v1134_v28 = vadd.f32 1e-05, %v1133_v46  ;;  %v1219_v58 = vld [vmem:[%s4196_s4 + $0x60] sm:$0xff]  ;;  %v1173_v59 = vld [vmem:[%s4195_s3 + $0x78] sm:$0xff]  ;;  %v4253_v60 = vld [vmem:[#allocation18_spill] sm:$0xff] }
 0x591   : > { %v1245_v19 = vsub.f32 %v1213_v9, %v1229_v4  ;;  %v1182_v22 = vmul.f32 %v3262_v18, %v1166_v2  ;;  %3271 = vrsqrt.f32 %v1139_v48  ;;  %v1313_v11 = vld [vmem:[#allocation2 + $0x28] sm:$0xff]  ;;  %v1172_v62 = vld [vmem:[%s4195_s3 + $0x70] sm:$0xff]  ;;  %v1439_v3 = vld [vmem:[#allocation3 + $0x18] sm:$0xff] }
 0x592   : > { %1262 = vst.msk [vmem:[#allocation3 + $0x38] sm:$0xff] %vm1190_vm1, %v1246_v38  ;;  %1200 = vst.msk [vmem:[#allocation2 + $0x48] sm:$0xff] %vm1190_vm1, %v1183_v39  ;;  %v1232_v23 = vmul.f32 %v4249_v45, %v1183_v39  ;;  %3273 = vrsqrt.f32 %v1134_v28  ;;  %v1312_v27 = vld [vmem:[#allocation2 + $0x20] sm:$0xff]  ;;  %v1438_v63 = vld [vmem:[#allocation3 + $0x10] sm:$0xff] }
 0x593   : > { %v3264_v30 = vpop.eup %3263  ;;  %1261 = vst.msk [vmem:[#allocation3 + $0x30] sm:$0xff] %vm1190_vm1, %v1245_v19  ;;  %1199 = vst.msk [vmem:[#allocation2 + $0x40] sm:$0xff] %vm1190_vm1, %v1182_v22  ;;  %v1231_v20 = vmul.f32 %v1182_v22, %v4250_v31  ;;  %1454 = vperm.xlu1 %3210, %v1436_v16   ;;  %1459 = vperm.xlu0 %3209, %v1437_v17   ;;  %v4254_v12 = vld [vmem:[#allocation19_spill] sm:$0xff]  ;;  %v4255_v42 = vld [vmem:[#allocation20_spill] sm:$0xff] }
 0x594   : > { %v3266_v24 = vpop.eup %3265  ;;  %v1248_v21 = vsub.f32 %v1216_v49, %v1232_v23  ;;  %v1185_v41 = vmul.f32 %v3264_v30, %v1169_v44  ;;  %v1222_v2 = vld [vmem:[%s4196_s4 + $0x78] sm:$0xff]  ;;  %v1221_v15 = vld [vmem:[%s4196_s4 + $0x70] sm:$0xff]  ;;  %v4256_v4 = vld [vmem:[#allocation21_spill] sm:$0xff] }
 0x595   : > { %v1247_v0 = vsub.f32 %v1215_v5, %v1231_v20  ;;  %v1184_v10 = vmul.f32 %v3266_v24, %v1168_v6  ;;  %v1315_v33 = vld [vmem:[#allocation2 + $0x38] sm:$0xff]  ;;  %v1441_v39 = vld [vmem:[#allocation3 + $0x28] sm:$0xff] }
 0x596   : > { %1264 = vst.msk [vmem:[#allocation3 + $0x48] sm:$0xff] %vm1190_vm1, %v1248_v21  ;;  %1202 = vst.msk [vmem:[#allocation2 + $0x58] sm:$0xff] %vm1190_vm1, %v1185_v41  ;;  %v1234_v47 = vmul.f32 %v4251_v25, %v1185_v41  ;;  %v1314_v8 = vld [vmem:[#allocation2 + $0x30] sm:$0xff]  ;;  %v1440_v38 = vld [vmem:[#allocation3 + $0x20] sm:$0xff] }
 0x597   : > { %v3268_v37 = vpop.eup %3267  ;;  %1263 = vst.msk [vmem:[#allocation3 + $0x40] sm:$0xff] %vm1190_vm1, %v1247_v0  ;;  %1201 = vst.msk [vmem:[#allocation2 + $0x50] sm:$0xff] %vm1190_vm1, %v1184_v10  ;;  %v1233_v29 = vmul.f32 %v1184_v10, %v4252_v50  ;;  %1346 = vperm.xlu1 %3210, %v1312_v27   ;;  %1351 = vperm.xlu0 %3209, %v1313_v11   ;;  %v3211_v11 = vld [vmem:[%s4197_s5] ss:$12 sps:$4 sm:$0xff]   ;;  %v3213_v0 = vld [vmem:[%s4197_s5 + $0x4] ss:$12 sps:$4 sm:$0xff]  }
 0x598   : > { %v3270_v34 = vpop.eup %3269  ;;  %v1250_v53 = vsub.f32 %v1218_v1, %v1234_v47  ;;  %v1187_v54 = vmul.f32 %v3268_v37, %v1171_v40  ;;  %v3216_v1 = vld [vmem:[%s4197_s5 + $0x1c] ss:$12 sps:$4 sm:$0xff]   ;;  %1789 = vmatprep.subr.bf16.mxu0 %v3213_v0  ;;  %v3221_v40 = vld [vmem:[%s4197_s5 + $0x20] ss:$12 sps:$4 sm:$0xff]   ;;  %v3214_v25 = vld [vmem:[%s4197_s5 + $0x18] ss:$12 sps:$4 sm:$0xff]  }
 0x599   : > { %v1249_v55 = vsub.f32 %v1217_v26, %v1233_v29  ;;  %v1186_v57 = vmul.f32 %v3270_v34, %v1170_v36  ;;  %v1317_v19 = vld [vmem:[#allocation2 + $0x48] sm:$0xff]  ;;  %v1443_v22 = vld [vmem:[#allocation3 + $0x38] sm:$0xff]  ;;  %1790 = vmatpush1.bf16.msra.mxu0 %v3211_v11  ;;  %v3220_v47 = vld [vmem:[%s4197_s5 + $0x34] ss:$12 sps:$4 sm:$0xff]  }
 0x59a   : > { %1266 = vst.msk [vmem:[#allocation3 + $0x58] sm:$0xff] %vm1190_vm1, %v1250_v53  ;;  %1204 = vst.msk [vmem:[#allocation2 + $0x68] sm:$0xff] %vm1190_vm1, %v1187_v54  ;;  %v1236_v61 = vmul.f32 %v4253_v60, %v1187_v54  ;;  %v1316_v28 = vld [vmem:[#allocation2 + $0x40] sm:$0xff]  ;;  %v1442_v49 = vld [vmem:[#allocation3 + $0x30] sm:$0xff]  ;;  %1791 = vmatprep.subr.bf16.mxu0 %v3216_v1 }
 0x59b   : > { %v3272_v7 = vpop.eup %3271  ;;  %1265 = vst.msk [vmem:[#allocation3 + $0x50] sm:$0xff] %vm1190_vm1, %v1249_v55  ;;  %1203 = vst.msk [vmem:[#allocation2 + $0x60] sm:$0xff] %vm1190_vm1, %v1186_v57  ;;  %v1235_v13 = vmul.f32 %v1186_v57, %v4254_v12  ;;  %1464 = vperm.xlu1 %3210, %v1438_v63   ;;  %1469 = vperm.xlu0 %3209, %v1439_v3   ;;  %v3217_v10 = vld [vmem:[%s4197_s5 + $0x8] ss:$12 sps:$4 sm:$0xff]   ;;  %v3225_v26 = vld [vmem:[%s4197_s5 + $0x38] ss:$12 sps:$4 sm:$0xff]  }
 0x59c   : > { %v3274_v51 = vpop.eup %3273  ;;  %v1252_v52 = vsub.f32 %v1220_v56, %v1236_v61  ;;  %v1189_v32 = vmul.f32 %v3272_v7, %v1173_v59  ;;  %3055 = vmatprep.subr.bf16.mxu1 %v3217_v10  ;;  %v3218_v36 = vld [vmem:[%s4197_s5 + $0x30] ss:$12 sps:$4 sm:$0xff]   ;;  %v3224_v37 = vld [vmem:[%s4197_s5 + $0x4c] ss:$12 sps:$4 sm:$0xff]   ;;  %v3222_v29 = vld [vmem:[%s4197_s5 + $0x48] ss:$12 sps:$4 sm:$0xff]  }
 0x59d   : > { %v1251_v9 = vsub.f32 %v1219_v58, %v1235_v13  ;;  %v1188_v14 = vmul.f32 %v3274_v51, %v1172_v62  ;;  %v1319_v44 = vld [vmem:[#allocation2 + $0x58] sm:$0xff]  ;;  %v1445_v23 = vld [vmem:[#allocation3 + $0x48] sm:$0xff]  ;;  %3056 = vmatpush3.bf16.msra.mxu1 %v3217_v10  ;;  %1792 = vmatpush1.bf16.msra.mxu0 %v3214_v25  ;;  %v3228_v34 = vld [vmem:[%s4197_s5 + $0x64] ss:$12 sps:$4 sm:$0xff]  }
 0x59e   : > { %1268 = vst.msk [vmem:[#allocation3 + $0x68] sm:$0xff] %vm1190_vm1, %v1252_v52  ;;  %1206 = vst.msk [vmem:[#allocation2 + $0x78] sm:$0xff] %vm1190_vm1, %v1189_v32  ;;  %v1238_v43 = vmul.f32 %v4255_v42, %v1189_v32  ;;  %v1318_v5 = vld [vmem:[#allocation2 + $0x50] sm:$0xff]  ;;  %v1444_v45 = vld [vmem:[#allocation3 + $0x40] sm:$0xff]  ;;  %3057 = vmatprep.subr.bf16.mxu1 %v3221_v40  ;;  %1793 = vmatprep.subr.bf16.mxu0 %v3220_v47 }
 0x59f   : > { %1267 = vst.msk [vmem:[#allocation3 + $0x60] sm:$0xff] %vm1190_vm1, %v1251_v9  ;;  %1205 = vst.msk [vmem:[#allocation2 + $0x70] sm:$0xff] %vm1190_vm1, %v1188_v14  ;;  %v1237_v48 = vmul.f32 %v1188_v14, %v4256_v4  ;;  %1356 = vperm.xlu1 %3210, %v1314_v8   ;;  %1361 = vperm.xlu0 %3209, %v1315_v33   ;;  %v3229_v50 = vld [vmem:[%s4197_s5 + $0x50] ss:$12 sps:$4 sm:$0xff]   ;;  %v3233_v53 = vld [vmem:[%s4197_s5 + $0x68] ss:$12 sps:$4 sm:$0xff]  }
 0x5a0   : > { %v1254_v46 = vsub.f32 %v1222_v2, %v1238_v43  ;;  %v3226_v54 = vld [vmem:[%s4197_s5 + $0x60] ss:$12 sps:$4 sm:$0xff]   ;;  %v3232_v55 = vld [vmem:[%s4197_s5 + $0x7c] ss:$12 sps:$4 sm:$0xff]   ;;  %v3230_v57 = vld [vmem:[%s4197_s5 + $0x78] ss:$12 sps:$4 sm:$0xff]  }
 0x5a1   : > { %v1253_v18 = vsub.f32 %v1221_v15, %v1237_v48  ;;  %v1321_v16 = vld [vmem:[#allocation2 + $0x68] sm:$0xff]  ;;  %v1447_v30 = vld [vmem:[#allocation3 + $0x58] sm:$0xff]  ;;  %3058 = vmatpush3.bf16.msra.mxu1 %v3221_v40  ;;  %1794 = vmatpush1.bf16.msra.mxu0 %v3218_v36  ;;  %v3236_v58 = vld [vmem:[%s4197_s5 + $0x94] ss:$12 sps:$4 sm:$0xff]  }
 0x5a2   : > { %1270 = vst.msk [vmem:[#allocation3 + $0x78] sm:$0xff] %vm1190_vm1, %v1254_v46  ;;  %v1320_v6 = vld [vmem:[#allocation2 + $0x60] sm:$0xff]  ;;  %v1446_v17 = vld [vmem:[#allocation3 + $0x50] sm:$0xff]  ;;  %3059 = vmatprep.subr.bf16.mxu1 %v3225_v26  ;;  %1795 = vmatprep.subr.bf16.mxu0 %v3224_v37  ;;  %v3240_v61 = vld [vmem:[%s4197_s5 + $0xac] ss:$12 sps:$4 sm:$0xff]  }
 0x5a3   : > { %1269 = vst.msk [vmem:[#allocation3 + $0x70] sm:$0xff] %vm1190_vm1, %v1253_v18  ;;  %1474 = vperm.xlu1 %3210, %v1440_v38   ;;  %1479 = vperm.xlu0 %3209, %v1441_v39   ;;  %v3237_v56 = vld [vmem:[%s4197_s5 + $0x80] ss:$12 sps:$4 sm:$0xff]   ;;  %v3241_v59 = vld [vmem:[%s4197_s5 + $0x98] ss:$12 sps:$4 sm:$0xff]   ;;  %v1278_v7 = vld [vmem:[%s3364_s8 + $0x10] sm:$0xff] }
 0x5a4   : > { %v3234_v60 = vld [vmem:[%s4197_s5 + $0x90] ss:$12 sps:$4 sm:$0xff]   ;;  %v3238_v62 = vld [vmem:[%s4197_s5 + $0xa8] ss:$12 sps:$4 sm:$0xff]   ;;  %v1276_v13 = vld [vmem:[%s3364_s8] sm:$0xff] }
 0x5a5   : > { %v1323_v20 = vld [vmem:[#allocation2 + $0x78] sm:$0xff]  ;;  %v1449_v21 = vld [vmem:[#allocation3 + $0x68] sm:$0xff]  ;;  %3060 = vmatpush3.bf16.msra.mxu1 %v3225_v26  ;;  %1796 = vmatpush1.bf16.msra.mxu0 %v3222_v29  ;;  %v1280_v46 = vld [vmem:[%s3364_s8 + $0x20] sm:$0xff] }
 0x5a6   : > { %v1322_v31 = vld [vmem:[#allocation2 + $0x70] sm:$0xff]  ;;  %v1448_v24 = vld [vmem:[#allocation3 + $0x60] sm:$0xff]  ;;  %3061 = vmatprep.subr.bf16.mxu1 %v3229_v50  ;;  %1797 = vmatprep.subr.bf16.mxu0 %v3228_v34  ;;  %v1279_v12 = vld [vmem:[%s3364_s8 + $0x18] sm:$0xff] }
 0x5a7   : > { %1366 = vperm.xlu1 %3210, %v1316_v28   ;;  %1371 = vperm.xlu0 %3209, %v1317_v19   ;;  %v1277_v51 = vld [vmem:[%s3364_s8 + $0x8] sm:$0xff]  ;;  %v1282_v28 = vld [vmem:[%s3364_s8 + $0x30] sm:$0xff]  ;;  %v1283_v19 = vld [vmem:[%s3364_s8 + $0x38] sm:$0xff] }
 0x5a8   : > { %v1281_v18 = vld [vmem:[%s3364_s8 + $0x28] sm:$0xff]  ;;  %v1286_v0 = vld [vmem:[%s3364_s8 + $0x50] sm:$0xff]  ;;  %v1287_v1 = vld [vmem:[%s3364_s8 + $0x58] sm:$0xff] }
 0x5a9   : > { %v1451_v27 = vld [vmem:[#allocation3 + $0x78] sm:$0xff]  ;;  %3062 = vmatpush3.bf16.msra.mxu1 %v3229_v50  ;;  %1798 = vmatpush1.bf16.msra.mxu0 %v3226_v54  ;;  %v1285_v11 = vld [vmem:[%s3364_s8 + $0x48] sm:$0xff] }
 0x5aa   : > { %v1450_v41 = vld [vmem:[#allocation3 + $0x70] sm:$0xff]  ;;  %3063 = vmatprep.subr.bf16.mxu1 %v3233_v53  ;;  %1799 = vmatprep.subr.bf16.mxu0 %v3232_v55  ;;  %v1288_v55 = vld [vmem:[%s3364_s8 + $0x60] sm:$0xff] }
 0x5ab   : > { %1484 = vperm.xlu1 %3210, %v1442_v49   ;;  %1489 = vperm.xlu0 %3209, %v1443_v22  }
 0x5ad   : > { %3064 = vmatpush3.bf16.msra.mxu1 %v3233_v53  ;;  %1800 = vmatpush1.bf16.msra.mxu0 %v3230_v57 }
 0x5ae   : > { %3065 = vmatprep.subr.bf16.mxu1 %v3237_v56  ;;  %1801 = vmatprep.subr.bf16.mxu0 %v3236_v58  ;;  %v1289_v58 = vld [vmem:[%s3364_s8 + $0x68] sm:$0xff] }
 0x5af   : > { %1376 = vperm.xlu1 %3210, %v1318_v5   ;;  %1381 = vperm.xlu0 %3209, %v1319_v44   ;;  %v3242_v5 = vld [vmem:[%s4197_s5 + $0xb0] ss:$12 sps:$4 sm:$0xff]  }
 0x5b1   : > { %3066 = vmatpush3.bf16.msra.mxu1 %v3237_v56  ;;  %1802 = vmatpush1.bf16.msra.mxu0 %v3234_v60  ;;  %v1291_v60 = vld [vmem:[%s3364_s8 + $0x78] sm:$0xff] }
 0x5b2   : > { %3067 = vmatprep.subr.bf16.mxu1 %v3241_v59  ;;  %1803 = vmatprep.subr.bf16.mxu0 %v3240_v61 }
 0x5b3   : > { %1494 = vperm.xlu1 %3210, %v1444_v45   ;;  %1499 = vperm.xlu0 %3209, %v1445_v23  }
 0x5b5   : > { %3068 = vmatpush3.bf16.msra.mxu1 %v3241_v59  ;;  %1804 = vmatpush1.bf16.msra.mxu0 %v3238_v62  ;;  %v1290_v59 = vld [vmem:[%s3364_s8 + $0x70] sm:$0xff] }
 0x5b6   : > { %3069 = vmatprep.subr.bf16.mxu1 %v3242_v5 }
 0x5b7   : > { %1386 = vperm.xlu1 %3210, %v1320_v6   ;;  %1391 = vperm.xlu0 %3209, %v1321_v16  }
 0x5b9   : > { %3070 = vmatpush3.bf16.msra.mxu1 %v3242_v5 }
 0x5bb   : > { %1504 = vperm.xlu1 %3210, %v1446_v17   ;;  %1509 = vperm.xlu0 %3209, %v1447_v30  }
 0x5bf   : > { %1396 = vperm.xlu1 %3210, %v1322_v31   ;;  %1401 = vperm.xlu0 %3209, %v1323_v20  }
 0x5c3   : > { %1514 = vperm.xlu1 %3210, %v1448_v24   ;;  %1519 = vperm.xlu0 %3209, %v1449_v21   ;;  %v1284_v21 = vld [vmem:[%s3364_s8 + $0x40] sm:$0xff] }
 0x5c7   : > { %1524 = vperm.xlu1 %3210, %v1450_v41   ;;  %1529 = vperm.xlu0 %3209, %v1451_v27  }
 0x609   : > { %v1332_v63 = vpop.permute.xlu1 %1331 }
 0x60a   : > { %v1327_v3 = vpop.permute.xlu0 %1326  ;;  %v1406_v8 = vmul.f32 %v1332_v63, %v1278_v7  ;;  %v1407_v33 = vmul.f32 %v1332_v63, %v1279_v12 }
 0x60b   : > { %v1404_v9 = vmul.f32 %v1327_v3, %v1276_v13  ;;  %v1405_v2 = vmul.f32 %v1327_v3, %v1277_v51 }
 0x60e   : > { %v1337_v52 = vpop.permute.xlu1 %1336  ;;  %v1342_v32 = vpop.permute.xlu0 %1341 }
 0x60f   : > { %v1408_v44 = vmul.f32 %v1337_v52, %v1280_v46  ;;  %v1409_v45 = vmul.f32 %v1337_v52, %v1281_v18  ;;  %v1410_v23 = vmul.f32 %v1342_v32, %v1282_v28  ;;  %v1411_v6 = vmul.f32 %v1342_v32, %v1283_v19 }
 0x612   : > { %v1455_v14 = vpop.permute.xlu1 %1454  ;;  %v1460_v42 = vpop.permute.xlu0 %1459 }
 0x613   : > { %v1532_v43 = vadd.f32 %v1455_v14, %v1404_v9  ;;  %v1533_v15 = vadd.f32 %v1455_v14, %v1405_v2  ;;  %v1534_v4 = vadd.f32 %v1460_v42, %v1406_v8  ;;  %v1535_v48 = vadd.f32 %v1460_v42, %v1407_v33  ;;  %v1292_v9 = vld [vmem:[%s3364_s8 + $0x80] sm:$0xff]  ;;  %v1293_v42 = vld [vmem:[%s3364_s8 + $0x88] sm:$0xff] }
 0x615   : > { %v1564_v38 = vpack.c.bf16 %v1534_v4, %v1532_v43  ;;  %v1565_v39 = vpack.c.bf16 %v1535_v48, %v1533_v15  ;;  %v1294_v43 = vld [vmem:[%s3364_s8 + $0x90] sm:$0xff]  ;;  %v1295_v15 = vld [vmem:[%s3364_s8 + $0x98] sm:$0xff] }
 0x616   : > { %v1347_v49 = vpop.permute.xlu1 %1346  ;;  %v1352_v22 = vpop.permute.xlu0 %1351 }
 0x617   : > { %1596 = vxpose.xlu0.c.b16.start [1/8] %v1565_v39, 128  ;;  %1580 = vxpose.xlu1.c.b16.start [1/8] %v1564_v38, 128  ;;  %v1412_v25 = vmul.f32 %v1347_v49, %v1284_v21  ;;  %v1413_v47 = vmul.f32 %v1347_v49, %v1285_v11  ;;  %v1414_v26 = vmul.f32 %v1352_v22, %v1286_v0 }
 0x618   : > { %v1415_v36 = vmul.f32 %v1352_v22, %v1287_v1 }
 0x61a   : > { %v1465_v16 = vpop.permute.xlu1 %1464  ;;  %v1470_v17 = vpop.permute.xlu0 %1469 }
 0x61b   : > { %v1536_v30 = vadd.f32 %v1465_v16, %v1408_v44  ;;  %v1537_v31 = vadd.f32 %v1465_v16, %v1409_v45  ;;  %v1538_v20 = vadd.f32 %v1470_v17, %v1410_v23  ;;  %v1539_v24 = vadd.f32 %v1470_v17, %v1411_v6  ;;  %v1296_v45 = vld [vmem:[%s3364_s8 + $0xa0] sm:$0xff]  ;;  %v1297_v16 = vld [vmem:[%s3364_s8 + $0xa8] sm:$0xff]  ;;  %v1298_v17 = vld [vmem:[%s3364_s8 + $0xb0] sm:$0xff] }
 0x61d   : > { %v1566_v41 = vpack.c.bf16 %v1538_v20, %v1536_v30  ;;  %v1567_v27 = vpack.c.bf16 %v1539_v24, %v1537_v31  ;;  %v1299_v30 = vld [vmem:[%s3364_s8 + $0xb8] sm:$0xff] }
 0x61e   : > { %v1357_v10 = vpop.permute.xlu1 %1356  ;;  %v1362_v40 = vpop.permute.xlu0 %1361 }
 0x61f   : > { %1597 = vxpose.xlu0.c.b16.cont [2/8] %v1567_v27, 128  ;;  %1581 = vxpose.xlu1.c.b16.cont [2/8] %v1566_v41, 128  ;;  %v1416_v63 = vmul.f32 %v1357_v10, %v1288_v55  ;;  %v1417_v3 = vmul.f32 %v1357_v10, %v1289_v58  ;;  %v1418_v7 = vmul.f32 %v1362_v40, %v1290_v59  ;;  %v1304_v58 = vld [vmem:[%s3364_s8 + $0xe0] sm:$0xff]  ;;  %v1305_v59 = vld [vmem:[%s3364_s8 + $0xe8] sm:$0xff] }
 0x620   : > { %v1419_v12 = vmul.f32 %v1362_v40, %v1291_v60  ;;  %v1306_v60 = vld [vmem:[%s3364_s8 + $0xf0] sm:$0xff] }
 0x622   : > { %v1475_v37 = vpop.permute.xlu1 %1474  ;;  %v1480_v50 = vpop.permute.xlu0 %1479 }
 0x623   : > { %v1540_v29 = vadd.f32 %v1475_v37, %v1412_v25  ;;  %v1541_v34 = vadd.f32 %v1475_v37, %v1413_v47  ;;  %v1542_v53 = vadd.f32 %v1480_v50, %v1414_v26  ;;  %v1543_v54 = vadd.f32 %v1480_v50, %v1415_v36  ;;  %v1300_v47 = vld [vmem:[%s3364_s8 + $0xc0] sm:$0xff]  ;;  %v1301_v37 = vld [vmem:[%s3364_s8 + $0xc8] sm:$0xff]  ;;  %v1302_v50 = vld [vmem:[%s3364_s8 + $0xd0] sm:$0xff] }
 0x625   : > { %v1568_v56 = vpack.c.bf16 %v1542_v53, %v1540_v29  ;;  %v1569_v57 = vpack.c.bf16 %v1543_v54, %v1541_v34  ;;  %v1303_v29 = vld [vmem:[%s3364_s8 + $0xd8] sm:$0xff] }
 0x626   : > { %v1367_v61 = vpop.permute.xlu1 %1366  ;;  %v1372_v62 = vpop.permute.xlu0 %1371 }
 0x627   : > { %1598 = vxpose.xlu0.c.b16.cont [3/8] %v1569_v57, 128  ;;  %1582 = vxpose.xlu1.c.b16.cont [3/8] %v1568_v56, 128  ;;  %v1420_v46 = vmul.f32 %v1367_v61, %v1292_v9  ;;  %v1421_v18 = vmul.f32 %v1367_v61, %v1293_v42  ;;  %v1422_v38 = vmul.f32 %v1372_v62, %v1294_v43  ;;  %v1307_v61 = vld [vmem:[%s3364_s8 + $0xf8] sm:$0xff] }
 0x628   : > { %v1423_v39 = vmul.f32 %v1372_v62, %v1295_v15 }
 0x62a   : > { %v1485_v13 = vpop.permute.xlu1 %1484  ;;  %v1490_v51 = vpop.permute.xlu0 %1489 }
 0x62b   : > { %v1544_v52 = vadd.f32 %v1485_v13, %v1416_v63  ;;  %v1545_v32 = vadd.f32 %v1485_v13, %v1417_v3  ;;  %v1546_v8 = vadd.f32 %v1490_v51, %v1418_v7  ;;  %v1547_v33 = vadd.f32 %v1490_v51, %v1419_v12 }
 0x62d   : > { %v1570_v2 = vpack.c.bf16 %v1546_v8, %v1544_v52  ;;  %v1571_v14 = vpack.c.bf16 %v1547_v33, %v1545_v32 }
 0x62e   : > { %v1377_v4 = vpop.permute.xlu1 %1376  ;;  %v1382_v48 = vpop.permute.xlu0 %1381 }
 0x62f   : > { %1599 = vxpose.xlu0.c.b16.cont [4/8] %v1571_v14, 128  ;;  %1583 = vxpose.xlu1.c.b16.cont [4/8] %v1570_v2, 128  ;;  %v1424_v24 = vmul.f32 %v1377_v4, %v1296_v45  ;;  %v1425_v21 = vmul.f32 %v1377_v4, %v1297_v16  ;;  %v1426_v41 = vmul.f32 %v1382_v48, %v1298_v17 }
 0x630   : > { %v1427_v27 = vmul.f32 %v1382_v48, %v1299_v30 }
 0x632   : > { %v1495_v28 = vpop.permute.xlu1 %1494  ;;  %v1500_v19 = vpop.permute.xlu0 %1499 }
 0x633   : > { %v1548_v49 = vadd.f32 %v1495_v28, %v1420_v46  ;;  %v1549_v22 = vadd.f32 %v1495_v28, %v1421_v18  ;;  %v1550_v5 = vadd.f32 %v1500_v19, %v1422_v38  ;;  %v1551_v44 = vadd.f32 %v1500_v19, %v1423_v39 }
 0x635   : > { %v1572_v23 = vpack.c.bf16 %v1550_v5, %v1548_v49  ;;  %v1573_v6 = vpack.c.bf16 %v1551_v44, %v1549_v22 }
 0x636   : > { %v1387_v31 = vpop.permute.xlu1 %1386  ;;  %v1392_v20 = vpop.permute.xlu0 %1391 }
 0x637   : > { %1600 = vxpose.xlu0.c.b16.cont [5/8] %v1573_v6, 128  ;;  %1584 = vxpose.xlu1.c.b16.cont [5/8] %v1572_v23, 128  ;;  %v1428_v54 = vmul.f32 %v1387_v31, %v1300_v47  ;;  %v1429_v55 = vmul.f32 %v1387_v31, %v1301_v37  ;;  %v1430_v56 = vmul.f32 %v1392_v20, %v1302_v50 }
 0x638   : > { %v1431_v57 = vmul.f32 %v1392_v20, %v1303_v29  ;;  %v1646_v20 = vlaneseq }
 0x63a   : > { %v1505_v11 = vpop.permute.xlu1 %1504  ;;  %v1510_v0 = vpop.permute.xlu0 %1509 }
 0x63b   : > { %v1552_v1 = vadd.f32 %v1505_v11, %v1424_v24  ;;  %v1553_v10 = vadd.f32 %v1505_v11, %v1425_v21  ;;  %v1554_v40 = vadd.f32 %v1510_v0, %v1426_v41  ;;  %v1555_v25 = vadd.f32 %v1510_v0, %v1427_v27  ;;  %v1644_v41 = vld [vmem:[%s4198_s6] sm:$0x7] }
 0x63c   : > { %v1647_v24 = vshrl.u32 %v1646_v20, 7 }
 0x63d   : > { %v1574_v26 = vpack.c.bf16 %v1554_v40, %v1552_v1  ;;  %v1575_v36 = vpack.c.bf16 %v1555_v25, %v1553_v10 }
 0x63e   : > { %v1397_v34 = vpop.permute.xlu1 %1396  ;;  %v1402_v53 = vpop.permute.xlu0 %1401  ;;  %v1648_v21 = vsub.s32 0, %v1647_v24  ;;  %v1652_v27 = vsub.s32 1, %v1647_v24  ;;  %v1656_v0 = vsub.s32 2, %v1647_v24 }
 0x63f   : > { %1601 = vxpose.xlu0.c.b16.cont [6/8] %v1575_v36, 128  ;;  %1585 = vxpose.xlu1.c.b16.cont [6/8] %v1574_v26, 128  ;;  %v1432_v51 = vmul.f32 %v1397_v34, %v1304_v58  ;;  %v1433_v52 = vmul.f32 %v1397_v34, %v1305_v59  ;;  %v1434_v32 = vmul.f32 %v1402_v53, %v1306_v60 }
 0x640   : > { %v1435_v8 = vmul.f32 %v1402_v53, %v1307_v61  ;;  %v4011_v11 = vrot.slane %v1644_v41, %v1648_v21  ;;  %v4013_v1 = vrot.slane %v1644_v41, %v1652_v27 }
 0x642   : > { %v1515_v62 = vpop.permute.xlu1 %1514  ;;  %v1520_v63 = vpop.permute.xlu0 %1519 }
 0x643   : > { %v1556_v3 = vadd.f32 %v1515_v62, %v1428_v54  ;;  %v1557_v7 = vadd.f32 %v1515_v62, %v1429_v55  ;;  %v1558_v12 = vadd.f32 %v1520_v63, %v1430_v56  ;;  %v1559_v13 = vadd.f32 %v1520_v63, %v1431_v57 }
 0x645   : > { %v1576_v33 = vpack.c.bf16 %v1558_v12, %v1556_v3  ;;  %v1577_v9 = vpack.c.bf16 %v1559_v13, %v1557_v7 }
 0x646   : > { %v1525_v2 = vpop.permute.xlu1 %1524  ;;  %v1530_v14 = vpop.permute.xlu0 %1529 }
 0x647   : > { %v1560_v42 = vadd.f32 %v1525_v2, %v1432_v51  ;;  %v1561_v43 = vadd.f32 %v1525_v2, %v1433_v52  ;;  %v1562_v15 = vadd.f32 %v1530_v14, %v1434_v32  ;;  %v1563_v4 = vadd.f32 %v1530_v14, %v1435_v8  ;;  %1602 = vxpose.xlu0.c.b16.cont [7/8] %v1577_v9, 128 }
 0x648   : > { %1586 = vxpose.xlu1.c.b16.cont [7/8] %v1576_v33, 128 }
 0x649   : > { %v1578_v48 = vpack.c.bf16 %v1562_v15, %v1560_v42  ;;  %v1579_v46 = vpack.c.bf16 %v1563_v4, %v1561_v43 }
 0x64b   : > { %1603 = vxpose.xlu0.c.b16.end [8/8] %v1579_v46, 128 }
 0x64c   : > { %1587 = vxpose.xlu1.c.b16.end [8/8] %v1578_v48, 128 }
 0x695   : > { %v1604_v22 = vpop.trf.xlu0 }
 0x696   : > { %v1588_v18 = vpop.trf.xlu1 }
 0x697   : > { %1822 = vmatmul.mubr.bf16.vlgmr.msra.gmra.mrb[16].mxu0 %v1588_v18  ;;  %3071 = vmatprep.mubr.bf16.mxu1 %v1588_v18 }
 0x698   : > { %1831 = vmatprep.mubr.bf16.mxu0 %v4240_v35 }
 0x699   : > { %v1605_v44 = vpop.trf.xlu0 }
 0x69a   : > { %v1589_v38 = vpop.trf.xlu1 }
 0x69b   : > { %3072 = vmatmul.mubr.bf16.vlgmr.msra.gmra.mrb[24].mxu1 %v1589_v38 }
 0x69d   : > { %v1606_v23 = vpop.trf.xlu0 }
 0x69e   : > { %v1590_v39 = vpop.trf.xlu1 }
 0x69f   : > { %1832 = vmatmul.mubr.bf16.gmra.mrb[20].mxu0 %v1589_v38  ;;  %3075 = vmatprep.mubr.bf16.mxu1 %v1590_v39 }
 0x6a0   : > { %1841 = vmatprep.mubr.bf16.mxu0 %v4240_v35 }
 0x6a1   : > { %v1607_v6 = vpop.trf.xlu0 }
 0x6a2   : > { %v1591_v28 = vpop.trf.xlu1 }
 0x6a3   : > { %3076 = vmatmul.mubr.bf16.gmra.mrb[28].mxu1 %v1591_v28 }
 0x6a5   : > { %v1608_v16 = vpop.trf.xlu0 }
 0x6a6   : > { %v1592_v19 = vpop.trf.xlu1 }
 0x6a7   : > { %1842 = vmatmul.mubr.bf16.gmra.mrb[24].mxu0 %v1590_v39  ;;  %3079 = vmatprep.mubr.bf16.mxu1 %v1592_v19 }
 0x6a8   : > { %1851 = vmatprep.mubr.bf16.mxu0 %v4240_v35 }
 0x6a9   : > { %v1609_v17 = vpop.trf.xlu0 }
 0x6aa   : > { %v1593_v49 = vpop.trf.xlu1 }
 0x6ab   : > { %3080 = vmatmul.mubr.bf16.gmra.mrb[32].mxu1 %v1593_v49 }
 0x6ad   : > { %v1610_v30 = vpop.trf.xlu0 }
 0x6ae   : > { %v1594_v5 = vpop.trf.xlu1 }
 0x6af   : > { %1852 = vmatmul.mubr.bf16.gmra.mrb[28].mxu0 %v1591_v28  ;;  %3083 = vmatprep.mubr.bf16.mxu1 %v1594_v5 }
 0x6b0   : > { %1861 = vmatprep.mubr.bf16.mxu0 %v4240_v35 }
 0x6b1   : > { %v1611_v31 = vpop.trf.xlu0 }
 0x6b2   : > { %v1595_v45 = vpop.trf.xlu1 }
 0x6b3   : > { %3084 = vmatmul.mubr.bf16.gmra.mrb[36].mxu1 %v1595_v45 }
 0x6b4   : > { %3087 = vmatprep.mubr.bf16.mxu1 %v1604_v22 }
 0x6b7   : > { %1862 = vmatmul.mubr.bf16.gmra.mrb[32].mxu0 %v1592_v19 }
 0x6b8   : > { %1871 = vmatprep.mubr.bf16.mxu0 %v4240_v35 }
 0x6bb   : > { %3088 = vmatmul.mubr.bf16.gmra.mrb[40].mxu1 %v1605_v44 }
 0x6bc   : > { %3091 = vmatprep.mubr.bf16.mxu1 %v1606_v23 }
 0x6bf   : > { %1872 = vmatmul.mubr.bf16.gmra.mrb[36].mxu0 %v1593_v49 }
 0x6c0   : > { %1881 = vmatprep.mubr.bf16.mxu0 %v4240_v35 }
 0x6c3   : > { %3092 = vmatmul.mubr.bf16.gmra.mrb[44].mxu1 %v1607_v6 }
 0x6c4   : > { %3095 = vmatprep.mubr.bf16.mxu1 %v1608_v16 }
 0x6c7   : > { %1882 = vmatmul.mubr.bf16.gmra.mrb[40].mxu0 %v1594_v5 }
 0x6c8   : > { %1891 = vmatprep.mubr.bf16.mxu0 %v4240_v35 }
 0x6cb   : > { %3096 = vmatmul.mubr.bf16.gmra.mrb[48].mxu1 %v1609_v17 }
 0x6cc   : > { %3099 = vmatprep.mubr.bf16.mxu1 %v1610_v30 }
 0x6cf   : > { %1892 = vmatmul.mubr.bf16.gmra.mrb[44].mxu0 %v1595_v45 }
 0x6d0   : > { %1901 = vmatprep.mubr.bf16.mxu0 %v4240_v35 }
 0x6d3   : > { %3100 = vmatmul.mubr.bf16.gmra.mrb[52].mxu1 %v1611_v31 }
 0x6d7   : > { %1902 = vmatmul.mubr.bf16.gmra.mrb[48].mxu0 %v1604_v22 }
 0x6d8   : > { %1911 = vmatprep.mubr.bf16.mxu0 %v4240_v35 }
 0x6df   : > { %1912 = vmatmul.mubr.bf16.gmra.mrb[52].mxu0 %v1605_v44 }
 0x6e0   : > { %1921 = vmatprep.mubr.bf16.mxu0 %v4240_v35 }
 0x6e7   : > { %1922 = vmatmul.mubr.bf16.gmra.mrb[56].mxu0 %v1606_v23 }
 0x6e8   : > { %1931 = vmatprep.mubr.bf16.mxu0 %v4240_v35 }
 0x6ef   : > { %1932 = vmatmul.mubr.bf16.gmra.mrb[60].mxu0 %v1607_v6 }
 0x6f0   : > { %1941 = vmatprep.mubr.bf16.mxu0 %v4240_v35 }
 0x6f7   : > { %1942 = vmatmul.mubr.bf16.gmra.mrb[64].mxu0 %v1608_v16 }
 0x6f8   : > { %1951 = vmatprep.mubr.bf16.mxu0 %v4240_v35 }
 0x6ff   : > { %1952 = vmatmul.mubr.bf16.gmra.mrb[68].mxu0 %v1609_v17 }
 0x700   : > { %1961 = vmatprep.mubr.bf16.mxu0 %v4240_v35 }
 0x707   : > { %1962 = vmatmul.mubr.bf16.gmra.mrb[72].mxu0 %v1610_v30 }
 0x708   : > { %1971 = vmatprep.mubr.bf16.mxu0 %v4240_v35  ;;  %v4017_v35 = vrot.slane %v1644_v41, %v1656_v0 }
 0x70f   : > { %1972 = vmatmul.mubr.bf16.gmra.mrb[76].mxu0 %v1611_v31 }
 0x76a   : > { %v1823_v10 = vpop.f32.mrb[16].mxu0 }
 0x76b   : > { %v1824_v40 = vadd.f32 %v1823_v10, %v4011_v11  ;;  %v1825_v25 = vpop.f32.mrb[17].mxu0 }
 0x76c   : > { %v1826_v47 = vadd.f32 %v1825_v25, %v4013_v1  ;;  %v1827_v26 = vpop.f32.mrb[18].mxu0 }
 0x76d   : > { %v1828_v36 = vadd.f32 %v1827_v26, %v4011_v11  ;;  %v1829_v37 = vpop.f32.mrb[19].mxu0 }
 0x76e   : > { %v2747_v50 = vpack.c.bf16 %v1826_v47, %v1824_v40  ;;  %v1830_v29 = vadd.f32 %v1829_v37, %v4013_v1  ;;  %v3073_v34 = vpop.f32.mrb[24].mxu1 }
 0x76f   : > { %v2025_v53 = vadd.f32 %v3073_v34, %v4017_v35  ;;  %v2016_v54 = vpop.f32.mrb[25].mxu1 }
 0x770   : > { %2463 = vst [vmem:[%s4023_s21] sm:$0xff] %v2747_v50  ;;  %v2749_v55 = vpack.c.bf16 %v1830_v29, %v1828_v36  ;;  %v2017_v56 = vadd.f32 %v2016_v54, %v4017_v35  ;;  %v3074_v57 = vpop.f32.mrb[26].mxu1 }
 0x771   : > { %v2752_v58 = vpack.c.bf16 %v2025_v53, %v2025_v53  ;;  %v2028_v59 = vadd.f32 %v3074_v57, %v4017_v35  ;;  %v2019_v60 = vpop.f32.mrb[27].mxu1 }
 0x772   : > { %2465 = vst [vmem:[%s4023_s21 + $0xc] sm:$0xff] %v2749_v55  ;;  %v2748_v61 = vpack.c.bf16 %v2017_v56, %v2017_v56  ;;  %v1833_v62 = vpop.f32.mrb[20].mxu0  ;;  %v2020_v63 = vadd.f32 %v2019_v60, %v4017_v35 }
 0x773   : > { %2468 = vst [vmem:[%s4023_s21 + $0x20] sm:$0xf] %v2752_v58  ;;  %v1834_v3 = vadd.f32 %v1833_v62, %v4011_v11  ;;  %v2754_v7 = vpack.c.bf16 %v2028_v59, %v2028_v59  ;;  %v1835_v12 = vpop.f32.mrb[21].mxu0 }
 0x774   : > { %2464 = vst [vmem:[%s4023_s21 + $0x8] sm:$0xf] %v2748_v61  ;;  %v1836_v13 = vadd.f32 %v1835_v12, %v4013_v1  ;;  %v2750_v51 = vpack.c.bf16 %v2020_v63, %v2020_v63  ;;  %v1837_v52 = vpop.f32.mrb[22].mxu0 }
 0x775   : > { %2470 = vst [vmem:[%s4023_s21 + $0x2c] sm:$0xf] %v2754_v7  ;;  %v1838_v32 = vadd.f32 %v1837_v52, %v4011_v11  ;;  %v1839_v8 = vpop.f32.mrb[23].mxu0 }
 0x776   : > { %v2751_v33 = vpack.c.bf16 %v1836_v13, %v1834_v3  ;;  %2466 = vst [vmem:[%s4023_s21 + $0x14] sm:$0xf] %v2750_v51  ;;  %v1840_v9 = vadd.f32 %v1839_v8, %v4013_v1  ;;  %v3077_v2 = vpop.f32.mrb[28].mxu1 }
 0x777   : > { %v2041_v14 = vadd.f32 %v3077_v2, %v4017_v35  ;;  %v2032_v42 = vpop.f32.mrb[29].mxu1 }
 0x778   : > { %2467 = vst [vmem:[%s4023_s21 + $0x18] sm:$0xff] %v2751_v33  ;;  %v2753_v43 = vpack.c.bf16 %v1840_v9, %v1838_v32  ;;  %v2033_v15 = vadd.f32 %v2032_v42, %v4017_v35  ;;  %v3078_v4 = vpop.f32.mrb[30].mxu1 }
 0x779   : > { %v2760_v48 = vpack.c.bf16 %v2041_v14, %v2041_v14  ;;  %v2044_v46 = vadd.f32 %v3078_v4, %v4017_v35  ;;  %v2035_v18 = vpop.f32.mrb[31].mxu1 }
 0x77a   : > { %2469 = vst [vmem:[%s4023_s21 + $0x24] sm:$0xff] %v2753_v43  ;;  %v1843_v38 = vpop.f32.mrb[24].mxu0  ;;  %v2756_v39 = vpack.c.bf16 %v2033_v15, %v2033_v15  ;;  %v2036_v28 = vadd.f32 %v2035_v18, %v4017_v35 }
 0x77b   : > { %v1844_v19 = vadd.f32 %v1843_v38, %v4011_v11  ;;  %v1845_v49 = vpop.f32.mrb[25].mxu0  ;;  %2476 = vst [vmem:[%s4023_s21 + $0x50] sm:$0xf] %v2760_v48  ;;  %v2762_v22 = vpack.c.bf16 %v2044_v46, %v2044_v46 }
 0x77c   : > { %v1846_v5 = vadd.f32 %v1845_v49, %v4013_v1  ;;  %v1847_v44 = vpop.f32.mrb[26].mxu0  ;;  %2472 = vst [vmem:[%s4023_s21 + $0x38] sm:$0xf] %v2756_v39  ;;  %v2758_v45 = vpack.c.bf16 %v2036_v28, %v2036_v28 }
 0x77d   : > { %v1848_v23 = vadd.f32 %v1847_v44, %v4011_v11  ;;  %v1849_v6 = vpop.f32.mrb[27].mxu0  ;;  %2478 = vst [vmem:[%s4023_s21 + $0x5c] sm:$0xf] %v2762_v22 }
 0x77e   : > { %v2755_v16 = vpack.c.bf16 %v1846_v5, %v1844_v19  ;;  %v1850_v17 = vadd.f32 %v1849_v6, %v4013_v1  ;;  %2474 = vst [vmem:[%s4023_s21 + $0x44] sm:$0xf] %v2758_v45  ;;  %v3081_v30 = vpop.f32.mrb[32].mxu1 }
 0x77f   : > { %v2057_v31 = vadd.f32 %v3081_v30, %v4017_v35  ;;  %v2048_v20 = vpop.f32.mrb[33].mxu1 }
 0x780   : > { %2471 = vst [vmem:[%s4023_s21 + $0x30] sm:$0xff] %v2755_v16  ;;  %v2757_v24 = vpack.c.bf16 %v1850_v17, %v1848_v23  ;;  %v2049_v21 = vadd.f32 %v2048_v20, %v4017_v35  ;;  %v3082_v41 = vpop.f32.mrb[34].mxu1 }
 0x781   : > { %v2768_v27 = vpack.c.bf16 %v2057_v31, %v2057_v31  ;;  %v2060_v0 = vadd.f32 %v3082_v41, %v4017_v35  ;;  %v2051_v10 = vpop.f32.mrb[35].mxu1 }
 0x782   : > { %2473 = vst [vmem:[%s4023_s21 + $0x3c] sm:$0xff] %v2757_v24  ;;  %v1853_v40 = vpop.f32.mrb[28].mxu0  ;;  %v2764_v25 = vpack.c.bf16 %v2049_v21, %v2049_v21  ;;  %v2052_v47 = vadd.f32 %v2051_v10, %v4017_v35 }
 0x783   : > { %v1854_v26 = vadd.f32 %v1853_v40, %v4011_v11  ;;  %v1855_v36 = vpop.f32.mrb[29].mxu0  ;;  %2484 = vst [vmem:[%s4023_s21 + $0x80] sm:$0xf] %v2768_v27  ;;  %v2770_v37 = vpack.c.bf16 %v2060_v0, %v2060_v0 }
 0x784   : > { %v1856_v50 = vadd.f32 %v1855_v36, %v4013_v1  ;;  %v1857_v29 = vpop.f32.mrb[30].mxu0  ;;  %2480 = vst [vmem:[%s4023_s21 + $0x68] sm:$0xf] %v2764_v25  ;;  %v2766_v34 = vpack.c.bf16 %v2052_v47, %v2052_v47 }
 0x785   : > { %v1858_v53 = vadd.f32 %v1857_v29, %v4011_v11  ;;  %v1859_v54 = vpop.f32.mrb[31].mxu0  ;;  %2486 = vst [vmem:[%s4023_s21 + $0x8c] sm:$0xf] %v2770_v37 }
 0x786   : > { %v2759_v55 = vpack.c.bf16 %v1856_v50, %v1854_v26  ;;  %v1860_v56 = vadd.f32 %v1859_v54, %v4013_v1  ;;  %2482 = vst [vmem:[%s4023_s21 + $0x74] sm:$0xf] %v2766_v34  ;;  %v3085_v57 = vpop.f32.mrb[36].mxu1 }
 0x787   : > { %v2073_v58 = vadd.f32 %v3085_v57, %v4017_v35  ;;  %v2064_v59 = vpop.f32.mrb[37].mxu1 }
 0x788   : > { %2475 = vst [vmem:[%s4023_s21 + $0x48] sm:$0xff] %v2759_v55  ;;  %v2761_v60 = vpack.c.bf16 %v1860_v56, %v1858_v53  ;;  %v2065_v61 = vadd.f32 %v2064_v59, %v4017_v35  ;;  %v3086_v62 = vpop.f32.mrb[38].mxu1 }
 0x789   : > { %v2776_v63 = vpack.c.bf16 %v2073_v58, %v2073_v58  ;;  %v2076_v3 = vadd.f32 %v3086_v62, %v4017_v35  ;;  %v2067_v7 = vpop.f32.mrb[39].mxu1 }
 0x78a   : > { %2477 = vst [vmem:[%s4023_s21 + $0x54] sm:$0xff] %v2761_v60  ;;  %v1863_v12 = vpop.f32.mrb[32].mxu0  ;;  %v2772_v13 = vpack.c.bf16 %v2065_v61, %v2065_v61  ;;  %v2068_v51 = vadd.f32 %v2067_v7, %v4017_v35 }
 0x78b   : > { %v1864_v52 = vadd.f32 %v1863_v12, %v4011_v11  ;;  %v1865_v32 = vpop.f32.mrb[33].mxu0  ;;  %2492 = vst [vmem:[%s4023_s21 + $0xb0] sm:$0xf] %v2776_v63  ;;  %v2778_v8 = vpack.c.bf16 %v2076_v3, %v2076_v3 }
 0x78c   : > { %v1866_v33 = vadd.f32 %v1865_v32, %v4013_v1  ;;  %v1867_v9 = vpop.f32.mrb[34].mxu0  ;;  %2488 = vst [vmem:[%s4023_s21 + $0x98] sm:$0xf] %v2772_v13  ;;  %v2774_v2 = vpack.c.bf16 %v2068_v51, %v2068_v51 }
 0x78d   : > { %v1868_v14 = vadd.f32 %v1867_v9, %v4011_v11  ;;  %v1869_v42 = vpop.f32.mrb[35].mxu0  ;;  %2494 = vst [vmem:[%s4023_s21 + $0xbc] sm:$0xf] %v2778_v8 }
 0x78e   : > { %v2763_v43 = vpack.c.bf16 %v1866_v33, %v1864_v52  ;;  %v1870_v15 = vadd.f32 %v1869_v42, %v4013_v1  ;;  %2490 = vst [vmem:[%s4023_s21 + $0xa4] sm:$0xf] %v2774_v2  ;;  %v3089_v4 = vpop.f32.mrb[40].mxu1 }
 0x78f   : > { %v2089_v48 = vadd.f32 %v3089_v4, %v4017_v35  ;;  %v2080_v46 = vpop.f32.mrb[41].mxu1 }
 0x790   : > { %2479 = vst [vmem:[%s4023_s21 + $0x60] sm:$0xff] %v2763_v43  ;;  %v2765_v18 = vpack.c.bf16 %v1870_v15, %v1868_v14  ;;  %v2081_v38 = vadd.f32 %v2080_v46, %v4017_v35  ;;  %v3090_v39 = vpop.f32.mrb[42].mxu1 }
 0x791   : > { %v2784_v28 = vpack.c.bf16 %v2089_v48, %v2089_v48  ;;  %v2092_v19 = vadd.f32 %v3090_v39, %v4017_v35  ;;  %v2083_v49 = vpop.f32.mrb[43].mxu1 }
 0x792   : > { %2481 = vst [vmem:[%s4023_s21 + $0x6c] sm:$0xff] %v2765_v18  ;;  %v1873_v22 = vpop.f32.mrb[36].mxu0  ;;  %v2780_v5 = vpack.c.bf16 %v2081_v38, %v2081_v38  ;;  %v2084_v44 = vadd.f32 %v2083_v49, %v4017_v35 }
 0x793   : > { %v1874_v45 = vadd.f32 %v1873_v22, %v4011_v11  ;;  %v1875_v23 = vpop.f32.mrb[37].mxu0  ;;  %2500 = vst [vmem:[%s4023_s21 + $0xe0] sm:$0xf] %v2784_v28  ;;  %v2786_v6 = vpack.c.bf16 %v2092_v19, %v2092_v19 }
 0x794   : > { %v1876_v16 = vadd.f32 %v1875_v23, %v4013_v1  ;;  %v1877_v17 = vpop.f32.mrb[38].mxu0  ;;  %2496 = vst [vmem:[%s4023_s21 + $0xc8] sm:$0xf] %v2780_v5  ;;  %v2782_v30 = vpack.c.bf16 %v2084_v44, %v2084_v44 }
 0x795   : > { %v1878_v31 = vadd.f32 %v1877_v17, %v4011_v11  ;;  %v1879_v20 = vpop.f32.mrb[39].mxu0  ;;  %2502 = vst [vmem:[%s4023_s21 + $0xec] sm:$0xf] %v2786_v6 }
 0x796   : > { %v2767_v24 = vpack.c.bf16 %v1876_v16, %v1874_v45  ;;  %v1880_v21 = vadd.f32 %v1879_v20, %v4013_v1  ;;  %2498 = vst [vmem:[%s4023_s21 + $0xd4] sm:$0xf] %v2782_v30  ;;  %v3093_v41 = vpop.f32.mrb[44].mxu1 }
 0x797   : > { %v2105_v27 = vadd.f32 %v3093_v41, %v4017_v35  ;;  %v2096_v0 = vpop.f32.mrb[45].mxu1 }
 0x798   : > { %2483 = vst [vmem:[%s4023_s21 + $0x78] sm:$0xff] %v2767_v24  ;;  %v2769_v10 = vpack.c.bf16 %v1880_v21, %v1878_v31  ;;  %v2097_v40 = vadd.f32 %v2096_v0, %v4017_v35  ;;  %v3094_v25 = vpop.f32.mrb[46].mxu1 }
 0x799   : > { %v2792_v47 = vpack.c.bf16 %v2105_v27, %v2105_v27  ;;  %v2108_v26 = vadd.f32 %v3094_v25, %v4017_v35  ;;  %v2099_v36 = vpop.f32.mrb[47].mxu1 }
 0x79a   : > { %2485 = vst [vmem:[%s4023_s21 + $0x84] sm:$0xff] %v2769_v10  ;;  %v1883_v37 = vpop.f32.mrb[40].mxu0  ;;  %v2788_v50 = vpack.c.bf16 %v2097_v40, %v2097_v40  ;;  %v2100_v29 = vadd.f32 %v2099_v36, %v4017_v35 }
 0x79b   : > { %v1884_v34 = vadd.f32 %v1883_v37, %v4011_v11  ;;  %v1885_v53 = vpop.f32.mrb[41].mxu0  ;;  %2508 = vst [vmem:[%s4023_s21 + $0x110] sm:$0xf] %v2792_v47  ;;  %v2794_v54 = vpack.c.bf16 %v2108_v26, %v2108_v26 }
 0x79c   : > { %v1886_v55 = vadd.f32 %v1885_v53, %v4013_v1  ;;  %v1887_v56 = vpop.f32.mrb[42].mxu0  ;;  %2504 = vst [vmem:[%s4023_s21 + $0xf8] sm:$0xf] %v2788_v50  ;;  %v2790_v57 = vpack.c.bf16 %v2100_v29, %v2100_v29 }
 0x79d   : > { %v1888_v58 = vadd.f32 %v1887_v56, %v4011_v11  ;;  %v1889_v59 = vpop.f32.mrb[43].mxu0  ;;  %2510 = vst [vmem:[%s4023_s21 + $0x11c] sm:$0xf] %v2794_v54 }
 0x79e   : > { %v2771_v60 = vpack.c.bf16 %v1886_v55, %v1884_v34  ;;  %v1890_v61 = vadd.f32 %v1889_v59, %v4013_v1  ;;  %2506 = vst [vmem:[%s4023_s21 + $0x104] sm:$0xf] %v2790_v57  ;;  %v3097_v62 = vpop.f32.mrb[48].mxu1 }
 0x79f   : > { %v2121_v63 = vadd.f32 %v3097_v62, %v4017_v35  ;;  %v2112_v3 = vpop.f32.mrb[49].mxu1 }
 0x7a0   : > { %2487 = vst [vmem:[%s4023_s21 + $0x90] sm:$0xff] %v2771_v60  ;;  %v2773_v7 = vpack.c.bf16 %v1890_v61, %v1888_v58  ;;  %v2113_v12 = vadd.f32 %v2112_v3, %v4017_v35  ;;  %v3098_v13 = vpop.f32.mrb[50].mxu1 }
 0x7a1   : > { %v2800_v51 = vpack.c.bf16 %v2121_v63, %v2121_v63  ;;  %v2124_v52 = vadd.f32 %v3098_v13, %v4017_v35  ;;  %v2115_v32 = vpop.f32.mrb[51].mxu1 }
 0x7a2   : > { %2489 = vst [vmem:[%s4023_s21 + $0x9c] sm:$0xff] %v2773_v7  ;;  %v1893_v8 = vpop.f32.mrb[44].mxu0  ;;  %v2796_v33 = vpack.c.bf16 %v2113_v12, %v2113_v12  ;;  %v2116_v9 = vadd.f32 %v2115_v32, %v4017_v35 }
 0x7a3   : > { %v1894_v2 = vadd.f32 %v1893_v8, %v4011_v11  ;;  %v1895_v14 = vpop.f32.mrb[45].mxu0  ;;  %2516 = vst [vmem:[%s4023_s21 + $0x140] sm:$0xf] %v2800_v51  ;;  %v2802_v42 = vpack.c.bf16 %v2124_v52, %v2124_v52 }
 0x7a4   : > { %v1896_v43 = vadd.f32 %v1895_v14, %v4013_v1  ;;  %v1897_v15 = vpop.f32.mrb[46].mxu0  ;;  %2512 = vst [vmem:[%s4023_s21 + $0x128] sm:$0xf] %v2796_v33  ;;  %v2798_v4 = vpack.c.bf16 %v2116_v9, %v2116_v9 }
 0x7a5   : > { %v1898_v48 = vadd.f32 %v1897_v15, %v4011_v11  ;;  %v1899_v46 = vpop.f32.mrb[47].mxu0  ;;  %2518 = vst [vmem:[%s4023_s21 + $0x14c] sm:$0xf] %v2802_v42 }
 0x7a6   : > { %v2775_v18 = vpack.c.bf16 %v1896_v43, %v1894_v2  ;;  %v1900_v38 = vadd.f32 %v1899_v46, %v4013_v1  ;;  %2514 = vst [vmem:[%s4023_s21 + $0x134] sm:$0xf] %v2798_v4  ;;  %v3101_v39 = vpop.f32.mrb[52].mxu1 }
 0x7a7   : > { %v2137_v28 = vadd.f32 %v3101_v39, %v4017_v35  ;;  %v2128_v19 = vpop.f32.mrb[53].mxu1 }
 0x7a8   : > { %2491 = vst [vmem:[%s4023_s21 + $0xa8] sm:$0xff] %v2775_v18  ;;  %v2777_v49 = vpack.c.bf16 %v1900_v38, %v1898_v48  ;;  %v2129_v22 = vadd.f32 %v2128_v19, %v4017_v35  ;;  %v3102_v5 = vpop.f32.mrb[54].mxu1 }
 0x7a9   : > { %v2808_v44 = vpack.c.bf16 %v2137_v28, %v2137_v28  ;;  %v2140_v45 = vadd.f32 %v3102_v5, %v4017_v35  ;;  %v2131_v23 = vpop.f32.mrb[55].mxu1 }
 0x7aa   : > { %2493 = vst [vmem:[%s4023_s21 + $0xb4] sm:$0xff] %v2777_v49  ;;  %v1903_v6 = vpop.f32.mrb[48].mxu0  ;;  %v2804_v16 = vpack.c.bf16 %v2129_v22, %v2129_v22  ;;  %v2132_v17 = vadd.f32 %v2131_v23, %v4017_v35 }
 0x7ab   : > { %v1904_v30 = vadd.f32 %v1903_v6, %v4011_v11  ;;  %v1905_v31 = vpop.f32.mrb[49].mxu0  ;;  %2524 = vst [vmem:[%s4023_s21 + $0x170] sm:$0xf] %v2808_v44  ;;  %v2810_v20 = vpack.c.bf16 %v2140_v45, %v2140_v45 }
 0x7ac   : > { %v1906_v24 = vadd.f32 %v1905_v31, %v4013_v1  ;;  %v1907_v21 = vpop.f32.mrb[50].mxu0  ;;  %2520 = vst [vmem:[%s4023_s21 + $0x158] sm:$0xf] %v2804_v16  ;;  %v2806_v41 = vpack.c.bf16 %v2132_v17, %v2132_v17 }
 0x7ad   : > { %v1908_v27 = vadd.f32 %v1907_v21, %v4011_v11  ;;  %v1909_v0 = vpop.f32.mrb[51].mxu0  ;;  %2526 = vst [vmem:[%s4023_s21 + $0x17c] sm:$0xf] %v2810_v20 }
 0x7ae   : > { %v2779_v10 = vpack.c.bf16 %v1906_v24, %v1904_v30  ;;  %v1910_v40 = vadd.f32 %v1909_v0, %v4013_v1  ;;  %2522 = vst [vmem:[%s4023_s21 + $0x164] sm:$0xf] %v2806_v41 }
 0x7b0   : > { %2495 = vst [vmem:[%s4023_s21 + $0xc0] sm:$0xff] %v2779_v10  ;;  %v2781_v35 = vpack.c.bf16 %v1910_v40, %v1908_v27 }
 0x7b2   : > { %2497 = vst [vmem:[%s4023_s21 + $0xcc] sm:$0xff] %v2781_v35  ;;  %v1913_v25 = vpop.f32.mrb[52].mxu0 }
 0x7b3   : > { %v1914_v47 = vadd.f32 %v1913_v25, %v4011_v11  ;;  %v1915_v26 = vpop.f32.mrb[53].mxu0 }
 0x7b4   : > { %v1916_v36 = vadd.f32 %v1915_v26, %v4013_v1  ;;  %v1917_v37 = vpop.f32.mrb[54].mxu0 }
 0x7b5   : > { %v1918_v50 = vadd.f32 %v1917_v37, %v4011_v11  ;;  %v1919_v29 = vpop.f32.mrb[55].mxu0 }
 0x7b6   : > { %v2783_v34 = vpack.c.bf16 %v1916_v36, %v1914_v47  ;;  %v1920_v53 = vadd.f32 %v1919_v29, %v4013_v1 }
 0x7b8   : > { %2499 = vst [vmem:[%s4023_s21 + $0xd8] sm:$0xff] %v2783_v34  ;;  %v2785_v54 = vpack.c.bf16 %v1920_v53, %v1918_v50 }
 0x7ba   : > { %2501 = vst [vmem:[%s4023_s21 + $0xe4] sm:$0xff] %v2785_v54  ;;  %v1923_v55 = vpop.f32.mrb[56].mxu0 }
 0x7bb   : > { %v1924_v56 = vadd.f32 %v1923_v55, %v4011_v11  ;;  %v1925_v57 = vpop.f32.mrb[57].mxu0 }
 0x7bc   : > { %v1926_v58 = vadd.f32 %v1925_v57, %v4013_v1  ;;  %v1927_v59 = vpop.f32.mrb[58].mxu0 }
 0x7bd   : > { %v1928_v60 = vadd.f32 %v1927_v59, %v4011_v11  ;;  %v1929_v61 = vpop.f32.mrb[59].mxu0 }
 0x7be   : > { %v2787_v62 = vpack.c.bf16 %v1926_v58, %v1924_v56  ;;  %v1930_v63 = vadd.f32 %v1929_v61, %v4013_v1 }
 0x7c0   : > { %2503 = vst [vmem:[%s4023_s21 + $0xf0] sm:$0xff] %v2787_v62  ;;  %v2789_v3 = vpack.c.bf16 %v1930_v63, %v1928_v60 }
 0x7c2   : > { %2505 = vst [vmem:[%s4023_s21 + $0xfc] sm:$0xff] %v2789_v3  ;;  %v1933_v7 = vpop.f32.mrb[60].mxu0 }
 0x7c3   : > { %v1934_v12 = vadd.f32 %v1933_v7, %v4011_v11  ;;  %v1935_v13 = vpop.f32.mrb[61].mxu0 }
 0x7c4   : > { %v1936_v51 = vadd.f32 %v1935_v13, %v4013_v1  ;;  %v1937_v52 = vpop.f32.mrb[62].mxu0 }
 0x7c5   : > { %v1938_v32 = vadd.f32 %v1937_v52, %v4011_v11  ;;  %v1939_v8 = vpop.f32.mrb[63].mxu0 }
 0x7c6   : > { %v2791_v33 = vpack.c.bf16 %v1936_v51, %v1934_v12  ;;  %v1940_v9 = vadd.f32 %v1939_v8, %v4013_v1 }
 0x7c8   : > { %2507 = vst [vmem:[%s4023_s21 + $0x108] sm:$0xff] %v2791_v33  ;;  %v2793_v2 = vpack.c.bf16 %v1940_v9, %v1938_v32 }
 0x7ca   : > { %2509 = vst [vmem:[%s4023_s21 + $0x114] sm:$0xff] %v2793_v2  ;;  %v1943_v14 = vpop.f32.mrb[64].mxu0 }
 0x7cb   : > { %v1944_v42 = vadd.f32 %v1943_v14, %v4011_v11  ;;  %v1945_v43 = vpop.f32.mrb[65].mxu0 }
 0x7cc   : > { %v1946_v15 = vadd.f32 %v1945_v43, %v4013_v1  ;;  %v1947_v4 = vpop.f32.mrb[66].mxu0 }
 0x7cd   : > { %v1948_v48 = vadd.f32 %v1947_v4, %v4011_v11  ;;  %v1949_v46 = vpop.f32.mrb[67].mxu0 }
 0x7ce   : > { %v2795_v18 = vpack.c.bf16 %v1946_v15, %v1944_v42  ;;  %v1950_v38 = vadd.f32 %v1949_v46, %v4013_v1 }
 0x7d0   : > { %2511 = vst [vmem:[%s4023_s21 + $0x120] sm:$0xff] %v2795_v18  ;;  %v2797_v39 = vpack.c.bf16 %v1950_v38, %v1948_v48 }
 0x7d2   : > { %2513 = vst [vmem:[%s4023_s21 + $0x12c] sm:$0xff] %v2797_v39  ;;  %v1953_v28 = vpop.f32.mrb[68].mxu0 }
 0x7d3   : > { %v1954_v19 = vadd.f32 %v1953_v28, %v4011_v11  ;;  %v1955_v49 = vpop.f32.mrb[69].mxu0 }
 0x7d4   : > { %v1956_v22 = vadd.f32 %v1955_v49, %v4013_v1  ;;  %v1957_v5 = vpop.f32.mrb[70].mxu0 }
 0x7d5   : > { %v1958_v44 = vadd.f32 %v1957_v5, %v4011_v11  ;;  %v1959_v45 = vpop.f32.mrb[71].mxu0 }
 0x7d6   : > { %v2799_v23 = vpack.c.bf16 %v1956_v22, %v1954_v19  ;;  %v1960_v6 = vadd.f32 %v1959_v45, %v4013_v1 }
 0x7d8   : > { %2515 = vst [vmem:[%s4023_s21 + $0x138] sm:$0xff] %v2799_v23  ;;  %v2801_v16 = vpack.c.bf16 %v1960_v6, %v1958_v44 }
 0x7da   : > { %2517 = vst [vmem:[%s4023_s21 + $0x144] sm:$0xff] %v2801_v16  ;;  %v1963_v17 = vpop.f32.mrb[72].mxu0 }
 0x7db   : > { %v1964_v30 = vadd.f32 %v1963_v17, %v4011_v11  ;;  %v1965_v31 = vpop.f32.mrb[73].mxu0 }
 0x7dc   : > { %v1966_v20 = vadd.f32 %v1965_v31, %v4013_v1  ;;  %v1967_v24 = vpop.f32.mrb[74].mxu0 }
 0x7dd   : > { %v1968_v21 = vadd.f32 %v1967_v24, %v4011_v11  ;;  %v1969_v41 = vpop.f32.mrb[75].mxu0 }
 0x7de   : > { %v2803_v27 = vpack.c.bf16 %v1966_v20, %v1964_v30  ;;  %v1970_v0 = vadd.f32 %v1969_v41, %v4013_v1 }
 0x7e0   : > { %2519 = vst [vmem:[%s4023_s21 + $0x150] sm:$0xff] %v2803_v27  ;;  %v2805_v10 = vpack.c.bf16 %v1970_v0, %v1968_v21 }
 0x7e2   : > { %2521 = vst [vmem:[%s4023_s21 + $0x15c] sm:$0xff] %v2805_v10  ;;  %v1973_v40 = vpop.f32.mrb[76].mxu0 }
 0x7e3   : > { %v1974_v35 = vadd.f32 %v1973_v40, %v4011_v11  ;;  %v1975_v25 = vpop.f32.mrb[77].mxu0 }
 0x7e4   : > { %v1976_v47 = vadd.f32 %v1975_v25, %v4013_v1  ;;  %v1977_v26 = vpop.f32.mrb[78].mxu0 }
 0x7e5   : > { %v1978_v36 = vadd.f32 %v1977_v26, %v4011_v11  ;;  %v1979_v37 = vpop.f32.mrb[79].mxu0 }
 0x7e6   : > { %v2807_v50 = vpack.c.bf16 %v1976_v47, %v1974_v35  ;;  %v1980_v29 = vadd.f32 %v1979_v37, %v4013_v1 }
 0x7e8   : > { %2523 = vst [vmem:[%s4023_s21 + $0x168] sm:$0xff] %v2807_v50  ;;  %v2809_v34 = vpack.c.bf16 %v1980_v29, %v1978_v36 }
 0x7ea   : > { %2525 = vst [vmem:[%s4023_s21 + $0x174] sm:$0xff] %v2809_v34 }
 0x7eb PF: > { %s17_s26 = sadd.s32 1, %s3297_s26   ;;  %s4257_s24 = smov %s3293_s25 }
 0x7ec   : > { %p14_p5 = scmp.ge.s32.totalorder %s17_s26, 4   ;;  %s4258_s25 = smov %s4260_s27 }
 0x7ee   :  { %16 = sbr.rel (!%p14_p5) target bundleno = 2 (0x2), region = 83 }

</bundles_post_ra>
